<compile_context>
chip_gen: v7x
topology: tpu7x:2x2x1
jax: 0.10.0
libtpu: 0.0.40
codegen_flags: <defaults>
</compile_context>

<pallas_src>
import functools
import math

import jax
import jax.numpy as jnp
from jax.experimental import pallas as pl
from jax.experimental.pallas import tpu as pltpu


_VMEM_LIMIT_BYTES = 32 * 1024 * 1024


def _round_up(x, m):
    return (x + m - 1) // m * m


# ----------------------------------------------------------------------------
# Conv2d(+ReLU) kernel: in-kernel im2col via banded weights.
#
# After an (optional) space-to-depth in the wrapper every conv is stride-1.
# The per-sample input block is a 2-D slab X = (Hp, Wp*C) (rows = input rows,
# cols = (w, c)); the output block is O = (Ho, Wo*OC).  For each kernel row i
# the contribution of ALL kw column taps is folded into one banded weight
# matrix Wb[i] of shape (Wp*C, Wo*OC):
#       O += X[i : i + Ho, :] @ Wb[i]
# so the kernel body is just kh' matmuls + bias + ReLU: no gather, no in-kernel
# reshape, and no patch matrix in HBM.
# ----------------------------------------------------------------------------
def _conv_band_kernel(x_ref, w_ref, b_ref, o_ref, *, khp, ho, nb):
    bias = b_ref[...]                               # (1, Wo*OC) f32
    for b in range(nb):                             # static unroll over samples in block
        acc = jnp.dot(x_ref[b, pl.ds(0, ho), :], w_ref[0],
                      preferred_element_type=jnp.float32)
        for i in range(1, khp):
            acc += jnp.dot(x_ref[b, pl.ds(i, ho), :], w_ref[i],
                           preferred_element_type=jnp.float32)
        o_ref[b] = jnp.maximum(acc + bias, 0.0).astype(o_ref.dtype)


def conv2d_relu(x_nhwc, wband, brow, g, *, out_dtype=jnp.bfloat16):
    """x_nhwc: (B, H, W, Cin) bf16.  Returns (B, Ho, Wo, OC) in out_dtype."""
    B = x_nhwc.shape[0]
    s = g["s"]
    x = x_nhwc[:, :g["Hu"], :g["Wu"], :]            # crop rows/cols the conv never reads
    if s > 1:
        # space-to-depth: stride-s conv -> stride-1 conv (tiny activation transpose).
        C = x.shape[-1]
        x = x.reshape(B, g["Hp"], s, g["Wp"], s, C).transpose(0, 1, 3, 2, 4, 5)
    x = x.reshape(B, g["Hp"], g["Wp"] * g["Cp"])    # per-sample 2-D slab

    nb = max(d for d in (8, 4, 2, 1) if B % d == 0)  # samples per grid step
    kernel = functools.partial(_conv_band_kernel, khp=g["khp"], ho=g["Ho"], nb=nb)

    out = pl.pallas_call(
        kernel,
        out_shape=jax.ShapeDtypeStruct((B, g["Ho"], g["Wo"] * g["OC"]), out_dtype),
        grid_spec=pltpu.PrefetchScalarGridSpec(
            num_scalar_prefetch=0,
            grid=(B // nb,),
            in_specs=[
                pl.BlockSpec((nb, g["Hp"], g["Wp"] * g["Cp"]),
                             lambda i: (i, 0, 0)),                      # activations: stream
                pl.BlockSpec((g["khp"], g["Wp"] * g["Cp"], g["Wo"] * g["OC"]),
                             lambda i: (0, 0, 0)),                      # banded weights: resident
                pl.BlockSpec((1, g["Wo"] * g["OC"]), lambda i: (0, 0)),  # bias: resident
            ],
            out_specs=pl.BlockSpec((nb, g["Ho"], g["Wo"] * g["OC"]),
                                   lambda i: (i, 0, 0)),
        ),
        compiler_params=pltpu.CompilerParams(
            dimension_semantics=("parallel",),
            vmem_limit_bytes=_VMEM_LIMIT_BYTES),
    )(x, wband, brow)
    # (B, Ho, Wo*OC) and (B, Ho, Wo, OC) share one memory layout: free reshape.
    return out.reshape(B, g["Ho"], g["Wo"], g["OC"])


# ----------------------------------------------------------------------------
# Fused  out = relu(x @ w1 + b1) @ w2 + b2  (fc1 + fc2 in one pass).
# Weights resident; the (M, 512) hidden never leaves VMEM.
# ----------------------------------------------------------------------------
def _fused_fc_kernel(x_ref, w1_ref, b1_ref, w2_ref, b2_ref, o_ref):
    h = jnp.dot(x_ref[...], w1_ref[...], preferred_element_type=jnp.float32)
    h = jnp.maximum(h + b1_ref[...], 0.0)
    acc = jnp.dot(h.astype(w2_ref.dtype), w2_ref[...],
                  preferred_element_type=jnp.float32)
    o_ref[...] = (acc + b2_ref[...]).astype(o_ref.dtype)


def pallas_fused_mlp(x, w1, b1, w2, b2):
    M, K = x.shape
    _, N1 = w1.shape
    _, N2 = w2.shape

    Mp16 = _round_up(max(M, 1), 16)                 # bf16 sublane packing
    if Mp16 >= 32:
        # >=2 grid steps along the "parallel" axis so both v7x TensorCores engage.
        tm = min(256, _round_up((Mp16 + 1) // 2, 16))
    else:
        tm = Mp16
    Mp = _round_up(M, tm)

    xp = x.astype(jnp.bfloat16)
    if Mp != M:
        xp = jnp.pad(xp, ((0, Mp - M), (0, 0)))

    out = pl.pallas_call(
        _fused_fc_kernel,
        out_shape=jax.ShapeDtypeStruct((Mp, N2), jnp.float32),
        grid_spec=pltpu.PrefetchScalarGridSpec(
            num_scalar_prefetch=0,
            grid=(Mp // tm,),
            in_specs=[
                pl.BlockSpec((tm, K), lambda i: (i, 0)),   # activations: stream
                pl.BlockSpec((K, N1), lambda i: (0, 0)),   # fc1 weight: resident
                pl.BlockSpec((1, N1), lambda i: (0, 0)),   # fc1 bias: resident
                pl.BlockSpec((N1, N2), lambda i: (0, 0)),  # fc2 weight: resident (N padded to 128)
                pl.BlockSpec((1, N2), lambda i: (0, 0)),   # fc2 bias: resident
            ],
            out_specs=pl.BlockSpec((tm, N2), lambda i: (i, 0)),
        ),
        compiler_params=pltpu.CompilerParams(
            dimension_semantics=("parallel",),
            vmem_limit_bytes=_VMEM_LIMIT_BYTES),
    )(xp, w1, b1, w2, b2)

    if Mp != M:
        out = out[:M]
    return out


# ----------------------------------------------------------------------------
# One-time conv weight prep (hoisted out of the forward path).
# ----------------------------------------------------------------------------
def _prep_conv(w, b, s, H, W):
    """w: (OC, Cin, kh, kw) f32 (PyTorch layout); stride s; input spatial (H, W).
    Returns bf16 banded weights (kh', Wp*Cp, Wo*OC), f32 bias row (1, Wo*OC)
    and the layer geometry (Python ints)."""
    OC, Cin, kh, kw = w.shape
    assert kh % s == 0 and kw % s == 0
    Ho = (H - kh) // s + 1
    Wo = (W - kw) // s + 1
    assert Ho >= 1 and Wo >= 1
    Hu, Wu = (Ho - 1) * s + kh, (Wo - 1) * s + kw    # cropped (actually used) extent
    Hp, Wp = Hu // s, Wu // s                        # post-space-to-depth spatial
    khp, kwp = kh // s, kw // s                      # post-space-to-depth kernel
    Cp = Cin * s * s                                 # post-space-to-depth channels

    # (OC, Cin, kh, kw) -> stride-1 equivalent (khp, kwp, Cp, OC),
    # packed channel order (di, dj, c) matching the wrapper's space-to-depth.
    wt = (w.reshape(OC, Cin, khp, s, kwp, s)
           .transpose(2, 4, 3, 5, 1, 0)
           .reshape(khp, kwp, Cp, OC))

    # Fold the kwp column taps into one banded (Wp*Cp, Wo*OC) matrix per kernel row:
    #   band[i][w*Cp + c, wo*OC + oc] = wt[i, w - wo, c, oc]  if 0 <= w - wo < kwp.
    wo_idx = jnp.arange(Wo)
    rows = []
    for i in range(khp):
        bi = jnp.zeros((Wp, Cp, Wo, OC), jnp.float32)
        for j in range(kwp):
            sel = jnp.zeros((Wp, Wo), jnp.float32).at[wo_idx + j, wo_idx].set(1.0)
            bi = bi + sel[:, None, :, None] * wt[i, j][None, :, None, :]
        rows.append(bi.reshape(Wp * Cp, Wo * OC))
    wband = jnp.stack(rows, axis=0).astype(jnp.bfloat16)

    brow = jnp.tile(b.astype(jnp.float32), (Wo,)).reshape(1, Wo * OC)
    geom = dict(s=s, Ho=Ho, Wo=Wo, Hu=Hu, Wu=Wu, Hp=Hp, Wp=Wp, Cp=Cp, OC=OC, khp=khp)
    return wband, brow, geom


# ----------------------------------------------------------------------------
# Forward (jitted) and module.
# ----------------------------------------------------------------------------
def _dqn_forward(params, x_nchw, *, geoms, num_actions):
    g1, g2, g3 = geoms
    # bf16 at the boundary; single NCHW -> NHWC transpose.
    x = jnp.transpose(x_nchw.astype(jnp.bfloat16), (0, 2, 3, 1))
    x = conv2d_relu(x, params["w1"], params["b1"], g1)
    x = conv2d_relu(x, params["w2"], params["b2"], g2)
    x = conv2d_relu(x, params["w3"], params["b3"], g3)
    B = x.shape[0]
    x = x.reshape(B, -1)   # channels-last flatten; fc1 rows were permuted at init
    out = pallas_fused_mlp(x, params["wf1"], params["bf1"],
                           params["wf2"], params["bf2"])
    return out[:, :num_actions]


class DQNPallas:
    def __init__(self, input_dims, num_actions, fc1_dims=512, fc2_dims=512, seed=0):
        C, H, W = input_dims
        key = jax.random.PRNGKey(seed)
        ks = jax.random.split(key, 10)

        def uinit(k, shape, fan_in):
            bound = 1.0 / math.sqrt(fan_in)
            return jax.random.uniform(k, shape, jnp.float32, -bound, bound)

        # Raw parameters in PyTorch layout (kept f32 for the reference check).
        w1 = uinit(ks[0], (32, C, 8, 8), C * 8 * 8)
        b1 = uinit(ks[1], (32,), C * 8 * 8)
        w2 = uinit(ks[2], (64, 32, 4, 4), 32 * 4 * 4)
        b2 = uinit(ks[3], (64,), 32 * 4 * 4)
        w3 = uinit(ks[4], (64, 64, 3, 3), 64 * 3 * 3)
        b3 = uinit(ks[5], (64,), 64 * 3 * 3)

        # One-time conv weight prep: banded stride-1 form (see _prep_conv).
        wb1, br1, g1 = _prep_conv(w1, b1, 4, H, W)
        wb2, br2, g2 = _prep_conv(w2, b2, 2, g1["Ho"], g1["Wo"])
        wb3, br3, g3 = _prep_conv(w3, b3, 1, g2["Ho"], g2["Wo"])
        hh3, ww3 = g3["Ho"], g3["Wo"]
        self.fc_input_size = 64 * hh3 * ww3           # same arithmetic as the torch probe

        wf1 = uinit(ks[6], (self.fc_input_size, fc1_dims), self.fc_input_size)
        bf1 = uinit(ks[7], (fc1_dims,), self.fc_input_size)
        wf2 = uinit(ks[8], (fc2_dims, num_actions), fc2_dims)
        bf2 = uinit(ks[9], (num_actions,), fc2_dims)

        # fc1: permute rows from NCHW-flatten order to channels-last-flatten order
        # so the math matches PyTorch's x.view(B, -1) exactly.
        wf1_cl = (wf1.reshape(64, hh3, ww3, fc1_dims)
                  .transpose(1, 2, 0, 3)
                  .reshape(self.fc_input_size, fc1_dims)
                  .astype(jnp.bfloat16))
        # fc2: pad num_actions to a lane-dense 128 (zero columns, sliced off later).
        n2p = _round_up(num_actions, 128)
        wf2p = jnp.pad(wf2, ((0, 0), (0, n2p - num_actions))).astype(jnp.bfloat16)
        bf2p = jnp.pad(bf2, (0, n2p - num_actions)).reshape(1, n2p).astype(jnp.float32)

        self.num_actions = num_actions
        self.params = {
            "w1": wb1, "b1": br1, "w2": wb2, "b2": br2, "w3": wb3, "b3": br3,
            "wf1": wf1_cl, "bf1": bf1.reshape(1, -1).astype(jnp.float32),
            "wf2": wf2p, "bf2": bf2p,
        }
        # Raw f32 copies, only used by the pure-JAX reference check in __main__.
        self._raw = {"w1": w1, "b1": b1, "w2": w2, "b2": b2, "w3": w3, "b3": b3,
                     "wf1": wf1, "bf1": bf1, "wf2": wf2, "bf2": bf2}
        self._forward = jax.jit(functools.partial(
            _dqn_forward, geoms=(g1, g2, g3), num_actions=num_actions))

    def __call__(self, x):
        # x: (B, C, H, W) float32 (NCHW, PyTorch interface)
        return self._forward(self.params, x)


def _reference_forward(raw, x):
    """Pure-JAX f32 reference with exact PyTorch semantics."""
    x = x.astype(jnp.float32)

    def conv(x, w, b, s):
        y = jax.lax.conv_general_dilated(
            x, w, window_strides=(s, s), padding="VALID",
            dimension_numbers=("NCHW", "OIHW", "NCHW"),
            precision=jax.lax.Precision.HIGHEST)
        return jax.nn.relu(y + b[None, :, None, None])

    x = conv(x, raw["w1"], raw["b1"], 4)
    x = conv(x, raw["w2"], raw["b2"], 2)
    x = conv(x, raw["w3"], raw["b3"], 1)
    x = x.reshape(x.shape[0], -1)
    x = jax.nn.relu(jnp.dot(x, raw["wf1"], precision=jax.lax.Precision.HIGHEST)
                    + raw["bf1"])
    return jnp.dot(x, raw["wf2"], precision=jax.lax.Precision.HIGHEST) + raw["bf2"]


if __name__ == "__main__":
    # Smallest spatial size that keeps all three convs valid: 36 -> 8 -> 3 -> 1.
    input_dims = (4, 36, 36)
    num_actions = 6
    batch = 2

    model = DQNPallas(input_dims, num_actions)

    key = jax.random.PRNGKey(0)
    x = jax.random.normal(key, (batch,) + input_dims, dtype=jnp.float32)

    actions = model(x)
    jax.block_until_ready(actions)
    assert actions.shape == (batch, num_actions), actions.shape
    assert bool(jnp.all(jnp.isfinite(actions)))

    # Loose parity check vs a pure-JAX f32 reference (bf16 weights/activations in
    # the Pallas path give ~1e-2-level drift at most).
    ref = _reference_forward(model._raw, x)
    max_err = float(jnp.max(jnp.abs(actions - ref)))
    assert max_err < 5e-2, max_err

    print("KERNEL_OK")
</pallas_src>

<mosaic_0001>
module attributes {stable_mosaic.version = 11 : i64} {
  func.func @_conv_band_kernel(%arg0: i32, %arg1: memref<2x9x576xbf16, #tpu.memory_space<vmem>>, %arg2: memref<2x576x256xbf16, #tpu.memory_space<vmem>>, %arg3: memref<1x256xf32, #tpu.memory_space<vmem>>, %arg4: memref<2x8x256xbf16, #tpu.memory_space<vmem>>) attributes {dimension_semantics = [#tpu.dimension_semantics<parallel>], iteration_bounds = array<i64: 1>, scalar_prefetch = 0 : i64, scratch_operands = 0 : i64, tpu.core_type = #tpu.core_type<tc>, window_params = [{transform_indices = @transform_0, window_bounds = array<i64: 2, 9, 576>}, {pipeline_mode = #tpu.pipeline_mode<synchronous>, transform_indices = @transform_1, window_bounds = array<i64: 2, 576, 256>}, {pipeline_mode = #tpu.pipeline_mode<synchronous>, transform_indices = @transform_2, window_bounds = array<i64: 1, 256>}, {transform_indices = @transform_3, window_bounds = array<i64: 2, 8, 256>}]} {
    %c0 = arith.constant 0 : index
    %c0_0 = arith.constant 0 : index
    %0 = vector.load %arg3[%c0, %c0_0] : memref<1x256xf32, #tpu.memory_space<vmem>>, vector<1x256xf32>
    %c0_1 = arith.constant 0 : index
    %c0_2 = arith.constant 0 : index
    %c0_3 = arith.constant 0 : index
    %1 = vector.load %arg1[%c0_1, %c0_2, %c0_3] : memref<2x9x576xbf16, #tpu.memory_space<vmem>>, vector<1x8x576xbf16>
    %2 = vector.shape_cast %1 : vector<1x8x576xbf16> to vector<8x576xbf16>
    %c0_4 = arith.constant 0 : index
    %c0_5 = arith.constant 0 : index
    %c0_6 = arith.constant 0 : index
    %3 = vector.load %arg2[%c0_4, %c0_5, %c0_6] : memref<2x576x256xbf16, #tpu.memory_space<vmem>>, vector<1x576x256xbf16>
    %4 = vector.shape_cast %3 : vector<1x576x256xbf16> to vector<576x256xbf16>
    %cst = arith.constant dense<0.000000e+00> : vector<8x256xf32>
    %5 = tpu.matmul %2, %4, %cst {dimension_numbers = #tpu.dot_dimension_numbers<[1], [0], [0], [1], [0, 0, 1, 1], [], []>} : vector<8x576xbf16>, vector<576x256xbf16>, vector<8x256xf32> -> vector<8x256xf32>
    %c0_7 = arith.constant 0 : index
    %c1 = arith.constant 1 : index
    %c0_8 = arith.constant 0 : index
    %6 = vector.load %arg1[%c0_7, %c1, %c0_8] : memref<2x9x576xbf16, #tpu.memory_space<vmem>>, vector<1x8x576xbf16>
    %7 = vector.shape_cast %6 : vector<1x8x576xbf16> to vector<8x576xbf16>
    %c1_9 = arith.constant 1 : index
    %c0_10 = arith.constant 0 : index
    %c0_11 = arith.constant 0 : index
    %8 = vector.load %arg2[%c1_9, %c0_10, %c0_11] : memref<2x576x256xbf16, #tpu.memory_space<vmem>>, vector<1x576x256xbf16>
    %9 = vector.shape_cast %8 : vector<1x576x256xbf16> to vector<576x256xbf16>
    %cst_12 = arith.constant dense<0.000000e+00> : vector<8x256xf32>
    %10 = tpu.matmul %7, %9, %cst_12 {dimension_numbers = #tpu.dot_dimension_numbers<[1], [0], [0], [1], [0, 0, 1, 1], [], []>} : vector<8x576xbf16>, vector<576x256xbf16>, vector<8x256xf32> -> vector<8x256xf32>
    %11 = arith.addf %5, %10 : vector<8x256xf32>
    %12 = vector.broadcast %0 : vector<1x256xf32> to vector<8x256xf32>
    %13 = arith.addf %11, %12 : vector<8x256xf32>
    %cst_13 = arith.constant 0.000000e+00 : f32
    %14 = vector.broadcast %cst_13 : f32 to vector<8x256xf32>
    %15 = arith.maximumf %13, %14 : vector<8x256xf32>
    %16 = arith.truncf %15 : vector<8x256xf32> to vector<8x256xbf16>
    %c0_14 = arith.constant 0 : index
    %c0_15 = arith.constant 0 : index
    %c0_16 = arith.constant 0 : index
    %17 = vector.load %arg4[%c0_14, %c0_15, %c0_16] : memref<2x8x256xbf16, #tpu.memory_space<vmem>>, vector<1x8x256xbf16>
    %18 = vector.shape_cast %17 : vector<1x8x256xbf16> to vector<8x256xbf16>
    %19 = vector.shape_cast %16 : vector<8x256xbf16> to vector<1x8x256xbf16>
    tpu.vector_store %arg4[%c0_14, %c0_15, %c0_16], %19 {strides = array<i32>} : memref<2x8x256xbf16, #tpu.memory_space<vmem>>, vector<1x8x256xbf16>,
    %c1_17 = arith.constant 1 : index
    %c0_18 = arith.constant 0 : index
    %c0_19 = arith.constant 0 : index
    %20 = vector.load %arg1[%c1_17, %c0_18, %c0_19] : memref<2x9x576xbf16, #tpu.memory_space<vmem>>, vector<1x8x576xbf16>
    %21 = vector.shape_cast %20 : vector<1x8x576xbf16> to vector<8x576xbf16>
    %c0_20 = arith.constant 0 : index
    %c0_21 = arith.constant 0 : index
    %c0_22 = arith.constant 0 : index
    %22 = vector.load %arg2[%c0_20, %c0_21, %c0_22] : memref<2x576x256xbf16, #tpu.memory_space<vmem>>, vector<1x576x256xbf16>
    %23 = vector.shape_cast %22 : vector<1x576x256xbf16> to vector<576x256xbf16>
    %cst_23 = arith.constant dense<0.000000e+00> : vector<8x256xf32>
    %24 = tpu.matmul %21, %23, %cst_23 {dimension_numbers = #tpu.dot_dimension_numbers<[1], [0], [0], [1], [0, 0, 1, 1], [], []>} : vector<8x576xbf16>, vector<576x256xbf16>, vector<8x256xf32> -> vector<8x256xf32>
    %c1_24 = arith.constant 1 : index
    %c1_25 = arith.constant 1 : index
    %c0_26 = arith.constant 0 : index
    %25 = vector.load %arg1[%c1_24, %c1_25, %c0_26] : memref<2x9x576xbf16, #tpu.memory_space<vmem>>, vector<1x8x576xbf16>
    %26 = vector.shape_cast %25 : vector<1x8x576xbf16> to vector<8x576xbf16>
    %c1_27 = arith.constant 1 : index
    %c0_28 = arith.constant 0 : index
    %c0_29 = arith.constant 0 : index
    %27 = vector.load %arg2[%c1_27, %c0_28, %c0_29] : memref<2x576x256xbf16, #tpu.memory_space<vmem>>, vector<1x576x256xbf16>
    %28 = vector.shape_cast %27 : vector<1x576x256xbf16> to vector<576x256xbf16>
    %cst_30 = arith.constant dense<0.000000e+00> : vector<8x256xf32>
    %29 = tpu.matmul %26, %28, %cst_30 {dimension_numbers = #tpu.dot_dimension_numbers<[1], [0], [0], [1], [0, 0, 1, 1], [], []>} : vector<8x576xbf16>, vector<576x256xbf16>, vector<8x256xf32> -> vector<8x256xf32>
    %30 = arith.addf %24, %29 : vector<8x256xf32>
    %31 = vector.broadcast %0 : vector<1x256xf32> to vector<8x256xf32>
    %32 = arith.addf %30, %31 : vector<8x256xf32>
    %cst_31 = arith.constant 0.000000e+00 : f32
    %33 = vector.broadcast %cst_31 : f32 to vector<8x256xf32>
    %34 = arith.maximumf %32, %33 : vector<8x256xf32>
    %35 = arith.truncf %34 : vector<8x256xf32> to vector<8x256xbf16>
    %c1_32 = arith.constant 1 : index
    %c0_33 = arith.constant 0 : index
    %c0_34 = arith.constant 0 : index
    %36 = vector.load %arg4[%c1_32, %c0_33, %c0_34] : memref<2x8x256xbf16, #tpu.memory_space<vmem>>, vector<1x8x256xbf16>
    %37 = vector.shape_cast %36 : vector<1x8x256xbf16> to vector<8x256xbf16>
    %38 = vector.shape_cast %35 : vector<8x256xbf16> to vector<1x8x256xbf16>
    tpu.vector_store %arg4[%c1_32, %c0_33, %c0_34], %38 {strides = array<i32>} : memref<2x8x256xbf16, #tpu.memory_space<vmem>>, vector<1x8x256xbf16>,
    return
  }
  func.func @transform_0(%arg0: i32) -> (i32, i32, i32) {
    %c0_i32 = arith.constant 0 : i32
    %c0_i32_0 = arith.constant 0 : i32
    %c0_i32_1 = arith.constant 0 : i32
    return %arg0, %c0_i32, %c0_i32_0 : i32, i32, i32
  }
  func.func @transform_1(%arg0: i32) -> (i32, i32, i32) {
    %c0_i32 = arith.constant 0 : i32
    %c0_i32_0 = arith.constant 0 : i32
    %c0_i32_1 = arith.constant 0 : i32
    %c0_i32_2 = arith.constant 0 : i32
    return %c0_i32, %c0_i32_0, %c0_i32_1 : i32, i32, i32
  }
  func.func @transform_2(%arg0: i32) -> (i32, i32) {
    %c0_i32 = arith.constant 0 : i32
    %c0_i32_0 = arith.constant 0 : i32
    %c0_i32_1 = arith.constant 0 : i32
    return %c0_i32, %c0_i32_0 : i32, i32
  }
  func.func @transform_3(%arg0: i32) -> (i32, i32, i32) {
    %c0_i32 = arith.constant 0 : i32
    %c0_i32_0 = arith.constant 0 : i32
    %c0_i32_1 = arith.constant 0 : i32
    return %arg0, %c0_i32, %c0_i32_0 : i32, i32, i32
  }
}

module attributes {stable_mosaic.version = 11 : i64} {
  func.func @_conv_band_kernel(%arg0: i32, %arg1: memref<2x4x512xbf16, #tpu.memory_space<vmem>>, %arg2: memref<2x512x192xbf16, #tpu.memory_space<vmem>>, %arg3: memref<1x192xf32, #tpu.memory_space<vmem>>, %arg4: memref<2x3x192xbf16, #tpu.memory_space<vmem>>) attributes {dimension_semantics = [#tpu.dimension_semantics<parallel>], iteration_bounds = array<i64: 1>, scalar_prefetch = 0 : i64, scratch_operands = 0 : i64, tpu.core_type = #tpu.core_type<tc>, window_params = [{transform_indices = @transform_0, window_bounds = array<i64: 2, 4, 512>}, {pipeline_mode = #tpu.pipeline_mode<synchronous>, transform_indices = @transform_1, window_bounds = array<i64: 2, 512, 192>}, {pipeline_mode = #tpu.pipeline_mode<synchronous>, transform_indices = @transform_2, window_bounds = array<i64: 1, 192>}, {transform_indices = @transform_3, window_bounds = array<i64: 2, 3, 192>}]} {
    %c0 = arith.constant 0 : index
    %c0_0 = arith.constant 0 : index
    %0 = vector.load %arg3[%c0, %c0_0] : memref<1x192xf32, #tpu.memory_space<vmem>>, vector<1x192xf32>
    %c0_1 = arith.constant 0 : index
    %c0_2 = arith.constant 0 : index
    %c0_3 = arith.constant 0 : index
    %1 = vector.load %arg1[%c0_1, %c0_2, %c0_3] : memref<2x4x512xbf16, #tpu.memory_space<vmem>>, vector<1x3x512xbf16>
    %2 = vector.shape_cast %1 : vector<1x3x512xbf16> to vector<3x512xbf16>
    %c0_4 = arith.constant 0 : index
    %c0_5 = arith.constant 0 : index
    %c0_6 = arith.constant 0 : index
    %3 = vector.load %arg2[%c0_4, %c0_5, %c0_6] : memref<2x512x192xbf16, #tpu.memory_space<vmem>>, vector<1x512x192xbf16>
    %4 = vector.shape_cast %3 : vector<1x512x192xbf16> to vector<512x192xbf16>
    %cst = arith.constant dense<0.000000e+00> : vector<3x192xf32>
    %5 = tpu.matmul %2, %4, %cst {dimension_numbers = #tpu.dot_dimension_numbers<[1], [0], [0], [1], [0, 0, 1, 1], [], []>} : vector<3x512xbf16>, vector<512x192xbf16>, vector<3x192xf32> -> vector<3x192xf32>
    %c0_7 = arith.constant 0 : index
    %c1 = arith.constant 1 : index
    %c0_8 = arith.constant 0 : index
    %6 = vector.load %arg1[%c0_7, %c1, %c0_8] : memref<2x4x512xbf16, #tpu.memory_space<vmem>>, vector<1x3x512xbf16>
    %7 = vector.shape_cast %6 : vector<1x3x512xbf16> to vector<3x512xbf16>
    %c1_9 = arith.constant 1 : index
    %c0_10 = arith.constant 0 : index
    %c0_11 = arith.constant 0 : index
    %8 = vector.load %arg2[%c1_9, %c0_10, %c0_11] : memref<2x512x192xbf16, #tpu.memory_space<vmem>>, vector<1x512x192xbf16>
    %9 = vector.shape_cast %8 : vector<1x512x192xbf16> to vector<512x192xbf16>
    %cst_12 = arith.constant dense<0.000000e+00> : vector<3x192xf32>
    %10 = tpu.matmul %7, %9, %cst_12 {dimension_numbers = #tpu.dot_dimension_numbers<[1], [0], [0], [1], [0, 0, 1, 1], [], []>} : vector<3x512xbf16>, vector<512x192xbf16>, vector<3x192xf32> -> vector<3x192xf32>
    %11 = arith.addf %5, %10 : vector<3x192xf32>
    %12 = vector.broadcast %0 : vector<1x192xf32> to vector<3x192xf32>
    %13 = arith.addf %11, %12 : vector<3x192xf32>
    %cst_13 = arith.constant 0.000000e+00 : f32
    %14 = vector.broadcast %cst_13 : f32 to vector<3x192xf32>
    %15 = arith.maximumf %13, %14 : vector<3x192xf32>
    %16 = arith.truncf %15 : vector<3x192xf32> to vector<3x192xbf16>
    %c0_14 = arith.constant 0 : index
    %c0_15 = arith.constant 0 : index
    %c0_16 = arith.constant 0 : index
    %17 = vector.load %arg4[%c0_14, %c0_15, %c0_16] : memref<2x3x192xbf16, #tpu.memory_space<vmem>>, vector<1x3x192xbf16>
    %18 = vector.shape_cast %17 : vector<1x3x192xbf16> to vector<3x192xbf16>
    %19 = vector.shape_cast %16 : vector<3x192xbf16> to vector<1x3x192xbf16>
    tpu.vector_store %arg4[%c0_14, %c0_15, %c0_16], %19 {strides = array<i32>} : memref<2x3x192xbf16, #tpu.memory_space<vmem>>, vector<1x3x192xbf16>,
    %c1_17 = arith.constant 1 : index
    %c0_18 = arith.constant 0 : index
    %c0_19 = arith.constant 0 : index
    %20 = vector.load %arg1[%c1_17, %c0_18, %c0_19] : memref<2x4x512xbf16, #tpu.memory_space<vmem>>, vector<1x3x512xbf16>
    %21 = vector.shape_cast %20 : vector<1x3x512xbf16> to vector<3x512xbf16>
    %c0_20 = arith.constant 0 : index
    %c0_21 = arith.constant 0 : index
    %c0_22 = arith.constant 0 : index
    %22 = vector.load %arg2[%c0_20, %c0_21, %c0_22] : memref<2x512x192xbf16, #tpu.memory_space<vmem>>, vector<1x512x192xbf16>
    %23 = vector.shape_cast %22 : vector<1x512x192xbf16> to vector<512x192xbf16>
    %cst_23 = arith.constant dense<0.000000e+00> : vector<3x192xf32>
    %24 = tpu.matmul %21, %23, %cst_23 {dimension_numbers = #tpu.dot_dimension_numbers<[1], [0], [0], [1], [0, 0, 1, 1], [], []>} : vector<3x512xbf16>, vector<512x192xbf16>, vector<3x192xf32> -> vector<3x192xf32>
    %c1_24 = arith.constant 1 : index
    %c1_25 = arith.constant 1 : index
    %c0_26 = arith.constant 0 : index
    %25 = vector.load %arg1[%c1_24, %c1_25, %c0_26] : memref<2x4x512xbf16, #tpu.memory_space<vmem>>, vector<1x3x512xbf16>
    %26 = vector.shape_cast %25 : vector<1x3x512xbf16> to vector<3x512xbf16>
    %c1_27 = arith.constant 1 : index
    %c0_28 = arith.constant 0 : index
    %c0_29 = arith.constant 0 : index
    %27 = vector.load %arg2[%c1_27, %c0_28, %c0_29] : memref<2x512x192xbf16, #tpu.memory_space<vmem>>, vector<1x512x192xbf16>
    %28 = vector.shape_cast %27 : vector<1x512x192xbf16> to vector<512x192xbf16>
    %cst_30 = arith.constant dense<0.000000e+00> : vector<3x192xf32>
    %29 = tpu.matmul %26, %28, %cst_30 {dimension_numbers = #tpu.dot_dimension_numbers<[1], [0], [0], [1], [0, 0, 1, 1], [], []>} : vector<3x512xbf16>, vector<512x192xbf16>, vector<3x192xf32> -> vector<3x192xf32>
    %30 = arith.addf %24, %29 : vector<3x192xf32>
    %31 = vector.broadcast %0 : vector<1x192xf32> to vector<3x192xf32>
    %32 = arith.addf %30, %31 : vector<3x192xf32>
    %cst_31 = arith.constant 0.000000e+00 : f32
    %33 = vector.broadcast %cst_31 : f32 to vector<3x192xf32>
    %34 = arith.maximumf %32, %33 : vector<3x192xf32>
    %35 = arith.truncf %34 : vector<3x192xf32> to vector<3x192xbf16>
    %c1_32 = arith.constant 1 : index
    %c0_33 = arith.constant 0 : index
    %c0_34 = arith.constant 0 : index
    %36 = vector.load %arg4[%c1_32, %c0_33, %c0_34] : memref<2x3x192xbf16, #tpu.memory_space<vmem>>, vector<1x3x192xbf16>
    %37 = vector.shape_cast %36 : vector<1x3x192xbf16> to vector<3x192xbf16>
    %38 = vector.shape_cast %35 : vector<3x192xbf16> to vector<1x3x192xbf16>
    tpu.vector_store %arg4[%c1_32, %c0_33, %c0_34], %38 {strides = array<i32>} : memref<2x3x192xbf16, #tpu.memory_space<vmem>>, vector<1x3x192xbf16>,
    return
  }
  func.func @transform_0(%arg0: i32) -> (i32, i32, i32) {
    %c0_i32 = arith.constant 0 : i32
    %c0_i32_0 = arith.constant 0 : i32
    %c0_i32_1 = arith.constant 0 : i32
    return %arg0, %c0_i32, %c0_i32_0 : i32, i32, i32
  }
  func.func @transform_1(%arg0: i32) -> (i32, i32, i32) {
    %c0_i32 = arith.constant 0 : i32
    %c0_i32_0 = arith.constant 0 : i32
    %c0_i32_1 = arith.constant 0 : i32
    %c0_i32_2 = arith.constant 0 : i32
    return %c0_i32, %c0_i32_0, %c0_i32_1 : i32, i32, i32
  }
  func.func @transform_2(%arg0: i32) -> (i32, i32) {
    %c0_i32 = arith.constant 0 : i32
    %c0_i32_0 = arith.constant 0 : i32
    %c0_i32_1 = arith.constant 0 : i32
    return %c0_i32, %c0_i32_0 : i32, i32
  }
  func.func @transform_3(%arg0: i32) -> (i32, i32, i32) {
    %c0_i32 = arith.constant 0 : i32
    %c0_i32_0 = arith.constant 0 : i32
    %c0_i32_1 = arith.constant 0 : i32
    return %arg0, %c0_i32, %c0_i32_0 : i32, i32, i32
  }
}

module attributes {stable_mosaic.version = 11 : i64} {
  func.func @_conv_band_kernel(%arg0: i32, %arg1: memref<2x3x192xbf16, #tpu.memory_space<vmem>>, %arg2: memref<3x192x64xbf16, #tpu.memory_space<vmem>>, %arg3: memref<1x64xf32, #tpu.memory_space<vmem>>, %arg4: memref<2x1x64xbf16, #tpu.memory_space<vmem>>) attributes {dimension_semantics = [#tpu.dimension_semantics<parallel>], iteration_bounds = array<i64: 1>, scalar_prefetch = 0 : i64, scratch_operands = 0 : i64, tpu.core_type = #tpu.core_type<tc>, window_params = [{transform_indices = @transform_0, window_bounds = array<i64: 2, 3, 192>}, {pipeline_mode = #tpu.pipeline_mode<synchronous>, transform_indices = @transform_1, window_bounds = array<i64: 3, 192, 64>}, {pipeline_mode = #tpu.pipeline_mode<synchronous>, transform_indices = @transform_2, window_bounds = array<i64: 1, 64>}, {transform_indices = @transform_3, window_bounds = array<i64: 2, 1, 64>}]} {
    %c0 = arith.constant 0 : index
    %c0_0 = arith.constant 0 : index
    %0 = vector.load %arg3[%c0, %c0_0] : memref<1x64xf32, #tpu.memory_space<vmem>>, vector<1x64xf32>
    %c0_1 = arith.constant 0 : index
    %c0_2 = arith.constant 0 : index
    %c0_3 = arith.constant 0 : index
    %1 = vector.load %arg1[%c0_1, %c0_2, %c0_3] : memref<2x3x192xbf16, #tpu.memory_space<vmem>>, vector<1x1x192xbf16>
    %2 = vector.shape_cast %1 : vector<1x1x192xbf16> to vector<1x192xbf16>
    %c0_4 = arith.constant 0 : index
    %c0_5 = arith.constant 0 : index
    %c0_6 = arith.constant 0 : index
    %3 = vector.load %arg2[%c0_4, %c0_5, %c0_6] : memref<3x192x64xbf16, #tpu.memory_space<vmem>>, vector<1x192x64xbf16>
    %4 = vector.shape_cast %3 : vector<1x192x64xbf16> to vector<192x64xbf16>
    %cst = arith.constant dense<0.000000e+00> : vector<1x64xf32>
    %5 = tpu.matmul %2, %4, %cst {dimension_numbers = #tpu.dot_dimension_numbers<[1], [0], [0], [1], [0, 0, 1, 1], [], []>} : vector<1x192xbf16>, vector<192x64xbf16>, vector<1x64xf32> -> vector<1x64xf32>
    %c0_7 = arith.constant 0 : index
    %c1 = arith.constant 1 : index
    %c0_8 = arith.constant 0 : index
    %6 = vector.load %arg1[%c0_7, %c1, %c0_8] : memref<2x3x192xbf16, #tpu.memory_space<vmem>>, vector<1x1x192xbf16>
    %7 = vector.shape_cast %6 : vector<1x1x192xbf16> to vector<1x192xbf16>
    %c1_9 = arith.constant 1 : index
    %c0_10 = arith.constant 0 : index
    %c0_11 = arith.constant 0 : index
    %8 = vector.load %arg2[%c1_9, %c0_10, %c0_11] : memref<3x192x64xbf16, #tpu.memory_space<vmem>>, vector<1x192x64xbf16>
    %9 = vector.shape_cast %8 : vector<1x192x64xbf16> to vector<192x64xbf16>
    %cst_12 = arith.constant dense<0.000000e+00> : vector<1x64xf32>
    %10 = tpu.matmul %7, %9, %cst_12 {dimension_numbers = #tpu.dot_dimension_numbers<[1], [0], [0], [1], [0, 0, 1, 1], [], []>} : vector<1x192xbf16>, vector<192x64xbf16>, vector<1x64xf32> -> vector<1x64xf32>
    %11 = arith.addf %5, %10 : vector<1x64xf32>
    %c0_13 = arith.constant 0 : index
    %c2 = arith.constant 2 : index
    %c0_14 = arith.constant 0 : index
    %12 = vector.load %arg1[%c0_13, %c2, %c0_14] : memref<2x3x192xbf16, #tpu.memory_space<vmem>>, vector<1x1x192xbf16>
    %13 = vector.shape_cast %12 : vector<1x1x192xbf16> to vector<1x192xbf16>
    %c2_15 = arith.constant 2 : index
    %c0_16 = arith.constant 0 : index
    %c0_17 = arith.constant 0 : index
    %14 = vector.load %arg2[%c2_15, %c0_16, %c0_17] : memref<3x192x64xbf16, #tpu.memory_space<vmem>>, vector<1x192x64xbf16>
    %15 = vector.shape_cast %14 : vector<1x192x64xbf16> to vector<192x64xbf16>
    %cst_18 = arith.constant dense<0.000000e+00> : vector<1x64xf32>
    %16 = tpu.matmul %13, %15, %cst_18 {dimension_numbers = #tpu.dot_dimension_numbers<[1], [0], [0], [1], [0, 0, 1, 1], [], []>} : vector<1x192xbf16>, vector<192x64xbf16>, vector<1x64xf32> -> vector<1x64xf32>
    %17 = arith.addf %11, %16 : vector<1x64xf32>
    %18 = arith.addf %17, %0 : vector<1x64xf32>
    %cst_19 = arith.constant 0.000000e+00 : f32
    %19 = vector.broadcast %cst_19 : f32 to vector<1x64xf32>
    %20 = arith.maximumf %18, %19 : vector<1x64xf32>
    %21 = arith.truncf %20 : vector<1x64xf32> to vector<1x64xbf16>
    %c0_20 = arith.constant 0 : index
    %c0_21 = arith.constant 0 : index
    %c0_22 = arith.constant 0 : index
    %22 = vector.load %arg4[%c0_20, %c0_21, %c0_22] : memref<2x1x64xbf16, #tpu.memory_space<vmem>>, vector<1x1x64xbf16>
    %23 = vector.shape_cast %22 : vector<1x1x64xbf16> to vector<1x64xbf16>
    %24 = vector.shape_cast %21 : vector<1x64xbf16> to vector<1x1x64xbf16>
    tpu.vector_store %arg4[%c0_20, %c0_21, %c0_22], %24 {strides = array<i32>} : memref<2x1x64xbf16, #tpu.memory_space<vmem>>, vector<1x1x64xbf16>,
    %c1_23 = arith.constant 1 : index
    %c0_24 = arith.constant 0 : index
    %c0_25 = arith.constant 0 : index
    %25 = vector.load %arg1[%c1_23, %c0_24, %c0_25] : memref<2x3x192xbf16, #tpu.memory_space<vmem>>, vector<1x1x192xbf16>
    %26 = vector.shape_cast %25 : vector<1x1x192xbf16> to vector<1x192xbf16>
    %c0_26 = arith.constant 0 : index
    %c0_27 = arith.constant 0 : index
    %c0_28 = arith.constant 0 : index
    %27 = vector.load %arg2[%c0_26, %c0_27, %c0_28] : memref<3x192x64xbf16, #tpu.memory_space<vmem>>, vector<1x192x64xbf16>
    %28 = vector.shape_cast %27 : vector<1x192x64xbf16> to vector<192x64xbf16>
    %cst_29 = arith.constant dense<0.000000e+00> : vector<1x64xf32>
    %29 = tpu.matmul %26, %28, %cst_29 {dimension_numbers = #tpu.dot_dimension_numbers<[1], [0], [0], [1], [0, 0, 1, 1], [], []>} : vector<1x192xbf16>, vector<192x64xbf16>, vector<1x64xf32> -> vector<1x64xf32>
    %c1_30 = arith.constant 1 : index
    %c1_31 = arith.constant 1 : index
    %c0_32 = arith.constant 0 : index
    %30 = vector.load %arg1[%c1_30, %c1_31, %c0_32] : memref<2x3x192xbf16, #tpu.memory_space<vmem>>, vector<1x1x192xbf16>
    %31 = vector.shape_cast %30 : vector<1x1x192xbf16> to vector<1x192xbf16>
    %c1_33 = arith.constant 1 : index
    %c0_34 = arith.constant 0 : index
    %c0_35 = arith.constant 0 : index
    %32 = vector.load %arg2[%c1_33, %c0_34, %c0_35] : memref<3x192x64xbf16, #tpu.memory_space<vmem>>, vector<1x192x64xbf16>
    %33 = vector.shape_cast %32 : vector<1x192x64xbf16> to vector<192x64xbf16>
    %cst_36 = arith.constant dense<0.000000e+00> : vector<1x64xf32>
    %34 = tpu.matmul %31, %33, %cst_36 {dimension_numbers = #tpu.dot_dimension_numbers<[1], [0], [0], [1], [0, 0, 1, 1], [], []>} : vector<1x192xbf16>, vector<192x64xbf16>, vector<1x64xf32> -> vector<1x64xf32>
    %35 = arith.addf %29, %34 : vector<1x64xf32>
    %c1_37 = arith.constant 1 : index
    %c2_38 = arith.constant 2 : index
    %c0_39 = arith.constant 0 : index
    %36 = vector.load %arg1[%c1_37, %c2_38, %c0_39] : memref<2x3x192xbf16, #tpu.memory_space<vmem>>, vector<1x1x192xbf16>
    %37 = vector.shape_cast %36 : vector<1x1x192xbf16> to vector<1x192xbf16>
    %c2_40 = arith.constant 2 : index
    %c0_41 = arith.constant 0 : index
    %c0_42 = arith.constant 0 : index
    %38 = vector.load %arg2[%c2_40, %c0_41, %c0_42] : memref<3x192x64xbf16, #tpu.memory_space<vmem>>, vector<1x192x64xbf16>
    %39 = vector.shape_cast %38 : vector<1x192x64xbf16> to vector<192x64xbf16>
    %cst_43 = arith.constant dense<0.000000e+00> : vector<1x64xf32>
    %40 = tpu.matmul %37, %39, %cst_43 {dimension_numbers = #tpu.dot_dimension_numbers<[1], [0], [0], [1], [0, 0, 1, 1], [], []>} : vector<1x192xbf16>, vector<192x64xbf16>, vector<1x64xf32> -> vector<1x64xf32>
    %41 = arith.addf %35, %40 : vector<1x64xf32>
    %42 = arith.addf %41, %0 : vector<1x64xf32>
    %cst_44 = arith.constant 0.000000e+00 : f32
    %43 = vector.broadcast %cst_44 : f32 to vector<1x64xf32>
    %44 = arith.maximumf %42, %43 : vector<1x64xf32>
    %45 = arith.truncf %44 : vector<1x64xf32> to vector<1x64xbf16>
    %c1_45 = arith.constant 1 : index
    %c0_46 = arith.constant 0 : index
    %c0_47 = arith.constant 0 : index
    %46 = vector.load %arg4[%c1_45, %c0_46, %c0_47] : memref<2x1x64xbf16, #tpu.memory_space<vmem>>, vector<1x1x64xbf16>
    %47 = vector.shape_cast %46 : vector<1x1x64xbf16> to vector<1x64xbf16>
    %48 = vector.shape_cast %45 : vector<1x64xbf16> to vector<1x1x64xbf16>
    tpu.vector_store %arg4[%c1_45, %c0_46, %c0_47], %48 {strides = array<i32>} : memref<2x1x64xbf16, #tpu.memory_space<vmem>>, vector<1x1x64xbf16>,
    return
  }
  func.func @transform_0(%arg0: i32) -> (i32, i32, i32) {
    %c0_i32 = arith.constant 0 : i32
    %c0_i32_0 = arith.constant 0 : i32
    %c0_i32_1 = arith.constant 0 : i32
    return %arg0, %c0_i32, %c0_i32_0 : i32, i32, i32
  }
  func.func @transform_1(%arg0: i32) -> (i32, i32, i32) {
    %c0_i32 = arith.constant 0 : i32
    %c0_i32_0 = arith.constant 0 : i32
    %c0_i32_1 = arith.constant 0 : i32
    %c0_i32_2 = arith.constant 0 : i32
    return %c0_i32, %c0_i32_0, %c0_i32_1 : i32, i32, i32
  }
  func.func @transform_2(%arg0: i32) -> (i32, i32) {
    %c0_i32 = arith.constant 0 : i32
    %c0_i32_0 = arith.constant 0 : i32
    %c0_i32_1 = arith.constant 0 : i32
    return %c0_i32, %c0_i32_0 : i32, i32
  }
  func.func @transform_3(%arg0: i32) -> (i32, i32, i32) {
    %c0_i32 = arith.constant 0 : i32
    %c0_i32_0 = arith.constant 0 : i32
    %c0_i32_1 = arith.constant 0 : i32
    return %arg0, %c0_i32, %c0_i32_0 : i32, i32, i32
  }
}

module attributes {stable_mosaic.version = 11 : i64} {
  func.func @_fused_fc_kernel(%arg0: i32, %arg1: memref<16x64xbf16, #tpu.memory_space<vmem>>, %arg2: memref<64x512xbf16, #tpu.memory_space<vmem>>, %arg3: memref<1x512xf32, #tpu.memory_space<vmem>>, %arg4: memref<512x128xbf16, #tpu.memory_space<vmem>>, %arg5: memref<1x128xf32, #tpu.memory_space<vmem>>, %arg6: memref<16x128xf32, #tpu.memory_space<vmem>>) attributes {dimension_semantics = [#tpu.dimension_semantics<parallel>], iteration_bounds = array<i64: 1>, scalar_prefetch = 0 : i64, scratch_operands = 0 : i64, tpu.core_type = #tpu.core_type<tc>, window_params = [{transform_indices = @transform_0, window_bounds = array<i64: 16, 64>}, {pipeline_mode = #tpu.pipeline_mode<synchronous>, transform_indices = @transform_1, window_bounds = array<i64: 64, 512>}, {pipeline_mode = #tpu.pipeline_mode<synchronous>, transform_indices = @transform_2, window_bounds = array<i64: 1, 512>}, {pipeline_mode = #tpu.pipeline_mode<synchronous>, transform_indices = @transform_3, window_bounds = array<i64: 512, 128>}, {pipeline_mode = #tpu.pipeline_mode<synchronous>, transform_indices = @transform_4, window_bounds = array<i64: 1, 128>}, {transform_indices = @transform_5, window_bounds = array<i64: 16, 128>}]} {
    %c0 = arith.constant 0 : index
    %c0_0 = arith.constant 0 : index
    %0 = vector.load %arg1[%c0, %c0_0] : memref<16x64xbf16, #tpu.memory_space<vmem>>, vector<16x64xbf16>
    %c0_1 = arith.constant 0 : index
    %c0_2 = arith.constant 0 : index
    %1 = vector.load %arg2[%c0_1, %c0_2] : memref<64x512xbf16, #tpu.memory_space<vmem>>, vector<64x512xbf16>
    %cst = arith.constant dense<0.000000e+00> : vector<16x512xf32>
    %2 = tpu.matmul %0, %1, %cst {dimension_numbers = #tpu.dot_dimension_numbers<[1], [0], [0], [1], [0, 0, 1, 1], [], []>} : vector<16x64xbf16>, vector<64x512xbf16>, vector<16x512xf32> -> vector<16x512xf32>
    %c0_3 = arith.constant 0 : index
    %c0_4 = arith.constant 0 : index
    %3 = vector.load %arg3[%c0_3, %c0_4] : memref<1x512xf32, #tpu.memory_space<vmem>>, vector<1x512xf32>
    %4 = vector.broadcast %3 : vector<1x512xf32> to vector<16x512xf32>
    %5 = arith.addf %2, %4 : vector<16x512xf32>
    %cst_5 = arith.constant 0.000000e+00 : f32
    %6 = vector.broadcast %cst_5 : f32 to vector<16x512xf32>
    %7 = arith.maximumf %5, %6 : vector<16x512xf32>
    %8 = arith.truncf %7 : vector<16x512xf32> to vector<16x512xbf16>
    %c0_6 = arith.constant 0 : index
    %c0_7 = arith.constant 0 : index
    %9 = vector.load %arg4[%c0_6, %c0_7] : memref<512x128xbf16, #tpu.memory_space<vmem>>, vector<512x128xbf16>
    %cst_8 = arith.constant dense<0.000000e+00> : vector<16x128xf32>
    %10 = tpu.matmul %8, %9, %cst_8 {dimension_numbers = #tpu.dot_dimension_numbers<[1], [0], [0], [1], [0, 0, 1, 1], [], []>} : vector<16x512xbf16>, vector<512x128xbf16>, vector<16x128xf32> -> vector<16x128xf32>
    %c0_9 = arith.constant 0 : index
    %c0_10 = arith.constant 0 : index
    %11 = vector.load %arg5[%c0_9, %c0_10] : memref<1x128xf32, #tpu.memory_space<vmem>>, vector<1x128xf32>
    %12 = vector.broadcast %11 : vector<1x128xf32> to vector<16x128xf32>
    %13 = arith.addf %10, %12 : vector<16x128xf32>
    %c0_11 = arith.constant 0 : index
    %c0_12 = arith.constant 0 : index
    %14 = vector.load %arg6[%c0_11, %c0_12] : memref<16x128xf32, #tpu.memory_space<vmem>>, vector<16x128xf32>
    tpu.vector_store %arg6[%c0_11, %c0_12], %13 {strides = array<i32>} : memref<16x128xf32, #tpu.memory_space<vmem>>, vector<16x128xf32>,
    return
  }
  func.func @transform_0(%arg0: i32) -> (i32, i32) {
    %c0_i32 = arith.constant 0 : i32
    %c0_i32_0 = arith.constant 0 : i32
    return %arg0, %c0_i32 : i32, i32
  }
  func.func @transform_1(%arg0: i32) -> (i32, i32) {
    %c0_i32 = arith.constant 0 : i32
    %c0_i32_0 = arith.constant 0 : i32
    %c0_i32_1 = arith.constant 0 : i32
    return %c0_i32, %c0_i32_0 : i32, i32
  }
  func.func @transform_2(%arg0: i32) -> (i32, i32) {
    %c0_i32 = arith.constant 0 : i32
    %c0_i32_0 = arith.constant 0 : i32
    %c0_i32_1 = arith.constant 0 : i32
    return %c0_i32, %c0_i32_0 : i32, i32
  }
  func.func @transform_3(%arg0: i32) -> (i32, i32) {
    %c0_i32 = arith.constant 0 : i32
    %c0_i32_0 = arith.constant 0 : i32
    %c0_i32_1 = arith.constant 0 : i32
    return %c0_i32, %c0_i32_0 : i32, i32
  }
  func.func @transform_4(%arg0: i32) -> (i32, i32) {
    %c0_i32 = arith.constant 0 : i32
    %c0_i32_0 = arith.constant 0 : i32
    %c0_i32_1 = arith.constant 0 : i32
    return %c0_i32, %c0_i32_0 : i32, i32
  }
  func.func @transform_5(%arg0: i32) -> (i32, i32) {
    %c0_i32 = arith.constant 0 : i32
    %c0_i32_0 = arith.constant 0 : i32
    return %arg0, %c0_i32 : i32, i32
  }
}

</mosaic_0001>

<bundles_post_ra>
// kernel: _dqn_forward.4
= control target key start
LH: loop header
LB: loop body
LE: loop exit
PB: predicated region body
PF: predicated region fallthrough
CT: control target
= control target key end

     0   :  { %vm587_vm0 = vcmask 523264   ;;  %s4279_s1 = inlined_call_operand.vmem [shape: bf16[2,576,256], index: 1, kind: input, shape index: {}]   ;;  %s4280_s0 = inlined_call_operand.vmem [shape: bf16[2,9,576], index: 0, kind: input, shape index: {}]   ;;  %s4281_s2 = inlined_call_operand.vmem [shape: f32[1,256], index: 2, kind: input, shape index: {}]   ;;  %s4282_s3 = inlined_call_operand.vmem [shape: bf16[2,8,256], index: 3, kind: output, shape index: {}]  }
   0x1   :  { %v3171_v0 = vld [vmem:[%s4279_s1 + $0x244] ss:$8 sps:$4 sm:$0xff]   ;;  %v3182_v2 = vld [vmem:[%s4279_s1 + $0x240] ss:$8 sps:$4 sm:$0xff]   ;;  %v3193_v4 = vld [vmem:[%s4279_s1 + $0x254] ss:$8 sps:$4 sm:$0xff]  }
   0x2   :  { %v3176_v1 = vld [vmem:[%s4279_s1 + $0x344] ss:$8 sps:$4 sm:$0xff]   ;;  %591 = vmatprep.subr.bf16.mxu0 %v3171_v0  ;;  %v3187_v3 = vld [vmem:[%s4279_s1 + $0x340] ss:$8 sps:$4 sm:$0xff]   ;;  %v3200_v5 = vld [vmem:[%s4279_s1 + $0x354] ss:$8 sps:$4 sm:$0xff]  }
   0x3   :  { %632 = vmatprep.subr.bf16.mxu1 %v3176_v1  ;;  %592 = vmatpush1.bf16.msra.mxu0 %v3182_v2  ;;  %v3205_v6 = vld [vmem:[%s4279_s1 + $0x250] ss:$8 sps:$4 sm:$0xff]   ;;  %v3217_v8 = vld [vmem:[%s4279_s1 + $0x264] ss:$8 sps:$4 sm:$0xff]   ;;  %v3227_v10 = vld [vmem:[%s4279_s1 + $0x260] ss:$8 sps:$4 sm:$0xff]  }
   0x4   :  { %633 = vmatpush1.bf16.msra.mxu1 %v3187_v3  ;;  %593 = vmatprep.subr.bf16.mxu0 %v3193_v4  ;;  %v3211_v7 = vld [vmem:[%s4279_s1 + $0x350] ss:$8 sps:$4 sm:$0xff]   ;;  %v3222_v9 = vld [vmem:[%s4279_s1 + $0x364] ss:$8 sps:$4 sm:$0xff]   ;;  %v3232_v11 = vld [vmem:[%s4279_s1 + $0x360] ss:$8 sps:$4 sm:$0xff]  }
   0x5   :  { %634 = vmatprep.subr.bf16.mxu1 %v3200_v5  ;;  %v3239_v12 = vld [vmem:[%s4279_s1 + $0x274] ss:$8 sps:$4 sm:$0xff]   ;;  %v3251_v14 = vld [vmem:[%s4279_s1 + $0x270] ss:$8 sps:$4 sm:$0xff]   ;;  %v3263_v16 = vld [vmem:[%s4279_s1 + $0x284] ss:$8 sps:$4 sm:$0xff]  }
   0x6   :  { %v3246_v13 = vld [vmem:[%s4279_s1 + $0x374] ss:$8 sps:$4 sm:$0xff]   ;;  %v3258_v15 = vld [vmem:[%s4279_s1 + $0x370] ss:$8 sps:$4 sm:$0xff]   ;;  %v3270_v17 = vld [vmem:[%s4279_s1 + $0x384] ss:$8 sps:$4 sm:$0xff]  }
   0x7   :  { %594 = vmatpush1.bf16.msra.mxu0 %v3205_v6  ;;  %v3275_v18 = vld [vmem:[%s4279_s1 + $0x280] ss:$8 sps:$4 sm:$0xff]   ;;  %v3287_v20 = vld [vmem:[%s4279_s1 + $0x294] ss:$8 sps:$4 sm:$0xff]   ;;  %v3299_v22 = vld [vmem:[%s4279_s1 + $0x290] ss:$8 sps:$4 sm:$0xff]  }
   0x8   :  { %635 = vmatpush1.bf16.msra.mxu1 %v3211_v7  ;;  %595 = vmatprep.subr.bf16.mxu0 %v3217_v8  ;;  %v3280_v19 = vld [vmem:[%s4279_s1 + $0x380] ss:$8 sps:$4 sm:$0xff]   ;;  %v3294_v21 = vld [vmem:[%s4279_s1 + $0x394] ss:$8 sps:$4 sm:$0xff]   ;;  %v3306_v23 = vld [vmem:[%s4279_s1 + $0x390] ss:$8 sps:$4 sm:$0xff]  }
   0x9   :  { %636 = vmatprep.subr.bf16.mxu1 %v3222_v9  ;;  %v3311_v24 = vld [vmem:[%s4279_s1 + $0x2a4] ss:$8 sps:$4 sm:$0xff]   ;;  %v3323_v26 = vld [vmem:[%s4279_s1 + $0x2a0] ss:$8 sps:$4 sm:$0xff]   ;;  %v3335_v28 = vld [vmem:[%s4279_s1 + $0x2b4] ss:$8 sps:$4 sm:$0xff]  }
   0xa   :  { %v3318_v25 = vld [vmem:[%s4279_s1 + $0x3a4] ss:$8 sps:$4 sm:$0xff]   ;;  %v3328_v27 = vld [vmem:[%s4279_s1 + $0x3a0] ss:$8 sps:$4 sm:$0xff]   ;;  %v3342_v29 = vld [vmem:[%s4279_s1 + $0x3b4] ss:$8 sps:$4 sm:$0xff]  }
   0xb   :  { %596 = vmatpush1.bf16.msra.mxu0 %v3227_v10  ;;  %v3347_v30 = vld [vmem:[%s4279_s1 + $0x2b0] ss:$8 sps:$4 sm:$0xff]   ;;  %v3359_v32 = vld [vmem:[%s4279_s1 + $0x2c4] ss:$8 sps:$4 sm:$0xff]   ;;  %v3371_v34 = vld [vmem:[%s4279_s1 + $0x2c0] ss:$8 sps:$4 sm:$0xff]  }
   0xc   :  { %637 = vmatpush1.bf16.msra.mxu1 %v3232_v11  ;;  %597 = vmatprep.subr.bf16.mxu0 %v3239_v12  ;;  %v3354_v31 = vld [vmem:[%s4279_s1 + $0x3b0] ss:$8 sps:$4 sm:$0xff]   ;;  %v3366_v33 = vld [vmem:[%s4279_s1 + $0x3c4] ss:$8 sps:$4 sm:$0xff]   ;;  %v3376_v35 = vld [vmem:[%s4279_s1 + $0x3c0] ss:$8 sps:$4 sm:$0xff]  }
   0xd   :  { %638 = vmatprep.subr.bf16.mxu1 %v3246_v13  ;;  %v3383_v36 = vld [vmem:[%s4279_s1 + $0x2d4] ss:$8 sps:$4 sm:$0xff]   ;;  %v3395_v38 = vld [vmem:[%s4279_s1 + $0x2d0] ss:$8 sps:$4 sm:$0xff]   ;;  %v3407_v40 = vld [vmem:[%s4279_s1 + $0x2e4] ss:$8 sps:$4 sm:$0xff]  }
   0xe   :  { %v3390_v37 = vld [vmem:[%s4279_s1 + $0x3d4] ss:$8 sps:$4 sm:$0xff]   ;;  %v3402_v39 = vld [vmem:[%s4279_s1 + $0x3d0] ss:$8 sps:$4 sm:$0xff]   ;;  %v3414_v41 = vld [vmem:[%s4279_s1 + $0x3e4] ss:$8 sps:$4 sm:$0xff]  }
   0xf   :  { %598 = vmatpush1.bf16.msra.mxu0 %v3251_v14  ;;  %v3419_v42 = vld [vmem:[%s4279_s1 + $0x2e0] ss:$8 sps:$4 sm:$0xff]   ;;  %v3431_v44 = vld [vmem:[%s4279_s1 + $0x2f4] ss:$8 sps:$4 sm:$0xff]   ;;  %v3443_v46 = vld [vmem:[%s4279_s1 + $0x2f0] ss:$8 sps:$4 sm:$0xff]  }
  0x10   :  { %639 = vmatpush1.bf16.msra.mxu1 %v3258_v15  ;;  %599 = vmatprep.subr.bf16.mxu0 %v3263_v16  ;;  %v3424_v43 = vld [vmem:[%s4279_s1 + $0x3e0] ss:$8 sps:$4 sm:$0xff]   ;;  %v3438_v45 = vld [vmem:[%s4279_s1 + $0x3f4] ss:$8 sps:$4 sm:$0xff]   ;;  %4385 = vst [vmem:[#allocation3_spill] sm:$0xff] %v3443_v46 }
  0x11   :  { %640 = vmatprep.subr.bf16.mxu1 %v3270_v17  ;;  %4384 = vst [vmem:[#allocation2_spill] sm:$0xff] %v3438_v45  ;;  %v3448_v47 = vld [vmem:[%s4279_s1 + $0x3f0] ss:$8 sps:$4 sm:$0xff]   ;;  %v3453_v48 = vld [vmem:[%s4280_s0] sm:$0xff]  ;;  %v3461_v50 = vld [vmem:[%s4280_s0 + $0x8] sm:$0xff] }
  0x12   :  { %4386 = vst [vmem:[#allocation4_spill] sm:$0xff] %v3448_v47  ;;  %v91_v49 = vld [vmem:[%s4280_s0 + $0x14] sm:$0x11]  ;;  %v92_v51 = vld [vmem:[%s4280_s0 + $0x1c] sm:$0x11] }
  0x13   :  { %600 = vmatpush1.bf16.msra.mxu0 %v3275_v18  ;;  %v3471_v52 = vld [vmem:[%s4279_s1 + $0x304] ss:$8 sps:$4 sm:$0xff]   ;;  %v2516_v53 = vcombine.high %v3453_v48, %v91_v49  ;;  %v2518_v55 = vcombine.high %v3461_v50, %v92_v51  ;;  %v3485_v58 = vld [vmem:[%s4279_s1 + $0x300] ss:$8 sps:$4 sm:$0xff]   ;;  %v3497_v62 = vld [vmem:[%s4279_s1 + $0x314] ss:$8 sps:$4 sm:$0xff]  }
  0x14   :  { %641 = vmatpush1.bf16.msra.mxu1 %v3280_v19  ;;  %601 = vmatprep.subr.bf16.mxu0 %v3287_v20  ;;  %4387 = vst [vmem:[#allocation5_spill] sm:$0xff] %v3471_v52  ;;  %v3479_v54 = vld [vmem:[%s4279_s1 + $0x404] ss:$8 sps:$4 sm:$0xff]   ;;  %4389 = vst [vmem:[#allocation7_spill] sm:$0xff] %v3485_v58  ;;  %v3490_v59 = vld [vmem:[%s4279_s1 + $0x400] ss:$8 sps:$4 sm:$0xff]  }
  0x15   :  { %642 = vmatprep.subr.bf16.mxu1 %v3294_v21  ;;  %4388 = vst [vmem:[#allocation6_spill] sm:$0xff] %v3479_v54  ;;  %v196_v56 = vshrl.u32 %v2516_v53, 16  ;;  %v198_v57 = vshll.u32 %v2516_v53, 16  ;;  %4390 = vst [vmem:[#allocation8_spill] sm:$0xff] %v3490_v59  ;;  %v210_v60 = vshrl.u32 %v2518_v55, 16  ;;  %v212_v61 = vshll.u32 %v2518_v55, 16 }
  0x16   :  { %4391 = vst [vmem:[#allocation9_spill] sm:$0xff] %v3497_v62  ;;  %v3504_v53 = vld [vmem:[%s4279_s1 + $0x414] ss:$8 sps:$4 sm:$0xff]  }
  0x17   :  { %602 = vmatpush1.bf16.msra.mxu0 %v3299_v22  ;;  %v200_v63 = vrot.slane %v198_v57, 1  ;;  %4392 = vst [vmem:[#allocation10_spill] sm:$0xff] %v3504_v53  ;;  %v214_v55 = vrot.slane %v212_v61, 1  ;;  %v3514_v57 = vld [vmem:[%s4279_s1 + $0x410] ss:$8 sps:$4 sm:$0xff]  }
  0x18   :  { %643 = vmatpush1.bf16.msra.mxu1 %v3306_v23  ;;  %603 = vmatprep.subr.bf16.mxu0 %v3311_v24  ;;  %4394 = vst [vmem:[#allocation12_spill] sm:$0xff] %v3514_v57  ;;  %v3537_v61 = vld [vmem:[%s4279_s1 + $0x320] ss:$8 sps:$4 sm:$0xff]  }
  0x19   :  { %644 = vmatprep.subr.bf16.mxu1 %v3318_v25  ;;  %4397 = vst [vmem:[#allocation15_spill] sm:$0xff] %v3537_v61 }
  0x1b   :  { %604 = vmatpush1.bf16.msra.mxu0 %v3323_v26 }
  0x1c   :  { %645 = vmatpush1.bf16.msra.mxu1 %v3328_v27  ;;  %605 = vmatprep.subr.bf16.mxu0 %v3335_v28 }
  0x1d   :  { %646 = vmatprep.subr.bf16.mxu1 %v3342_v29 }
  0x1f   :  { %606 = vmatpush1.bf16.msra.mxu0 %v3347_v30 }
  0x20   :  { %647 = vmatpush1.bf16.msra.mxu1 %v3354_v31  ;;  %607 = vmatprep.subr.bf16.mxu0 %v3359_v32 }
  0x21   :  { %648 = vmatprep.subr.bf16.mxu1 %v3366_v33 }
  0x23   :  { %608 = vmatpush1.bf16.msra.mxu0 %v3371_v34 }
  0x24   :  { %649 = vmatpush1.bf16.msra.mxu1 %v3376_v35  ;;  %609 = vmatprep.subr.bf16.mxu0 %v3383_v36 }
  0x25   :  { %650 = vmatprep.subr.bf16.mxu1 %v3390_v37 }
  0x27   :  { %610 = vmatpush1.bf16.msra.mxu0 %v3395_v38 }
  0x28   :  { %651 = vmatpush1.bf16.msra.mxu1 %v3402_v39  ;;  %611 = vmatprep.subr.bf16.mxu0 %v3407_v40 }
  0x29   :  { %652 = vmatprep.subr.bf16.mxu1 %v3414_v41 }
  0x2b   :  { %612 = vmatpush1.bf16.msra.mxu0 %v3419_v42 }
  0x2c   :  { %653 = vmatpush1.bf16.msra.mxu1 %v3424_v43  ;;  %613 = vmatprep.subr.bf16.mxu0 %v3431_v44 }
  0x2d   :  { %654 = vmatprep.subr.bf16.mxu1 %v3438_v45  ;;  %v201_v45 = vor.u32 %v200_v63, %v196_v56  ;;  %v3523_v56 = vld [vmem:[%s4279_s1 + $0x324] ss:$8 sps:$4 sm:$0xff]   ;;  %v3542_v63 = vld [vmem:[%s4279_s1 + $0x420] ss:$8 sps:$4 sm:$0xff]  }
  0x2e   :  { %4395 = vst [vmem:[#allocation13_spill] sm:$0xff] %v3523_v56  ;;  %4398 = vst [vmem:[#allocation16_spill] sm:$0xff] %v3542_v63 }
  0x2f   :  { %614 = vmatpush1.bf16.msra.mxu0 %v3443_v46  ;;  %v215_v46 = vor.u32 %v214_v55, %v210_v60  ;;  %623 = vmatprep.mubr.bf16.mxu0 %v201_v45  ;;  %v3549_v45 = vld [vmem:[%s4279_s1 + $0x334] ss:$8 sps:$4 sm:$0xff]  }
  0x30   :  { %655 = vmatpush1.bf16.msra.mxu1 %v3448_v47  ;;  %615 = vmatprep.subr.bf16.mxu0 %v3471_v52  ;;  %v3509_v47 = vld [vmem:[%s4279_s1 + $0x310] ss:$8 sps:$4 sm:$0xff]   ;;  %v2515_v52 = vcombine.low %v3453_v48, %v91_v49  ;;  %v3530_v49 = vld [vmem:[%s4279_s1 + $0x424] ss:$8 sps:$4 sm:$0xff]   ;;  %4399 = vst [vmem:[#allocation17_spill] sm:$0xff] %v3549_v45 }
  0x31   :  { %656 = vmatprep.subr.bf16.mxu1 %v3479_v54  ;;  %4393 = vst [vmem:[#allocation11_spill] sm:$0xff] %v3509_v47  ;;  %v2517_v54 = vcombine.low %v3461_v50, %v92_v51  ;;  %4396 = vst [vmem:[#allocation14_spill] sm:$0xff] %v3530_v49  ;;  %664 = vmatprep.mubr.bf16.mxu1 %v215_v46  ;;  %v3554_v46 = vld [vmem:[%s4279_s1 + $0x434] ss:$8 sps:$4 sm:$0xff]  }
  0x32   :  { %v191_v51 = vshll.u32 %v2515_v52, 16  ;;  %4400 = vst [vmem:[#allocation18_spill] sm:$0xff] %v3554_v46  ;;  %v189_v55 = vshrl.u32 %v2515_v52, 16  ;;  %v3573_v52 = vld [vmem:[%s4279_s1 + $0x444] ss:$8 sps:$4 sm:$0xff]  }
  0x33   :  { %616 = vmatpush1.bf16.msra.mxu0 %v3485_v58  ;;  %v205_v60 = vshll.u32 %v2517_v54, 16  ;;  %4403 = vst [vmem:[#allocation21_spill] sm:$0xff] %v3573_v52 }
  0x34   :  { %657 = vmatpush1.bf16.msra.mxu1 %v3490_v59  ;;  %617 = vmatprep.subr.bf16.mxu0 %v3497_v62 }
  0x35   :  { %658 = vmatprep.subr.bf16.mxu1 %v3504_v53  ;;  %v207_v53 = vrot.slane %v205_v60, 1 }
  0x37   :  { %618 = vmatpush1.bf16.msra.mxu0 %v3509_v47  ;;  %v203_v47 = vshrl.u32 %v2517_v54, 16  ;;  %v3578_v54 = vld [vmem:[%s4279_s1 + $0x4] ss:$8 sps:$4 sm:$0xff]  }
  0x38   :  { %659 = vmatpush1.bf16.msra.mxu1 %v3514_v57  ;;  %619 = vmatprep.subr.bf16.mxu0 %v3523_v56  ;;  %v193_v57 = vrot.slane %v191_v51, 1  ;;  %v3566_v56 = vld [vmem:[%s4279_s1 + $0x430] ss:$8 sps:$4 sm:$0xff]   ;;  %4404 = vst [vmem:[#allocation22_spill] sm:$0xff] %v3578_v54  ;;  %v3583_v51 = vld [vmem:[%s4279_s1 + $0x440] ss:$8 sps:$4 sm:$0xff]  }
  0x39   :  { %660 = vmatprep.subr.bf16.mxu1 %v3530_v49  ;;  %v3561_v49 = vld [vmem:[%s4279_s1 + $0x330] ss:$8 sps:$4 sm:$0xff]   ;;  %4402 = vst [vmem:[#allocation20_spill] sm:$0xff] %v3566_v56  ;;  %4405 = vst [vmem:[#allocation23_spill] sm:$0xff] %v3583_v51 }
  0x3a   :  { %4401 = vst [vmem:[#allocation19_spill] sm:$0xff] %v3561_v49  ;;  %v194_v60 = vor.u32 %v193_v57, %v189_v55  ;;  %v2594_v57 = vcombine.high %v3453_v48, %v3453_v48 }
  0x3b   :  { %620 = vmatpush1.bf16.msra.mxu0 %v3537_v61  ;;  %v93_v61 = vld [vmem:[%s4280_s0 + $0x24] sm:$0x1] }
  0x3c   :  { %661 = vmatpush1.bf16.msra.mxu1 %v3542_v63  ;;  %621 = vmatprep.subr.bf16.mxu0 %v3549_v45  ;;  %v208_v63 = vor.u32 %v207_v53, %v203_v47  ;;  %v3595_v45 = vld [vmem:[%s4280_s0 + $0x10] sm:$0xf]  ;;  %v3605_v47 = vld [vmem:[%s4279_s1 + $0x454] ss:$8 sps:$4 sm:$0xff]  }
  0x3d   :  { %662 = vmatprep.subr.bf16.mxu1 %v3554_v46  ;;  %v3588_v46 = vld [vmem:[%s4279_s1] ss:$8 sps:$4 sm:$0xff]   ;;  %4407 = vst [vmem:[#allocation25_spill] sm:$0xff] %v3605_v47  ;;  %v3610_v53 = vld [vmem:[%s4279_s1 + $0x14] ss:$8 sps:$4 sm:$0xff]   ;;  %v2519_v55 = vcombine.low %v3595_v45, %v93_v61 }
  0x3e   :  { %4406 = vst [vmem:[#allocation24_spill] sm:$0xff] %v3588_v46  ;;  %4408 = vst [vmem:[#allocation26_spill] sm:$0xff] %v3610_v53  ;;  %v3632_v61 = vld [vmem:[%s4279_s1 + $0x464] ss:$8 sps:$4 sm:$0xff]  }
  0x3f   :  { %622 = vmatpush1.bf16.msra.mxu0 %v3561_v49  ;;  %4411 = vst [vmem:[#allocation29_spill] sm:$0xff] %v3632_v61 }
  0x40   :  { %663 = vmatpush1.bf16.msra.mxu1 %v3566_v56  ;;  %673 = vmatprep.subr.bf16.mxu0 %v3573_v52  ;;  %v3625_v52 = vld [vmem:[%s4279_s1 + $0x10] ss:$8 sps:$4 sm:$0xff]   ;;  %v4064_v56 = vld [vmem:[%s4279_s1 + $0x220] ss:$8 sps:$4 sm:$0xff]  }
  0x41   :  { %1086 = vmatprep.subr.bf16.mxu1 %v3578_v54  ;;  %v3620_v54 = vld [vmem:[%s4279_s1 + $0x450] ss:$8 sps:$4 sm:$0xff]   ;;  %4410 = vst [vmem:[#allocation28_spill] sm:$0xff] %v3625_v52  ;;  %4480 = vst [vmem:[#allocation97_spill] sm:$0xff] %v4064_v56 }
  0x42   :  { %624 = vmatmul.mubr.bf16.vlgmr.msra.gmra.mrb[0].mxu0 %v194_v60  ;;  %4409 = vst [vmem:[#allocation27_spill] sm:$0xff] %v3620_v54  ;;  %v4302_v60 = vmov 0  }
  0x43   :  { %665 = vmatmul.mubr.bf16.vlgmr.msra.gmra.mrb[0].mxu1 %v208_v63  ;;  %674 = vmatpush1.bf16.msra.mxu0 %v3583_v51  ;;  %v3637_v63 = vld [vmem:[%s4279_s1 + $0x24] ss:$8 sps:$4 sm:$0xff]  }
  0x44   :  { %1087 = vmatpush1.bf16.msra.mxu1 %v3588_v46  ;;  %675 = vmatprep.subr.bf16.mxu0 %v3605_v47  ;;  %4412 = vst [vmem:[#allocation30_spill] sm:$0xff] %v3637_v63  ;;  %v219_v46 = vshll.u32 %v2519_v55, 16  ;;  %v3650_v47 = vld [vmem:[%s4279_s1 + $0x20] ss:$8 sps:$4 sm:$0xff]  }
  0x45   :  { %1088 = vmatprep.subr.bf16.mxu1 %v3610_v53  ;;  %705 = vmatprep.mubr.bf16.mxu0 %v4302_v60  ;;  %v3645_v53 = vld [vmem:[%s4279_s1 + $0x460] ss:$8 sps:$4 sm:$0xff]   ;;  %4414 = vst [vmem:[#allocation32_spill] sm:$0xff] %v3650_v47  ;;  %v3662_v60 = vld [vmem:[%s4279_s1 + $0x34] ss:$8 sps:$4 sm:$0xff]  }
  0x46   :  { %1118 = vmatprep.mubr.bf16.mxu1 %v2594_v57  ;;  %4413 = vst [vmem:[#allocation31_spill] sm:$0xff] %v3645_v53  ;;  %v3657_v57 = vld [vmem:[%s4279_s1 + $0x474] ss:$8 sps:$4 sm:$0xff]   ;;  %4416 = vst [vmem:[#allocation34_spill] sm:$0xff] %v3662_v60 }
  0x47   :  { %676 = vmatpush1.bf16.msra.mxu0 %v3620_v54  ;;  %4415 = vst [vmem:[#allocation33_spill] sm:$0xff] %v3657_v57  ;;  %v221_v54 = vrot.slane %v219_v46, 1  ;;  %v3681_v46 = vld [vmem:[%s4279_s1 + $0x44] ss:$8 sps:$4 sm:$0xff]  }
  0x48   :  { %1089 = vmatpush1.bf16.msra.mxu1 %v3625_v52  ;;  %677 = vmatprep.subr.bf16.mxu0 %v3632_v61  ;;  %v217_v52 = vshrl.u32 %v2519_v55, 16  ;;  %v3674_v61 = vld [vmem:[%s4279_s1 + $0x30] ss:$8 sps:$4 sm:$0xff]   ;;  %4419 = vst [vmem:[#allocation37_spill] sm:$0xff] %v3681_v46  ;;  %v3686_v55 = vld [vmem:[%s4279_s1 + $0x104] ss:$8 sps:$4 sm:$0xff]  }
  0x49   :  { %1090 = vmatprep.subr.bf16.mxu1 %v3637_v63  ;;  %v3669_v63 = vld [vmem:[%s4279_s1 + $0x470] ss:$8 sps:$4 sm:$0xff]   ;;  %4418 = vst [vmem:[#allocation36_spill] sm:$0xff] %v3674_v61  ;;  %4420 = vst [vmem:[#allocation38_spill] sm:$0xff] %v3686_v55 }
  0x4a   :  { %4417 = vst [vmem:[#allocation35_spill] sm:$0xff] %v3669_v63 }
  0x4b   :  { %678 = vmatpush1.bf16.msra.mxu0 %v3645_v53  ;;  %v4478_v53 = vmov 0  }
  0x4c   :  { %1091 = vmatpush1.bf16.msra.mxu1 %v3650_v47  ;;  %679 = vmatprep.subr.bf16.mxu0 %v3657_v57  ;;  %v222_v47 = vor.u32 %v221_v54, %v217_v52  ;;  %v3698_v57 = vld [vmem:[%s4279_s1 + $0x100] ss:$8 sps:$4 sm:$0xff]   ;;  %v3705_v52 = vld [vmem:[%s4279_s1 + $0x54] ss:$8 sps:$4 sm:$0xff]  }
  0x4d   :  { %1092 = vmatprep.subr.bf16.mxu1 %v3662_v60  ;;  %v3693_v60 = vld [vmem:[%s4279_s1 + $0x40] ss:$8 sps:$4 sm:$0xff]   ;;  %4422 = vst [vmem:[#allocation40_spill] sm:$0xff] %v3698_v57  ;;  %4423 = vst [vmem:[#allocation41_spill] sm:$0xff] %v3705_v52  ;;  %v3710_v54 = vld [vmem:[%s4279_s1 + $0x114] ss:$8 sps:$4 sm:$0xff]  }
  0x4e   :  { %4421 = vst [vmem:[#allocation39_spill] sm:$0xff] %v3693_v60  ;;  %4424 = vst [vmem:[#allocation42_spill] sm:$0xff] %v3710_v54 }
  0x4f   :  { %680 = vmatpush1.bf16.msra.mxu0 %v3669_v63  ;;  %v4035_v63 = vld [vmem:[%s4279_s1 + $0x210] ss:$8 sps:$4 sm:$0xff]  }
  0x50   :  { %1093 = vmatpush1.bf16.msra.mxu1 %v3674_v61  ;;  %1127 = vmatprep.subr.bf16.mxu0 %v3686_v55  ;;  %v2596_v61 = vcombine.high %v3461_v50, %v3461_v50  ;;  %v3720_v55 = vld [vmem:[%s4279_s1 + $0x50] ss:$8 sps:$4 sm:$0xff]   ;;  %4475 = vst [vmem:[#allocation93_spill] sm:$0xff] %v4035_v63 }
  0x51   :  { %1094 = vmatprep.subr.bf16.mxu1 %v3681_v46  ;;  %4425 = vst [vmem:[#allocation43_spill] sm:$0xff] %v3720_v55  ;;  %v3725_v46 = vld [vmem:[%s4279_s1 + $0x110] ss:$8 sps:$4 sm:$0xff]  }
  0x52   :  { %2592 = vmatmul.mubr.msk.bf16.vlgmr.msra.gmra.mrb[4].mxu0 %vm587_vm0, %v222_v47  ;;  %4426 = vst [vmem:[#allocation44_spill] sm:$0xff] %v3725_v46  ;;  %v3732_v47 = vld [vmem:[%s4279_s1 + $0x64] ss:$8 sps:$4 sm:$0xff]  }
  0x53   :  { %1128 = vmatpush1.bf16.msra.mxu0 %v3698_v57  ;;  %4427 = vst [vmem:[#allocation45_spill] sm:$0xff] %v3732_v47  ;;  %v3737_v57 = vld [vmem:[%s4279_s1 + $0x124] ss:$8 sps:$4 sm:$0xff]   ;;  %1159 = vmatprep.mubr.bf16.mxu0 %v2596_v61  ;;  %v3756_v61 = vld [vmem:[%s4279_s1 + $0x74] ss:$8 sps:$4 sm:$0xff]  }
  0x54   :  { %1095 = vmatpush1.bf16.msra.mxu1 %v3693_v60  ;;  %1129 = vmatprep.subr.bf16.mxu0 %v3710_v54  ;;  %4428 = vst [vmem:[#allocation46_spill] sm:$0xff] %v3737_v57  ;;  %v3749_v54 = vld [vmem:[%s4279_s1 + $0x120] ss:$8 sps:$4 sm:$0xff]   ;;  %4431 = vst [vmem:[#allocation49_spill] sm:$0xff] %v3756_v61 }
  0x55   :  { %1096 = vmatprep.subr.bf16.mxu1 %v3705_v52  ;;  %v3744_v52 = vld [vmem:[%s4279_s1 + $0x60] ss:$8 sps:$4 sm:$0xff]   ;;  %4430 = vst [vmem:[#allocation48_spill] sm:$0xff] %v3749_v54 }
  0x56   :  { %4429 = vst [vmem:[#allocation47_spill] sm:$0xff] %v3744_v52  ;;  %v4023_v60 = vld [vmem:[%s4280_s0 + $0x44] sm:$0x11] }
  0x57   :  { %1130 = vmatpush1.bf16.msra.mxu0 %v3725_v46  ;;  %v3761_v46 = vld [vmem:[%s4279_s1 + $0x134] ss:$8 sps:$4 sm:$0xff]  }
  0x58   :  { %1097 = vmatpush1.bf16.msra.mxu1 %v3720_v55  ;;  %1131 = vmatprep.subr.bf16.mxu0 %v3737_v57  ;;  %4432 = vst [vmem:[#allocation50_spill] sm:$0xff] %v3761_v46  ;;  %v3773_v57 = vld [vmem:[%s4279_s1 + $0x130] ss:$8 sps:$4 sm:$0xff]   ;;  %v2593_v55 = vcombine.low %v3453_v48, %v3453_v48  ;;  %v3998_v48 = vld [vmem:[%s4279_s1 + $0x1d4] ss:$8 sps:$4 sm:$0xff]  }
  0x59   :  { %1098 = vmatprep.subr.bf16.mxu1 %v3732_v47  ;;  %v3768_v47 = vld [vmem:[%s4279_s1 + $0x70] ss:$8 sps:$4 sm:$0xff]   ;;  %4434 = vst [vmem:[#allocation52_spill] sm:$0xff] %v3773_v57  ;;  %4471 = vst [vmem:[#allocation89_spill] sm:$0xff] %v3998_v48 }
  0x5a   :  { %4433 = vst [vmem:[#allocation51_spill] sm:$0xff] %v3768_v47 }
  0x5b   :  { %1132 = vmatpush1.bf16.msra.mxu0 %v3749_v54  ;;  %v3785_v54 = vld [vmem:[%s4279_s1 + $0x144] ss:$8 sps:$4 sm:$0xff]  }
  0x5c   :  { %1099 = vmatpush1.bf16.msra.mxu1 %v3744_v52  ;;  %1133 = vmatprep.subr.bf16.mxu0 %v3761_v46  ;;  %v3780_v52 = vld [vmem:[%s4279_s1 + $0x84] ss:$8 sps:$4 sm:$0xff]   ;;  %4436 = vst [vmem:[#allocation54_spill] sm:$0xff] %v3785_v54  ;;  %v3797_v46 = vld [vmem:[%s4279_s1 + $0x140] ss:$8 sps:$4 sm:$0xff]  }
  0x5d   :  { %1100 = vmatprep.subr.bf16.mxu1 %v3756_v61  ;;  %4435 = vst [vmem:[#allocation53_spill] sm:$0xff] %v3780_v52  ;;  %v3792_v61 = vld [vmem:[%s4279_s1 + $0x80] ss:$8 sps:$4 sm:$0xff]   ;;  %4438 = vst [vmem:[#allocation56_spill] sm:$0xff] %v3797_v46 }
  0x5e   :  { %4437 = vst [vmem:[#allocation55_spill] sm:$0xff] %v3792_v61 }
  0x5f   :  { %1134 = vmatpush1.bf16.msra.mxu0 %v3773_v57  ;;  %v3809_v57 = vld [vmem:[%s4279_s1 + $0x154] ss:$8 sps:$4 sm:$0xff]  }
  0x60   :  { %1101 = vmatpush1.bf16.msra.mxu1 %v3768_v47  ;;  %1135 = vmatprep.subr.bf16.mxu0 %v3785_v54  ;;  %v3804_v47 = vld [vmem:[%s4279_s1 + $0x94] ss:$8 sps:$4 sm:$0xff]   ;;  %4440 = vst [vmem:[#allocation58_spill] sm:$0xff] %v3809_v57  ;;  %v3821_v54 = vld [vmem:[%s4279_s1 + $0x150] ss:$8 sps:$4 sm:$0xff]  }
  0x61   :  { %1102 = vmatprep.subr.bf16.mxu1 %v3780_v52  ;;  %4439 = vst [vmem:[#allocation57_spill] sm:$0xff] %v3804_v47  ;;  %v3816_v52 = vld [vmem:[%s4279_s1 + $0x90] ss:$8 sps:$4 sm:$0xff]   ;;  %4442 = vst [vmem:[#allocation60_spill] sm:$0xff] %v3821_v54 }
  0x62   :  { %4441 = vst [vmem:[#allocation59_spill] sm:$0xff] %v3816_v52 }
  0x63   :  { %1136 = vmatpush1.bf16.msra.mxu0 %v3797_v46  ;;  %v3833_v46 = vld [vmem:[%s4279_s1 + $0x164] ss:$8 sps:$4 sm:$0xff]  }
  0x64   :  { %1103 = vmatpush1.bf16.msra.mxu1 %v3792_v61  ;;  %1137 = vmatprep.subr.bf16.mxu0 %v3809_v57  ;;  %v3828_v61 = vld [vmem:[%s4279_s1 + $0xa4] ss:$8 sps:$4 sm:$0xff]   ;;  %4444 = vst [vmem:[#allocation62_spill] sm:$0xff] %v3833_v46  ;;  %v3845_v57 = vld [vmem:[%s4279_s1 + $0x160] ss:$8 sps:$4 sm:$0xff]  }
  0x65   :  { %1104 = vmatprep.subr.bf16.mxu1 %v3804_v47  ;;  %4443 = vst [vmem:[#allocation61_spill] sm:$0xff] %v3828_v61  ;;  %v3840_v47 = vld [vmem:[%s4279_s1 + $0xa0] ss:$8 sps:$4 sm:$0xff]   ;;  %4446 = vst [vmem:[#allocation64_spill] sm:$0xff] %v3845_v57 }
  0x66   :  { %4445 = vst [vmem:[#allocation63_spill] sm:$0xff] %v3840_v47 }
  0x67   :  { %1138 = vmatpush1.bf16.msra.mxu0 %v3821_v54  ;;  %v3857_v54 = vld [vmem:[%s4279_s1 + $0x174] ss:$8 sps:$4 sm:$0xff]  }
  0x68   :  { %1105 = vmatpush1.bf16.msra.mxu1 %v3816_v52  ;;  %1139 = vmatprep.subr.bf16.mxu0 %v3833_v46  ;;  %v3852_v52 = vld [vmem:[%s4279_s1 + $0xb4] ss:$8 sps:$4 sm:$0xff]   ;;  %4448 = vst [vmem:[#allocation66_spill] sm:$0xff] %v3857_v54  ;;  %v3869_v46 = vld [vmem:[%s4279_s1 + $0x170] ss:$8 sps:$4 sm:$0xff]  }
  0x69   :  { %1106 = vmatprep.subr.bf16.mxu1 %v3828_v61  ;;  %4447 = vst [vmem:[#allocation65_spill] sm:$0xff] %v3852_v52  ;;  %v3864_v61 = vld [vmem:[%s4279_s1 + $0xb0] ss:$8 sps:$4 sm:$0xff]   ;;  %4450 = vst [vmem:[#allocation68_spill] sm:$0xff] %v3869_v46 }
  0x6a   :  { %4449 = vst [vmem:[#allocation67_spill] sm:$0xff] %v3864_v61 }
  0x6b   :  { %1140 = vmatpush1.bf16.msra.mxu0 %v3845_v57  ;;  %v3881_v57 = vld [vmem:[%s4279_s1 + $0x184] ss:$8 sps:$4 sm:$0xff]  }
  0x6c   :  { %1107 = vmatpush1.bf16.msra.mxu1 %v3840_v47  ;;  %1141 = vmatprep.subr.bf16.mxu0 %v3857_v54  ;;  %v3876_v47 = vld [vmem:[%s4279_s1 + $0xc4] ss:$8 sps:$4 sm:$0xff]   ;;  %4452 = vst [vmem:[#allocation70_spill] sm:$0xff] %v3881_v57  ;;  %v3893_v54 = vld [vmem:[%s4279_s1 + $0x180] ss:$8 sps:$4 sm:$0xff]  }
  0x6d   :  { %1108 = vmatprep.subr.bf16.mxu1 %v3852_v52  ;;  %4451 = vst [vmem:[#allocation69_spill] sm:$0xff] %v3876_v47  ;;  %v3888_v52 = vld [vmem:[%s4279_s1 + $0xc0] ss:$8 sps:$4 sm:$0xff]   ;;  %4454 = vst [vmem:[#allocation72_spill] sm:$0xff] %v3893_v54 }
  0x6e   :  { %4453 = vst [vmem:[#allocation71_spill] sm:$0xff] %v3888_v52 }
  0x6f   :  { %1142 = vmatpush1.bf16.msra.mxu0 %v3869_v46  ;;  %v3905_v46 = vld [vmem:[%s4279_s1 + $0x194] ss:$8 sps:$4 sm:$0xff]  }
  0x70   :  { %1109 = vmatpush1.bf16.msra.mxu1 %v3864_v61  ;;  %1143 = vmatprep.subr.bf16.mxu0 %v3881_v57  ;;  %v3900_v61 = vld [vmem:[%s4279_s1 + $0xd4] ss:$8 sps:$4 sm:$0xff]   ;;  %4456 = vst [vmem:[#allocation74_spill] sm:$0xff] %v3905_v46  ;;  %v3917_v57 = vld [vmem:[%s4279_s1 + $0x190] ss:$8 sps:$4 sm:$0xff]  }
  0x71   :  { %1110 = vmatprep.subr.bf16.mxu1 %v3876_v47  ;;  %4455 = vst [vmem:[#allocation73_spill] sm:$0xff] %v3900_v61  ;;  %v3912_v47 = vld [vmem:[%s4279_s1 + $0xd0] ss:$8 sps:$4 sm:$0xff]   ;;  %4458 = vst [vmem:[#allocation76_spill] sm:$0xff] %v3917_v57 }
  0x72   :  { %4457 = vst [vmem:[#allocation75_spill] sm:$0xff] %v3912_v47 }
  0x73   :  { %1144 = vmatpush1.bf16.msra.mxu0 %v3893_v54  ;;  %v3929_v54 = vld [vmem:[%s4279_s1 + $0x1a4] ss:$8 sps:$4 sm:$0xff]  }
  0x74   :  { %1111 = vmatpush1.bf16.msra.mxu1 %v3888_v52  ;;  %1145 = vmatprep.subr.bf16.mxu0 %v3905_v46  ;;  %v3924_v52 = vld [vmem:[%s4279_s1 + $0xe4] ss:$8 sps:$4 sm:$0xff]   ;;  %4460 = vst [vmem:[#allocation78_spill] sm:$0xff] %v3929_v54  ;;  %v3941_v46 = vld [vmem:[%s4279_s1 + $0x1a0] ss:$8 sps:$4 sm:$0xff]  }
  0x75   :  { %1112 = vmatprep.subr.bf16.mxu1 %v3900_v61  ;;  %4459 = vst [vmem:[#allocation77_spill] sm:$0xff] %v3924_v52  ;;  %v3936_v61 = vld [vmem:[%s4279_s1 + $0xe0] ss:$8 sps:$4 sm:$0xff]   ;;  %4462 = vst [vmem:[#allocation80_spill] sm:$0xff] %v3941_v46 }
  0x76   :  { %4461 = vst [vmem:[#allocation79_spill] sm:$0xff] %v3936_v61 }
  0x77   :  { %1146 = vmatpush1.bf16.msra.mxu0 %v3917_v57  ;;  %v3953_v57 = vld [vmem:[%s4279_s1 + $0x1b4] ss:$8 sps:$4 sm:$0xff]  }
  0x78   :  { %1113 = vmatpush1.bf16.msra.mxu1 %v3912_v47  ;;  %1147 = vmatprep.subr.bf16.mxu0 %v3929_v54  ;;  %v3948_v47 = vld [vmem:[%s4279_s1 + $0xf4] ss:$8 sps:$4 sm:$0xff]   ;;  %4464 = vst [vmem:[#allocation82_spill] sm:$0xff] %v3953_v57  ;;  %v3965_v54 = vld [vmem:[%s4279_s1 + $0x1b0] ss:$8 sps:$4 sm:$0xff]  }
  0x79   :  { %1114 = vmatprep.subr.bf16.mxu1 %v3924_v52  ;;  %4463 = vst [vmem:[#allocation81_spill] sm:$0xff] %v3948_v47  ;;  %v3960_v52 = vld [vmem:[%s4279_s1 + $0xf0] ss:$8 sps:$4 sm:$0xff]   ;;  %4466 = vst [vmem:[#allocation84_spill] sm:$0xff] %v3965_v54 }
  0x7a   :  { %4465 = vst [vmem:[#allocation83_spill] sm:$0xff] %v3960_v52 }
  0x7b   :  { %1148 = vmatpush1.bf16.msra.mxu0 %v3941_v46  ;;  %v3977_v46 = vld [vmem:[%s4279_s1 + $0x204] ss:$8 sps:$4 sm:$0xff]  }
  0x7c   :  { %1115 = vmatpush1.bf16.msra.mxu1 %v3936_v61  ;;  %1149 = vmatprep.subr.bf16.mxu0 %v3953_v57  ;;  %v3972_v61 = vld [vmem:[%s4279_s1 + $0x1c4] ss:$8 sps:$4 sm:$0xff]   ;;  %4468 = vst [vmem:[#allocation86_spill] sm:$0xff] %v3977_v46  ;;  %v3986_v57 = vld [vmem:[%s4279_s1 + $0x1c0] ss:$8 sps:$4 sm:$0xff]  }
  0x7d   :  { %1116 = vmatprep.subr.bf16.mxu1 %v3948_v47  ;;  %4467 = vst [vmem:[#allocation85_spill] sm:$0xff] %v3972_v61  ;;  %4469 = vst [vmem:[#allocation87_spill] sm:$0xff] %v3986_v57  ;;  %v3991_v47 = vld [vmem:[%s4279_s1 + $0x200] ss:$8 sps:$4 sm:$0xff]  }
  0x7e   :  { %4470 = vst [vmem:[#allocation88_spill] sm:$0xff] %v3991_v47 }
  0x7f   :  { %1150 = vmatpush1.bf16.msra.mxu0 %v3965_v54  ;;  %v4003_v54 = vld [vmem:[%s4279_s1 + $0x214] ss:$8 sps:$4 sm:$0xff]  }
  0x80   :  { %1117 = vmatpush1.bf16.msra.mxu1 %v3960_v52  ;;  %1151 = vmatprep.subr.bf16.mxu0 %v3972_v61  ;;  %4472 = vst [vmem:[#allocation90_spill] sm:$0xff] %v4003_v54  ;;  %v4008_v52 = vld [vmem:[%s4280_s0 + $0x28] sm:$0xff]  ;;  %v4018_v61 = vld [vmem:[%s4280_s0 + $0x30] sm:$0xff] }
  0x81   :  { %1168 = vmatprep.subr.bf16.mxu1 %v3977_v46  ;;  %v4013_v46 = vld [vmem:[%s4280_s0 + $0x3c] sm:$0x11]  ;;  %4473 = vst [vmem:[#allocation91_spill] sm:$0xff] %v4018_v61 }
  0x82   :  { %v2751_v51 = vcombine.high %v4008_v52, %v4013_v46 }
  0x83   :  { %1119 = vmatmul.mubr.bf16.vlgmr.msra.gmra.mrb[4].mxu1 %v2593_v55  ;;  %1152 = vmatpush1.bf16.msra.mxu0 %v3986_v57  ;;  %v4030_v55 = vld [vmem:[%s4279_s1 + $0x1d0] ss:$8 sps:$4 sm:$0xff]   ;;  %v4042_v57 = vld [vmem:[%s4279_s1 + $0x1e4] ss:$8 sps:$4 sm:$0xff]  }
  0x84   :  { %1169 = vmatpush1.bf16.msra.mxu1 %v3991_v47  ;;  %4474 = vst [vmem:[#allocation92_spill] sm:$0xff] %v4030_v55  ;;  %1153 = vmatprep.subr.bf16.mxu0 %v3998_v48  ;;  %4476 = vst [vmem:[#allocation94_spill] sm:$0xff] %v4042_v57  ;;  %v4047_v47 = vld [vmem:[%s4279_s1 + $0x224] ss:$8 sps:$4 sm:$0xff]   ;;  %v2753_v48 = vcombine.high %v4018_v61, %v4023_v60  ;;  %v1413_v62 = vshrl.u32 %v2751_v51, 16  ;;  %v2597_v61 = vcombine.low %v3595_v45, %v3595_v45 }
  0x85   :  { %1170 = vmatprep.subr.bf16.mxu1 %v4003_v54  ;;  %4477 = vst [vmem:[#allocation95_spill] sm:$0xff] %v4047_v47  ;;  %1200 = vmatprep.mubr.bf16.mxu1 %v4478_v53  ;;  %v4059_v54 = vld [vmem:[%s4279_s1 + $0x1e0] ss:$8 sps:$4 sm:$0xff]   ;;  %v1415_v53 = vshll.u32 %v2751_v51, 16 }
  0x86   :  { %4479 = vst [vmem:[#allocation96_spill] sm:$0xff] %v4059_v54  ;;  %v1429_v49 = vshll.u32 %v2753_v48, 16  ;;  %v1427_v58 = vshrl.u32 %v2753_v48, 16  ;;  %v4517_v45 = vld [vmem:[#allocation34_spill] sm:$0xff]  ;;  %v4523_v48 = vld [vmem:[#allocation40_spill] sm:$0xff] }
  0x87   :  { %1154 = vmatpush1.bf16.msra.mxu0 %v4030_v55  ;;  %v4071_v55 = vld [vmem:[%s4279_s1 + $0x1f4] ss:$8 sps:$4 sm:$0xff]   ;;  %v1417_v59 = vrot.slane %v1415_v53, 1  ;;  %v4518_v53 = vld [vmem:[#allocation35_spill] sm:$0xff] }
  0x88   :  { %1171 = vmatpush1.bf16.msra.mxu1 %v4035_v63  ;;  %1155 = vmatprep.subr.bf16.mxu0 %v4042_v57  ;;  %4481 = vst [vmem:[#allocation98_spill] sm:$0xff] %v4071_v55  ;;  %v4076_v63 = vld [vmem:[%s4279_s1 + $0x234] ss:$8 sps:$4 sm:$0xff]   ;;  %v4088_v57 = vld [vmem:[%s4279_s1 + $0x230] ss:$8 sps:$4 sm:$0xff]  }
  0x89   :  { %1172 = vmatprep.subr.bf16.mxu1 %v4047_v47  ;;  %4482 = vst [vmem:[#allocation99_spill] sm:$0xff] %v4076_v63  ;;  %v4083_v47 = vld [vmem:[%s4279_s1 + $0x1f0] ss:$8 sps:$4 sm:$0xff]  }
  0x8b   :  { %1156 = vmatpush1.bf16.msra.mxu0 %v4059_v54  ;;  %v1431_v54 = vrot.slane %v1429_v49, 1  ;;  %v4516_v49 = vld [vmem:[#allocation33_spill] sm:$0xff] }
  0x8c   :  { %1173 = vmatpush1.bf16.msra.mxu1 %v4064_v56  ;;  %1157 = vmatprep.subr.bf16.mxu0 %v4071_v55  ;;  %v2595_v56 = vcombine.low %v3461_v50, %v3461_v50  ;;  %v1418_v55 = vor.u32 %v1417_v59, %v1413_v62  ;;  %v4513_v50 = vld [vmem:[#allocation30_spill] sm:$0xff]  ;;  %v4514_v62 = vld [vmem:[#allocation31_spill] sm:$0xff] }
  0x8d   :  { %1174 = vmatprep.subr.bf16.mxu1 %v4076_v63  ;;  %v1432_v63 = vor.u32 %v1431_v54, %v1427_v58 }
  0x8f   :  { %1158 = vmatpush1.bf16.msra.mxu0 %v4083_v47 }
  0x90   :  { %1175 = vmatpush1.bf16.msra.mxu1 %v4088_v57  ;;  %1807 = vmatprep.subr.bf16.mxu0 %v3171_v0  ;;  %v4483_v0 = vld [vmem:[#allocation2_spill] sm:$0xff] }
  0x91   :  { %1848 = vmatprep.subr.bf16.mxu1 %v3176_v1  ;;  %v4484_v1 = vld [vmem:[#allocation3_spill] sm:$0xff] }
  0x92   :  { %1160 = vmatmul.mubr.bf16.vlgmr.msra.gmra.mrb[8].mxu0 %v2595_v56  ;;  %v4515_v56 = vld [vmem:[#allocation32_spill] sm:$0xff] }
  0x93   :  { %2670 = vmatmul.mubr.msk.bf16.vlgmr.msra.gmra.mrb[8].mxu1 %vm587_vm0, %v2597_v61  ;;  %1808 = vmatpush1.bf16.msra.mxu0 %v3182_v2  ;;  %v4485_v2 = vld [vmem:[#allocation4_spill] sm:$0xff]  ;;  %v4522_v61 = vld [vmem:[#allocation39_spill] sm:$0xff] }
  0x94   :  { %1849 = vmatpush1.bf16.msra.mxu1 %v3187_v3  ;;  %1809 = vmatprep.subr.bf16.mxu0 %v3193_v4  ;;  %v4486_v3 = vld [vmem:[#allocation5_spill] sm:$0xff]  ;;  %v4487_v4 = vld [vmem:[#allocation6_spill] sm:$0xff] }
  0x95   :  { %1850 = vmatprep.subr.bf16.mxu1 %v3200_v5  ;;  %1839 = vmatprep.mubr.bf16.mxu0 %v1418_v55  ;;  %v2750_v5 = vcombine.low %v4008_v52, %v4013_v46  ;;  %v4521_v46 = vld [vmem:[#allocation38_spill] sm:$0xff]  ;;  %v4524_v55 = vld [vmem:[#allocation41_spill] sm:$0xff] }
  0x96   :  { %1880 = vmatprep.mubr.bf16.mxu1 %v1432_v63  ;;  %v4519_v63 = vld [vmem:[#allocation36_spill] sm:$0xff] }
  0x97   :  { %1810 = vmatpush1.bf16.msra.mxu0 %v3205_v6  ;;  %v4488_v6 = vld [vmem:[#allocation91_spill] sm:$0xff] }
  0x98   :  { %1851 = vmatpush1.bf16.msra.mxu1 %v3211_v7  ;;  %1811 = vmatprep.subr.bf16.mxu0 %v3217_v8  ;;  %v2752_v7 = vcombine.low %v4488_v6, %v4023_v60  ;;  %v4489_v8 = vld [vmem:[#allocation7_spill] sm:$0xff]  ;;  %v4520_v60 = vld [vmem:[#allocation37_spill] sm:$0xff]  ;;  %v2831_v54 = vcombine.high %v4488_v6, %v4488_v6 }
  0x99   :  { %1852 = vmatprep.subr.bf16.mxu1 %v3222_v9  ;;  %v4490_v9 = vld [vmem:[#allocation8_spill] sm:$0xff] }
  0x9b   :  { %1812 = vmatpush1.bf16.msra.mxu0 %v3227_v10  ;;  %v4491_v10 = vld [vmem:[#allocation9_spill] sm:$0xff] }
  0x9c   :  { %1853 = vmatpush1.bf16.msra.mxu1 %v3232_v11  ;;  %1813 = vmatprep.subr.bf16.mxu0 %v3239_v12  ;;  %v4492_v11 = vld [vmem:[#allocation10_spill] sm:$0xff]  ;;  %v1408_v12 = vshll.u32 %v2750_v5, 16 }
  0x9d   :  { %1854 = vmatprep.subr.bf16.mxu1 %v3246_v13  ;;  %v1422_v13 = vshll.u32 %v2752_v7, 16 }
  0x9f   :  { %1814 = vmatpush1.bf16.msra.mxu0 %v3251_v14  ;;  %v4493_v14 = vld [vmem:[#allocation11_spill] sm:$0xff] }
  0xa0   :  { %1855 = vmatpush1.bf16.msra.mxu1 %v3258_v15  ;;  %1815 = vmatprep.subr.bf16.mxu0 %v3263_v16  ;;  %v4494_v15 = vld [vmem:[#allocation12_spill] sm:$0xff]  ;;  %v4495_v16 = vld [vmem:[#allocation13_spill] sm:$0xff] }
  0xa1   :  { %1856 = vmatprep.subr.bf16.mxu1 %v3270_v17  ;;  %v4496_v17 = vld [vmem:[#allocation14_spill] sm:$0xff] }
  0xa3   :  { %1816 = vmatpush1.bf16.msra.mxu0 %v3275_v18  ;;  %v1406_v18 = vshrl.u32 %v2750_v5, 16  ;;  %v4530_v5 = vld [vmem:[#allocation47_spill] sm:$0xff] }
  0xa4   :  { %1857 = vmatpush1.bf16.msra.mxu1 %v3280_v19  ;;  %1817 = vmatprep.subr.bf16.mxu0 %v3287_v20  ;;  %v1410_v19 = vrot.slane %v1408_v12, 1  ;;  %v1420_v20 = vshrl.u32 %v2752_v7, 16  ;;  %v4531_v7 = vld [vmem:[#allocation48_spill] sm:$0xff]  ;;  %v4536_v12 = vld [vmem:[#allocation53_spill] sm:$0xff] }
  0xa5   :  { %1858 = vmatprep.subr.bf16.mxu1 %v3294_v21  ;;  %v1424_v21 = vrot.slane %v1422_v13, 1  ;;  %v4537_v13 = vld [vmem:[#allocation54_spill] sm:$0xff] }
  0xa7   :  { %1818 = vmatpush1.bf16.msra.mxu0 %v3299_v22  ;;  %v4497_v22 = vld [vmem:[#allocation15_spill] sm:$0xff] }
  0xa8   :  { %1859 = vmatpush1.bf16.msra.mxu1 %v3306_v23  ;;  %1819 = vmatprep.subr.bf16.mxu0 %v3311_v24  ;;  %v4498_v23 = vld [vmem:[#allocation16_spill] sm:$0xff]  ;;  %v4499_v24 = vld [vmem:[#allocation17_spill] sm:$0xff] }
  0xa9   :  { %1860 = vmatprep.subr.bf16.mxu1 %v3318_v25  ;;  %v4500_v25 = vld [vmem:[#allocation18_spill] sm:$0xff] }
  0xab   :  { %1820 = vmatpush1.bf16.msra.mxu0 %v3323_v26  ;;  %v1411_v26 = vor.u32 %v1410_v19, %v1406_v18  ;;  %v4542_v18 = vld [vmem:[#allocation59_spill] sm:$0xff]  ;;  %v4543_v19 = vld [vmem:[#allocation60_spill] sm:$0xff] }
  0xac   :  { %1861 = vmatpush1.bf16.msra.mxu1 %v3328_v27  ;;  %1821 = vmatprep.subr.bf16.mxu0 %v3335_v28  ;;  %v1425_v27 = vor.u32 %v1424_v21, %v1420_v20  ;;  %v4501_v28 = vld [vmem:[#allocation19_spill] sm:$0xff]  ;;  %v4544_v20 = vld [vmem:[#allocation61_spill] sm:$0xff]  ;;  %v4545_v21 = vld [vmem:[#allocation62_spill] sm:$0xff] }
  0xad   :  { %1862 = vmatprep.subr.bf16.mxu1 %v3342_v29  ;;  %v4502_v29 = vld [vmem:[#allocation20_spill] sm:$0xff] }
  0xaf   :  { %1822 = vmatpush1.bf16.msra.mxu0 %v3347_v30  ;;  %v4170_v30 = vld [vmem:[%s4280_s0 + $0x38] sm:$0xf] }
  0xb0   :  { %1863 = vmatpush1.bf16.msra.mxu1 %v3354_v31  ;;  %1823 = vmatprep.subr.bf16.mxu0 %v3359_v32  ;;  %v2677_v31 = vld [vmem:[%s4280_s0 + $0x4c] sm:$0x1]  ;;  %v4503_v32 = vld [vmem:[#allocation21_spill] sm:$0xff] }
  0xb1   :  { %1864 = vmatprep.subr.bf16.mxu1 %v3366_v33  ;;  %v4504_v33 = vld [vmem:[#allocation22_spill] sm:$0xff] }
  0xb3   :  { %1824 = vmatpush1.bf16.msra.mxu0 %v3371_v34  ;;  %v2829_v34 = vcombine.high %v4008_v52, %v4008_v52 }
  0xb4   :  { %1865 = vmatpush1.bf16.msra.mxu1 %v3376_v35  ;;  %1825 = vmatprep.subr.bf16.mxu0 %v3383_v36  ;;  %v2754_v35 = vcombine.low %v4170_v30, %v2677_v31  ;;  %v4505_v36 = vld [vmem:[#allocation23_spill] sm:$0xff] }
  0xb5   :  { %1866 = vmatprep.subr.bf16.mxu1 %v3390_v37  ;;  %v4506_v37 = vld [vmem:[#allocation24_spill] sm:$0xff]  ;;  %v4554_v31 = vld [vmem:[#allocation71_spill] sm:$0xff] }
  0xb6   :  { %v1434_v58 = vshrl.u32 %v2754_v35, 16 }
  0xb7   :  { %1826 = vmatpush1.bf16.msra.mxu0 %v3395_v38  ;;  %v4507_v38 = vld [vmem:[#allocation25_spill] sm:$0xff] }
  0xb8   :  { %1867 = vmatpush1.bf16.msra.mxu1 %v3402_v39  ;;  %1827 = vmatprep.subr.bf16.mxu0 %v3407_v40  ;;  %v4508_v39 = vld [vmem:[#allocation26_spill] sm:$0xff]  ;;  %v4509_v40 = vmov 0  }
  0xb9   :  { %1868 = vmatprep.subr.bf16.mxu1 %v3414_v41  ;;  %v1436_v41 = vshll.u32 %v2754_v35, 16  ;;  %v4558_v35 = vld [vmem:[#allocation75_spill] sm:$0xff] }
  0xbb   :  { %1828 = vmatpush1.bf16.msra.mxu0 %v3419_v42  ;;  %v4510_v42 = vld [vmem:[#allocation27_spill] sm:$0xff]  ;;  %v1438_v59 = vrot.slane %v1436_v41, 1  ;;  %v4563_v41 = vld [vmem:[#allocation80_spill] sm:$0xff] }
  0xbc   :  { %1869 = vmatpush1.bf16.msra.mxu1 %v3424_v43  ;;  %1829 = vmatprep.subr.bf16.mxu0 %v3431_v44  ;;  %v4511_v43 = vld [vmem:[#allocation28_spill] sm:$0xff]  ;;  %v4512_v44 = vld [vmem:[#allocation29_spill] sm:$0xff] }
  0xbd   :  { %1870 = vmatprep.subr.bf16.mxu1 %v4483_v0  ;;  %v1439_v51 = vor.u32 %v1438_v59, %v1434_v58  ;;  %v4525_v0 = vld [vmem:[#allocation42_spill] sm:$0xff]  ;;  %v4567_v58 = vld [vmem:[#allocation84_spill] sm:$0xff]  ;;  %v4568_v59 = vld [vmem:[#allocation85_spill] sm:$0xff] }
  0xbf   :  { %1830 = vmatpush1.bf16.msra.mxu0 %v4484_v1  ;;  %v4526_v1 = vld [vmem:[#allocation43_spill] sm:$0xff] }
  0xc0   :  { %1871 = vmatpush1.bf16.msra.mxu1 %v4485_v2  ;;  %1831 = vmatprep.subr.bf16.mxu0 %v4486_v3  ;;  %v4527_v2 = vld [vmem:[#allocation44_spill] sm:$0xff]  ;;  %v4528_v3 = vld [vmem:[#allocation45_spill] sm:$0xff] }
  0xc1   :  { %1872 = vmatprep.subr.bf16.mxu1 %v4487_v4  ;;  %v4529_v4 = vld [vmem:[#allocation46_spill] sm:$0xff] }
  0xc3   :  { %1832 = vmatpush1.bf16.msra.mxu0 %v4489_v8  ;;  %v4532_v8 = vld [vmem:[#allocation49_spill] sm:$0xff] }
  0xc4   :  { %1873 = vmatpush1.bf16.msra.mxu1 %v4490_v9  ;;  %1833 = vmatprep.subr.bf16.mxu0 %v4491_v10  ;;  %v4533_v9 = vld [vmem:[#allocation50_spill] sm:$0xff]  ;;  %v4534_v10 = vld [vmem:[#allocation51_spill] sm:$0xff] }
  0xc5   :  { %1874 = vmatprep.subr.bf16.mxu1 %v4492_v11  ;;  %v4535_v11 = vld [vmem:[#allocation52_spill] sm:$0xff] }
  0xc7   :  { %1834 = vmatpush1.bf16.msra.mxu0 %v4493_v14  ;;  %v4538_v14 = vld [vmem:[#allocation55_spill] sm:$0xff] }
  0xc8   :  { %1875 = vmatpush1.bf16.msra.mxu1 %v4494_v15  ;;  %1835 = vmatprep.subr.bf16.mxu0 %v4495_v16  ;;  %v4539_v15 = vld [vmem:[#allocation56_spill] sm:$0xff]  ;;  %v4540_v16 = vld [vmem:[#allocation57_spill] sm:$0xff] }
  0xc9   :  { %1876 = vmatprep.subr.bf16.mxu1 %v4496_v17  ;;  %v4541_v17 = vld [vmem:[#allocation58_spill] sm:$0xff] }
  0xcb   :  { %1836 = vmatpush1.bf16.msra.mxu0 %v4497_v22  ;;  %v4546_v22 = vld [vmem:[#allocation63_spill] sm:$0xff] }
  0xcc   :  { %1877 = vmatpush1.bf16.msra.mxu1 %v4498_v23  ;;  %1837 = vmatprep.subr.bf16.mxu0 %v4499_v24  ;;  %v4547_v23 = vld [vmem:[#allocation64_spill] sm:$0xff]  ;;  %v4548_v24 = vld [vmem:[#allocation65_spill] sm:$0xff] }
  0xcd   :  { %1878 = vmatprep.subr.bf16.mxu1 %v4500_v25  ;;  %v4549_v25 = vld [vmem:[#allocation66_spill] sm:$0xff] }
  0xcf   :  { %1838 = vmatpush1.bf16.msra.mxu0 %v4501_v28  ;;  %v4552_v28 = vld [vmem:[#allocation69_spill] sm:$0xff] }
  0xd0   :  { %1879 = vmatpush1.bf16.msra.mxu1 %v4502_v29  ;;  %1889 = vmatprep.subr.bf16.mxu0 %v4503_v32  ;;  %v4553_v29 = vld [vmem:[#allocation70_spill] sm:$0xff]  ;;  %v4555_v32 = vld [vmem:[#allocation72_spill] sm:$0xff] }
  0xd1   :  { %2302 = vmatprep.subr.bf16.mxu1 %v4504_v33  ;;  %v4556_v33 = vld [vmem:[#allocation73_spill] sm:$0xff] }
  0xd2   :  { %1840 = vmatmul.mubr.bf16.vlgmr.msra.gmra.mrb[12].mxu0 %v1411_v26  ;;  %v4550_v26 = vld [vmem:[#allocation67_spill] sm:$0xff] }
  0xd3   :  { %1881 = vmatmul.mubr.bf16.vlgmr.msra.gmra.mrb[12].mxu1 %v1425_v27  ;;  %1890 = vmatpush1.bf16.msra.mxu0 %v4505_v36  ;;  %v4551_v27 = vld [vmem:[#allocation68_spill] sm:$0xff] }
  0xd4   :  { %2303 = vmatpush1.bf16.msra.mxu1 %v4506_v37  ;;  %1891 = vmatprep.subr.bf16.mxu0 %v4507_v38  ;;  %v4559_v36 = vld [vmem:[#allocation76_spill] sm:$0xff]  ;;  %v4560_v37 = vld [vmem:[#allocation77_spill] sm:$0xff]  ;;  %v4561_v38 = vld [vmem:[#allocation78_spill] sm:$0xff] }
  0xd5   :  { %2304 = vmatprep.subr.bf16.mxu1 %v4508_v39  ;;  %1921 = vmatprep.mubr.bf16.mxu0 %v4509_v40  ;;  %v4562_v39 = vld [vmem:[#allocation79_spill] sm:$0xff] }
  0xd6   :  { %2334 = vmatprep.mubr.bf16.mxu1 %v2829_v34  ;;  %v4557_v34 = vld [vmem:[#allocation74_spill] sm:$0xff] }
  0xd7   :  { %1892 = vmatpush1.bf16.msra.mxu0 %v4510_v42  ;;  %v4564_v42 = vld [vmem:[#allocation81_spill] sm:$0xff] }
  0xd8   :  { %2305 = vmatpush1.bf16.msra.mxu1 %v4511_v43  ;;  %1893 = vmatprep.subr.bf16.mxu0 %v4512_v44  ;;  %v4565_v43 = vld [vmem:[#allocation82_spill] sm:$0xff]  ;;  %v2828_v44 = vcombine.low %v4008_v52, %v4008_v52 }
  0xd9   :  { %2306 = vmatprep.subr.bf16.mxu1 %v4513_v50  ;;  %v4566_v50 = vld [vmem:[#allocation83_spill] sm:$0xff] }
  0xdb   :  { %1894 = vmatpush1.bf16.msra.mxu0 %v4514_v62  ;;  %v4569_v62 = vld [vmem:[#allocation86_spill] sm:$0xff] }
  0xdc   :  { %2307 = vmatpush1.bf16.msra.mxu1 %v4515_v56  ;;  %1895 = vmatprep.subr.bf16.mxu0 %v4516_v49  ;;  %v4570_v56 = vld [vmem:[#allocation87_spill] sm:$0xff]  ;;  %v4571_v49 = vld [vmem:[#allocation88_spill] sm:$0xff] }
  0xdd   :  { %2308 = vmatprep.subr.bf16.mxu1 %v4517_v45  ;;  %v4572_v45 = vld [vmem:[#allocation89_spill] sm:$0xff] }
  0xdf   :  { %1896 = vmatpush1.bf16.msra.mxu0 %v4518_v53 }
  0xe0   :  { %2309 = vmatpush1.bf16.msra.mxu1 %v4519_v63  ;;  %2343 = vmatprep.subr.bf16.mxu0 %v4521_v46 }
  0xe1   :  { %2310 = vmatprep.subr.bf16.mxu1 %v4520_v60 }
  0xe2   :  { %2827 = vmatmul.mubr.msk.bf16.vlgmr.msra.gmra.mrb[16].mxu0 %vm587_vm0, %v1439_v51  ;;  %v4573_v51 = vld [vmem:[#allocation90_spill] sm:$0xff] }
  0xe3   :  { %2344 = vmatpush1.bf16.msra.mxu0 %v4523_v48  ;;  %2375 = vmatprep.mubr.bf16.mxu0 %v2831_v54 }
  0xe4   :  { %2311 = vmatpush1.bf16.msra.mxu1 %v4522_v61  ;;  %2345 = vmatprep.subr.bf16.mxu0 %v4525_v0  ;;  %v4575_v0 = vld [vmem:[#allocation93_spill] sm:$0xff] }
  0xe5   :  { %2312 = vmatprep.subr.bf16.mxu1 %v4524_v55  ;;  %v4574_v55 = vld [vmem:[#allocation92_spill] sm:$0xff] }
  0xe7   :  { %2346 = vmatpush1.bf16.msra.mxu0 %v4527_v2 }
  0xe8   :  { %2313 = vmatpush1.bf16.msra.mxu1 %v4526_v1  ;;  %2347 = vmatprep.subr.bf16.mxu0 %v4529_v4  ;;  %v4577_v4 = vld [vmem:[#allocation95_spill] sm:$0xff] }
  0xe9   :  { %2314 = vmatprep.subr.bf16.mxu1 %v4528_v3  ;;  %v4576_v3 = vld [vmem:[#allocation94_spill] sm:$0xff] }
  0xeb   :  { %2348 = vmatpush1.bf16.msra.mxu0 %v4531_v7  ;;  %v4579_v7 = vld [vmem:[#allocation97_spill] sm:$0xff] }
  0xec   :  { %2315 = vmatpush1.bf16.msra.mxu1 %v4530_v5  ;;  %2349 = vmatprep.subr.bf16.mxu0 %v4533_v9  ;;  %v4578_v5 = vld [vmem:[#allocation96_spill] sm:$0xff]  ;;  %v2830_v9 = vcombine.low %v4488_v6, %v4488_v6 }
  0xed   :  { %2316 = vmatprep.subr.bf16.mxu1 %v4532_v8  ;;  %v4581_v8 = vld [vmem:[#allocation99_spill] sm:$0xff] }
  0xef   :  { %2350 = vmatpush1.bf16.msra.mxu0 %v4535_v11 }
  0xf0   :  { %2317 = vmatpush1.bf16.msra.mxu1 %v4534_v10  ;;  %2351 = vmatprep.subr.bf16.mxu0 %v4537_v13  ;;  %v2832_v10 = vcombine.low %v4170_v30, %v4170_v30  ;;  %v1210_v30 = vlaneseq }
  0xf1   :  { %2318 = vmatprep.subr.bf16.mxu1 %v4536_v12 }
  0xf3   :  { %2352 = vmatpush1.bf16.msra.mxu0 %v4539_v15 }
  0xf4   :  { %2319 = vmatpush1.bf16.msra.mxu1 %v4538_v14  ;;  %2353 = vmatprep.subr.bf16.mxu0 %v4541_v17 }
  0xf5   :  { %2320 = vmatprep.subr.bf16.mxu1 %v4540_v16 }
  0xf7   :  { %2354 = vmatpush1.bf16.msra.mxu0 %v4543_v19 }
  0xf8   :  { %2321 = vmatpush1.bf16.msra.mxu1 %v4542_v18  ;;  %2355 = vmatprep.subr.bf16.mxu0 %v4545_v21 }
  0xf9   :  { %2322 = vmatprep.subr.bf16.mxu1 %v4544_v20 }
  0xfb   :  { %2356 = vmatpush1.bf16.msra.mxu0 %v4547_v23 }
  0xfc   :  { %2323 = vmatpush1.bf16.msra.mxu1 %v4546_v22  ;;  %2357 = vmatprep.subr.bf16.mxu0 %v4549_v25  ;;  %v1211_v22 = vshrl.u32 %v1210_v30, 7 }
  0xfd   :  { %2324 = vmatprep.subr.bf16.mxu1 %v4548_v24 }
  0xfe   :  { %v1216_v23 = vsub.s32 1, %v1211_v22 }
  0xff   :  { %2358 = vmatpush1.bf16.msra.mxu0 %v4551_v27 }
 0x100   :  { %2325 = vmatpush1.bf16.msra.mxu1 %v4550_v26  ;;  %2359 = vmatprep.subr.bf16.mxu0 %v4553_v29 }
 0x101   :  { %2326 = vmatprep.subr.bf16.mxu1 %v4552_v28 }
 0x103   :  { %2360 = vmatpush1.bf16.msra.mxu0 %v4555_v32 }
 0x104   :  { %2327 = vmatpush1.bf16.msra.mxu1 %v4554_v31  ;;  %2361 = vmatprep.subr.bf16.mxu0 %v4557_v34 }
 0x105   :  { %2328 = vmatprep.subr.bf16.mxu1 %v4556_v33 }
 0x107   :  { %2362 = vmatpush1.bf16.msra.mxu0 %v4559_v36 }
 0x108   :  { %2329 = vmatpush1.bf16.msra.mxu1 %v4558_v35  ;;  %2363 = vmatprep.subr.bf16.mxu0 %v4561_v38 }
 0x109   :  { %2330 = vmatprep.subr.bf16.mxu1 %v4560_v37 }
 0x10b   :  { %2364 = vmatpush1.bf16.msra.mxu0 %v4563_v41 }
 0x10c   :  { %2331 = vmatpush1.bf16.msra.mxu1 %v4562_v39  ;;  %2365 = vmatprep.subr.bf16.mxu0 %v4565_v43 }
 0x10d   :  { %2332 = vmatprep.subr.bf16.mxu1 %v4564_v42 }
 0x10f   :  { %2366 = vmatpush1.bf16.msra.mxu0 %v4567_v58 }
 0x110   :  { %2333 = vmatpush1.bf16.msra.mxu1 %v4566_v50  ;;  %2367 = vmatprep.subr.bf16.mxu0 %v4568_v59 }
 0x111   :  { %2384 = vmatprep.subr.bf16.mxu1 %v4569_v62 }
 0x113   :  { %2335 = vmatmul.mubr.bf16.vlgmr.msra.gmra.mrb[16].mxu1 %v2828_v44  ;;  %2368 = vmatpush1.bf16.msra.mxu0 %v4570_v56 }
 0x114   :  { %2385 = vmatpush1.bf16.msra.mxu1 %v4571_v49  ;;  %2369 = vmatprep.subr.bf16.mxu0 %v4572_v45 }
 0x115   :  { %2386 = vmatprep.subr.bf16.mxu1 %v4573_v51  ;;  %v625_v53 = vpop.f32.mrb[0].mxu0  ;;  %2416 = vmatprep.mubr.bf16.mxu1 %v4509_v40  ;;  %v4580_v40 = vld [vmem:[#allocation98_spill] sm:$0xff] }
 0x116   :  { %v666_v63 = vpop.f32.mrb[0].mxu1  ;;  %v627_v60 = vpop.f32.mrb[1].mxu0 }
 0x117   :  { %v667_v52 = vadd.f32 %v666_v63, %v625_v53  ;;  %v668_v46 = vpop.f32.mrb[1].mxu1  ;;  %v629_v61 = vpop.f32.mrb[2].mxu0  ;;  %2370 = vmatpush1.bf16.msra.mxu0 %v4574_v55 }
 0x118   :  { %v669_v54 = vadd.f32 %v668_v46, %v627_v60  ;;  %v670_v48 = vpop.f32.mrb[2].mxu1  ;;  %2387 = vmatpush1.bf16.msra.mxu1 %v4575_v0  ;;  %v630_v1 = vpop.f32.mrb[3].mxu0  ;;  %2371 = vmatprep.subr.bf16.mxu0 %v4576_v3 }
 0x119   :  { %v671_v2 = vpop.f32.mrb[3].mxu1  ;;  %2388 = vmatprep.subr.bf16.mxu1 %v4577_v4 }
 0x11b   :  { %2372 = vmatpush1.bf16.msra.mxu0 %v4578_v5 }
 0x11c   :  { %2389 = vmatpush1.bf16.msra.mxu1 %v4579_v7  ;;  %2373 = vmatprep.subr.bf16.mxu0 %v4580_v40 }
 0x11d   :  { %2390 = vmatprep.subr.bf16.mxu1 %v4581_v8 }
 0x11f   :  { %2374 = vmatpush1.bf16.msra.mxu0 %v4083_v47  ;;  %v1212_v47 = vsub.s32 0, %v1211_v22 }
 0x120   :  { %2391 = vmatpush1.bf16.msra.mxu1 %v4088_v57  ;;  %v15_v57 = vld [vmem:[%s4281_s2] sm:$0x3] }
 0x121   :  { %v1213_v27 = vrot.slane %v15_v57, %v1212_v47  ;;  %v1217_v32 = vrot.slane %v15_v57, %v1216_v23 }
 0x122   :  { %2376 = vmatmul.mubr.bf16.vlgmr.msra.gmra.mrb[20].mxu0 %v2830_v9 }
 0x123   :  { %2905 = vmatmul.mubr.msk.bf16.vlgmr.msra.gmra.mrb[20].mxu1 %vm587_vm0, %v2832_v10 }
 0x125   :  { %v707_v11 = vpop.f32.mrb[4].mxu0 }
 0x126   :  { %v708_v12 = vadd.f32 %v707_v11, %v667_v52  ;;  %v709_v13 = vpop.f32.mrb[5].mxu0 }
 0x127   :  { %v710_v14 = vadd.f32 %v709_v13, %v669_v54  ;;  %v711_v15 = vpop.f32.mrb[6].mxu0 }
 0x128   :  { %v712_v16 = vpop.f32.mrb[7].mxu0 }
 0x156   :  { %v1120_v17 = vpop.f32.mrb[4].mxu1 }
 0x157   :  { %v1121_v18 = vadd.f32 %v1120_v17, %v708_v12  ;;  %v1122_v19 = vpop.f32.mrb[5].mxu1 }
 0x158   :  { %v1123_v6 = vadd.f32 %v1122_v19, %v710_v14  ;;  %v1124_v20 = vpop.f32.mrb[6].mxu1 }
 0x159   :  { %v1125_v21 = vpop.f32.mrb[7].mxu1 }
 0x165   :  { %v1161_v24 = vpop.f32.mrb[8].mxu0 }
 0x166   :  { %v1202_v25 = vpop.f32.mrb[8].mxu1  ;;  %v1162_v26 = vadd.f32 %v1161_v24, %v1121_v18  ;;  %v1163_v28 = vpop.f32.mrb[9].mxu0 }
 0x167   :  { %v1204_v29 = vpop.f32.mrb[9].mxu1  ;;  %v1164_v31 = vadd.f32 %v1163_v28, %v1123_v6  ;;  %v1165_v33 = vpop.f32.mrb[10].mxu0 }
 0x168   :  { %v1206_v34 = vpop.f32.mrb[10].mxu1  ;;  %v1203_v35 = vadd.f32 %v1202_v25, %v1162_v26  ;;  %v1166_v36 = vpop.f32.mrb[11].mxu0 }
 0x169   :  { %v1207_v37 = vpop.f32.mrb[11].mxu1  ;;  %v1205_v38 = vadd.f32 %v1204_v29, %v1164_v31 }
 0x16a   :  { %v1220_v39 = vadd.f32 %v1213_v27, %v1203_v35 }
 0x16b   :  { %v1221_v41 = vadd.f32 %v1217_v32, %v1205_v38 }
 0x16c   :  { %v1222_v42 = vmax.f32 %v1220_v39, 0.0 }
 0x16d   :  { %v1223_v43 = vmax.f32 %v1221_v41, 0.0 }
 0x16f   :  { %v2908_v44 = vpack.c.bf16 %v1223_v43, %v1222_v42 }
 0x171   :  { %1232 = vst [vmem:[%s4282_s3] sm:$0xff] %v2908_v44 }
 0x1a5   :  { %v1841_v50 = vpop.f32.mrb[12].mxu0 }
 0x1a6   :  { %v1882_v58 = vpop.f32.mrb[12].mxu1  ;;  %v1843_v62 = vpop.f32.mrb[13].mxu0 }
 0x1a7   :  { %v1883_v59 = vadd.f32 %v1882_v58, %v1841_v50  ;;  %v1884_v56 = vpop.f32.mrb[13].mxu1  ;;  %v1845_v45 = vpop.f32.mrb[14].mxu0 }
 0x1a8   :  { %v1885_v49 = vadd.f32 %v1884_v56, %v1843_v62  ;;  %v1886_v51 = vpop.f32.mrb[14].mxu1  ;;  %v1846_v53 = vpop.f32.mrb[15].mxu0 }
 0x1a9   :  { %v1887_v63 = vpop.f32.mrb[15].mxu1 }
 0x1b5   :  { %v1923_v52 = vpop.f32.mrb[16].mxu0 }
 0x1b6   :  { %v1924_v60 = vadd.f32 %v1923_v52, %v1883_v59  ;;  %v1925_v46 = vpop.f32.mrb[17].mxu0 }
 0x1b7   :  { %v1926_v54 = vadd.f32 %v1925_v46, %v1885_v49  ;;  %v1927_v61 = vpop.f32.mrb[18].mxu0 }
 0x1b8   :  { %v1928_v48 = vpop.f32.mrb[19].mxu0 }
 0x1e6   :  { %v2336_v55 = vpop.f32.mrb[16].mxu1 }
 0x1e7   :  { %v2337_v0 = vadd.f32 %v2336_v55, %v1924_v60  ;;  %v2338_v1 = vpop.f32.mrb[17].mxu1 }
 0x1e8   :  { %v2339_v2 = vadd.f32 %v2338_v1, %v1926_v54  ;;  %v2340_v3 = vpop.f32.mrb[18].mxu1 }
 0x1e9   :  { %v2341_v4 = vpop.f32.mrb[19].mxu1 }
 0x1f5   :  { %v2377_v5 = vpop.f32.mrb[20].mxu0 }
 0x1f6   :  { %v2418_v7 = vpop.f32.mrb[20].mxu1  ;;  %v2378_v40 = vadd.f32 %v2377_v5, %v2337_v0  ;;  %v2379_v8 = vpop.f32.mrb[21].mxu0 }
 0x1f7   :  { %v2420_v9 = vpop.f32.mrb[21].mxu1  ;;  %v2380_v10 = vadd.f32 %v2379_v8, %v2339_v2  ;;  %v2381_v11 = vpop.f32.mrb[22].mxu0 }
 0x1f8   :  { %v2422_v12 = vpop.f32.mrb[22].mxu1  ;;  %v2419_v13 = vadd.f32 %v2418_v7, %v2378_v40  ;;  %v2382_v14 = vpop.f32.mrb[23].mxu0 }
 0x1f9   :  { %v2423_v15 = vpop.f32.mrb[23].mxu1  ;;  %v2421_v16 = vadd.f32 %v2420_v9, %v2380_v10 }
 0x1fa   :  { %v2425_v17 = vadd.f32 %v2419_v13, %v1213_v27 }
 0x1fb   :  { %v2426_v18 = vadd.f32 %v2421_v16, %v1217_v32 }
 0x1fc   :  { %v2427_v19 = vmax.f32 %v2425_v17, 0.0 }
 0x1fd   :  { %v2428_v6 = vmax.f32 %v2426_v18, 0.0 }
 0x1ff   :  { %v2909_v20 = vpack.c.bf16 %v2428_v6, %v2427_v19 }
 0x201   :  { %2907 = vst [vmem:[%s4282_s3 + $0x8] sm:$0xff] %v2909_v20 }

// kernel: _dqn_forward.7
= control target key start
LH: loop header
LB: loop body
LE: loop exit
PB: predicated region body
PF: predicated region fallthrough
CT: control target
= control target key end

     0   :  { %v753_v1 = vmov 0   ;;  %vm146_vm0 = vcmask 523264   ;;  %v41_v50 = vlaneseq  ;;  %s943_s1 = inlined_call_operand.vmem [shape: bf16[64,512], index: 1, kind: input, shape index: {}]   ;;  %s944_s0 = inlined_call_operand.vmem [shape: bf16[16,64], index: 0, kind: input, shape index: {}]   ;;  %s945_s3 = inlined_call_operand.vmem [shape: bf16[512,128], index: 3, kind: input, shape index: {}]   ;;  %s946_s2 = inlined_call_operand.vmem [shape: f32[1,512], index: 2, kind: input, shape index: {}]   ;;  %s947_s4 = inlined_call_operand.vmem [shape: f32[1,128], index: 4, kind: input, shape index: {}]   ;;  %s948_s5 = inlined_call_operand.vmem [shape: f32[16,128], index: 5, kind: output, shape index: {}]  }
   0x1   :  { %v696_v0 = vld [vmem:[%s943_s1 + $0x4] ss:$16 sps:$4 sm:$0xff]   ;;  %182 = vmatprep.mubr.bf16.mxu0 %v753_v1  ;;  %225 = vmatprep.mubr.bf16.mxu1 %v753_v1  ;;  %v698_v2 = vld [vmem:[%s943_s1 + $0xc] ss:$16 sps:$4 sm:$0xff]   ;;  %v700_v3 = vld [vmem:[%s943_s1] ss:$16 sps:$4 sm:$0xff]  }
   0x2   :  { %150 = vmatprep.subr.bf16.mxu0 %v696_v0  ;;  %v701_v4 = vld [vmem:[%s943_s1 + $0x8] ss:$16 sps:$4 sm:$0xff]   ;;  %193 = vmatprep.subr.bf16.mxu1 %v698_v2  ;;  %v702_v5 = vld [vmem:[%s943_s1 + $0x24] ss:$16 sps:$4 sm:$0xff]   ;;  %v704_v6 = vld [vmem:[%s943_s1 + $0x2c] ss:$16 sps:$4 sm:$0xff]  }
   0x3   :  { %151 = vmatpush1.bf16.msra.mxu0 %v700_v3  ;;  %194 = vmatpush1.bf16.msra.mxu1 %v701_v4  ;;  %v706_v7 = vld [vmem:[%s943_s1 + $0x20] ss:$16 sps:$4 sm:$0xff]   ;;  %v707_v8 = vld [vmem:[%s943_s1 + $0x28] ss:$16 sps:$4 sm:$0xff]   ;;  %v708_v9 = vld [vmem:[%s943_s1 + $0x44] ss:$16 sps:$4 sm:$0xff]  }
   0x4   :  { %152 = vmatprep.subr.bf16.mxu0 %v702_v5  ;;  %195 = vmatprep.subr.bf16.mxu1 %v704_v6  ;;  %v710_v10 = vld [vmem:[%s943_s1 + $0x4c] ss:$16 sps:$4 sm:$0xff]   ;;  %v712_v11 = vld [vmem:[%s943_s1 + $0x40] ss:$16 sps:$4 sm:$0xff]   ;;  %v713_v12 = vld [vmem:[%s943_s1 + $0x48] ss:$16 sps:$4 sm:$0xff]  }
   0x5   :  { %v714_v13 = vld [vmem:[%s943_s1 + $0x64] ss:$16 sps:$4 sm:$0xff]   ;;  %v716_v14 = vld [vmem:[%s943_s1 + $0x6c] ss:$16 sps:$4 sm:$0xff]   ;;  %v718_v15 = vld [vmem:[%s943_s1 + $0x60] ss:$16 sps:$4 sm:$0xff]  }
   0x6   :  { %v719_v16 = vld [vmem:[%s943_s1 + $0x68] ss:$16 sps:$4 sm:$0xff]   ;;  %v721_v17 = vld [vmem:[%s945_s3 + $0x40] sm:$0xff]   ;;  %v729_v26 = vld [vmem:[%s945_s3 + $0x50] sm:$0xff]   ;;  %v42_v51 = vshrl.u32 %v41_v50, 7 }
   0x7   :  { %153 = vmatpush1.bf16.msra.mxu0 %v706_v7  ;;  %196 = vmatpush1.bf16.msra.mxu1 %v707_v8  ;;  %v720_v18 = vld [vmem:[%s944_s0] sm:$0xff]   ;;  %v725_v22 = vld [vmem:[%s945_s3 + $0x48] sm:$0xff]   ;;  %v730_v27 = vld [vmem:[%s945_s3 + $0xd0] sm:$0xff]  }
   0x8   :  { %154 = vmatprep.subr.bf16.mxu0 %v708_v9  ;;  %197 = vmatprep.subr.bf16.mxu1 %v710_v10  ;;  %v722_v19 = vld [vmem:[%s945_s3 + $0xc0] sm:$0xff]   ;;  %v726_v23 = vld [vmem:[%s945_s3 + $0xc8] sm:$0xff]   ;;  %v731_v28 = vld [vmem:[%s945_s3 + $0x10] sm:$0xff]   ;;  %v43_v52 = vsub.s32 0, %v42_v51  ;;  %v51_v53 = vsub.s32 2, %v42_v51  ;;  %v47_v55 = vsub.s32 1, %v42_v51 }
   0x9   :  { %v723_v20 = vld [vmem:[%s945_s3] sm:$0xff]   ;;  %v727_v24 = vld [vmem:[%s945_s3 + $0x8] sm:$0xff]   ;;  %v732_v29 = vld [vmem:[%s945_s3 + $0x90] sm:$0xff]   ;;  %v55_v56 = vsub.s32 3, %v42_v51 }
   0xa   :  { %v724_v21 = vld [vmem:[%s945_s3 + $0x80] sm:$0xff]   ;;  %v728_v25 = vld [vmem:[%s945_s3 + $0x88] sm:$0xff]   ;;  %v733_v30 = vld [vmem:[%s945_s3 + $0x58] sm:$0xff]  }
   0xb   :  { %155 = vmatpush1.bf16.msra.mxu0 %v712_v11  ;;  %198 = vmatpush1.bf16.msra.mxu1 %v713_v12  ;;  %v734_v31 = vld [vmem:[%s945_s3 + $0xd8] sm:$0xff]   ;;  %v737_v34 = vld [vmem:[%s945_s3 + $0x60] sm:$0xff]   ;;  %v741_v38 = vld [vmem:[%s945_s3 + $0x68] sm:$0xff]  }
   0xc   :  { %156 = vmatprep.subr.bf16.mxu0 %v714_v13  ;;  %199 = vmatprep.subr.bf16.mxu1 %v716_v14  ;;  %v735_v32 = vld [vmem:[%s945_s3 + $0x18] sm:$0xff]   ;;  %v738_v35 = vld [vmem:[%s945_s3 + $0xe0] sm:$0xff]   ;;  %v742_v39 = vld [vmem:[%s945_s3 + $0xe8] sm:$0xff]  }
   0xd   :  { %v736_v33 = vld [vmem:[%s945_s3 + $0x98] sm:$0xff]   ;;  %v739_v36 = vld [vmem:[%s945_s3 + $0x20] sm:$0xff]   ;;  %v743_v40 = vld [vmem:[%s945_s3 + $0x28] sm:$0xff]  }
   0xe   :  { %v740_v37 = vld [vmem:[%s945_s3 + $0xa0] sm:$0xff]   ;;  %v744_v41 = vld [vmem:[%s945_s3 + $0xa8] sm:$0xff]   ;;  %v745_v42 = vld [vmem:[%s945_s3 + $0x70] sm:$0xff]  }
   0xf   :  { %157 = vmatpush1.bf16.msra.mxu0 %v718_v15  ;;  %200 = vmatpush1.bf16.msra.mxu1 %v719_v16  ;;  %v746_v43 = vld [vmem:[%s945_s3 + $0xf0] sm:$0xff]   ;;  %v749_v46 = vld [vmem:[%s945_s3 + $0x78] sm:$0xff]   ;;  %v39_v54 = vld [vmem:[%s946_s2] sm:$0xf] }
  0x10   :  { %651 = vmatprep.subr.bf16.mxu0 %v721_v17  ;;  %673 = vmatprep.subr.bf16.mxu1 %v722_v19  ;;  %v747_v44 = vld [vmem:[%s945_s3 + $0x30] sm:$0xff]   ;;  %v750_v47 = vld [vmem:[%s945_s3 + $0xf8] sm:$0xff]   ;;  %v44_v57 = vrot.slane %v39_v54, %v43_v52  ;;  %v52_v58 = vrot.slane %v39_v54, %v51_v53  ;;  %v48_v59 = vrot.slane %v39_v54, %v47_v55 }
  0x11   :  { %v748_v45 = vld [vmem:[%s945_s3 + $0xb0] sm:$0xff]   ;;  %v751_v48 = vld [vmem:[%s945_s3 + $0x38] sm:$0xff]   ;;  %v56_v60 = vrot.slane %v39_v54, %v55_v56 }
  0x12   :  { %616 = vmatmul.mubr.msk.bf16.vlgmr.msra.gmra.mrb[0].mxu0 %vm146_vm0, %v720_v18  ;;  %617 = vmatmul.mubr.msk.bf16.vlgmr.msra.gmra.mrb[0].mxu1 %vm146_vm0, %v720_v18  ;;  %v752_v49 = vld [vmem:[%s945_s3 + $0xb8] sm:$0xff]  }
  0x13   :  { %652 = vmatpush3.bf16.msra.mxu0 %v723_v20  ;;  %674 = vmatpush3.bf16.msra.mxu1 %v724_v21 }
  0x14   :  { %653 = vmatprep.subr.bf16.mxu0 %v725_v22  ;;  %675 = vmatprep.subr.bf16.mxu1 %v726_v23 }
  0x17   :  { %654 = vmatpush3.bf16.msra.mxu0 %v727_v24  ;;  %676 = vmatpush3.bf16.msra.mxu1 %v728_v25 }
  0x18   :  { %655 = vmatprep.subr.bf16.mxu0 %v729_v26  ;;  %677 = vmatprep.subr.bf16.mxu1 %v730_v27  ;;  %v618_v27 = vld [vmem:[%s947_s4] ss:$0 sm:$0xff] }
  0x1b   :  { %656 = vmatpush3.bf16.msra.mxu0 %v731_v28  ;;  %678 = vmatpush3.bf16.msra.mxu1 %v732_v29 }
  0x1c   :  { %657 = vmatprep.subr.bf16.mxu0 %v733_v30  ;;  %679 = vmatprep.subr.bf16.mxu1 %v734_v31 }
  0x1f   :  { %658 = vmatpush3.bf16.msra.mxu0 %v735_v32  ;;  %680 = vmatpush3.bf16.msra.mxu1 %v736_v33 }
  0x20   :  { %659 = vmatprep.subr.bf16.mxu0 %v737_v34  ;;  %681 = vmatprep.subr.bf16.mxu1 %v738_v35 }
  0x23   :  { %660 = vmatpush3.bf16.msra.mxu0 %v739_v36  ;;  %682 = vmatpush3.bf16.msra.mxu1 %v740_v37 }
  0x24   :  { %661 = vmatprep.subr.bf16.mxu0 %v741_v38  ;;  %683 = vmatprep.subr.bf16.mxu1 %v742_v39 }
  0x27   :  { %662 = vmatpush3.bf16.msra.mxu0 %v743_v40  ;;  %684 = vmatpush3.bf16.msra.mxu1 %v744_v41 }
  0x28   :  { %663 = vmatprep.subr.bf16.mxu0 %v745_v42  ;;  %685 = vmatprep.subr.bf16.mxu1 %v746_v43 }
  0x2b   :  { %664 = vmatpush3.bf16.msra.mxu0 %v747_v44  ;;  %686 = vmatpush3.bf16.msra.mxu1 %v748_v45 }
  0x2c   :  { %665 = vmatprep.subr.bf16.mxu0 %v749_v46  ;;  %687 = vmatprep.subr.bf16.mxu1 %v750_v47 }
  0x2f   :  { %666 = vmatpush3.bf16.msra.mxu0 %v751_v48  ;;  %688 = vmatpush3.bf16.msra.mxu1 %v752_v49 }
  0xe5   :  { %v184_v61 = vpop.f32.mrb[0].mxu0  ;;  %v227_v62 = vpop.f32.mrb[0].mxu1 }
  0xe6   :  { %v185_v63 = vadd.f32 %v184_v61, %v44_v57  ;;  %v228_v0 = vadd.f32 %v227_v62, %v52_v58  ;;  %v186_v1 = vpop.f32.mrb[1].mxu0  ;;  %v229_v2 = vpop.f32.mrb[1].mxu1 }
  0xe7   :  { %v187_v3 = vadd.f32 %v186_v1, %v48_v59  ;;  %v230_v4 = vadd.f32 %v229_v2, %v56_v60  ;;  %v188_v5 = vpop.f32.mrb[2].mxu0  ;;  %v231_v6 = vpop.f32.mrb[2].mxu1 }
  0xe8   :  { %v238_v7 = vmax.f32 %v228_v0, 0.0  ;;  %v189_v8 = vadd.f32 %v188_v5, %v44_v57  ;;  %v232_v9 = vadd.f32 %v231_v6, %v52_v58  ;;  %v190_v10 = vpop.f32.mrb[3].mxu0  ;;  %v233_v11 = vpop.f32.mrb[3].mxu1  ;;  %v236_v15 = vmax.f32 %v185_v63, 0.0 }
  0xe9   :  { %v239_v12 = vmax.f32 %v230_v4, 0.0  ;;  %v191_v13 = vadd.f32 %v190_v10, %v48_v59  ;;  %v234_v14 = vadd.f32 %v233_v11, %v56_v60  ;;  %v237_v18 = vmax.f32 %v187_v3, 0.0 }
  0xea   :  { %v240_v16 = vmax.f32 %v189_v8, 0.0  ;;  %v242_v17 = vmax.f32 %v232_v9, 0.0 }
  0xeb   :  { %v241_v19 = vmax.f32 %v191_v13, 0.0  ;;  %v243_v20 = vmax.f32 %v234_v14, 0.0 }
  0xec   :  { %v244_v21 = vpack.c.bf16 %v240_v16, %v236_v15  ;;  %v246_v22 = vpack.c.bf16 %v242_v17, %v238_v7 }
  0xed   :  { %v245_v23 = vpack.c.bf16 %v241_v19, %v237_v18  ;;  %v247_v24 = vpack.c.bf16 %v243_v20, %v239_v12 }
  0xef   :  { %543 = vmatprep.mubr.bf16.mxu0 %v245_v23  ;;  %584 = vmatprep.mubr.bf16.mxu1 %v247_v24 }
  0xf0   :  { %544 = vmatmul.mubr.bf16.vlgmr.msra.gmra.mrb[4].mxu0 %v244_v21  ;;  %585 = vmatmul.mubr.bf16.vlgmr.msra.gmra.mrb[4].mxu1 %v246_v22 }
 0x1c3   :  { %v667_v25 = vpop.f32.mrb[4].mxu0  ;;  %v689_v26 = vpop.f32.mrb[4].mxu1 }
 0x1c4   :  { %v668_v28 = vpop.f32.mrb[5].mxu0  ;;  %v690_v29 = vpop.f32.mrb[5].mxu1 }
 0x1c5   :  { %v669_v30 = vadd.f32 %v668_v28, %v667_v25  ;;  %v691_v31 = vadd.f32 %v690_v29, %v689_v26  ;;  %v670_v32 = vpop.f32.mrb[6].mxu0  ;;  %v692_v33 = vpop.f32.mrb[6].mxu1 }
 0x1c6   :  { %v671_v34 = vpop.f32.mrb[7].mxu0  ;;  %v693_v35 = vpop.f32.mrb[7].mxu1 }
 0x1c7   :  { %v546_v36 = vadd.f32 %v669_v30, %v618_v27  ;;  %v672_v37 = vadd.f32 %v671_v34, %v670_v32  ;;  %v694_v38 = vadd.f32 %v693_v35, %v692_v33 }
 0x1c9   :  { %v587_v39 = vadd.f32 %v691_v31, %v546_v36  ;;  %v549_v40 = vadd.f32 %v672_v37, %v618_v27 }
 0x1cb   :  { %593 = vst [vmem:[%s948_s5] sm:$0xff] %v587_v39  ;;  %v590_v41 = vadd.f32 %v694_v38, %v549_v40 }
 0x1cd   :  { %594 = vst [vmem:[%s948_s5 + $0x8] sm:$0xff] %v590_v41 }

// kernel: _dqn_forward.6
= control target key start
LH: loop header
LB: loop body
LE: loop exit
PB: predicated region body
PF: predicated region fallthrough
CT: control target
= control target key end

     0   :  { %v1191_v0 = vmov 0   ;;  %vm154_vm0 = vcmask 523264   ;;  %vm470_vm1 = vcmask 516096   ;;  %vm471_vm2 = vsmask.f32 256  ;;  %s1561_s1 = inlined_call_operand.vmem [shape: bf16[3,192,64], index: 1, kind: input, shape index: {}]   ;;  %s1562_s0 = inlined_call_operand.vmem [shape: bf16[2,3,192], index: 0, kind: input, shape index: {}]   ;;  %s1563_s2 = inlined_call_operand.vmem [shape: f32[1,64], index: 2, kind: input, shape index: {}]   ;;  %s1564_s3 = inlined_call_operand.vmem [shape: bf16[2,1,64], index: 3, kind: output, shape index: {}]  }
   0x1   :  { %158 = vmatprep.subr.bf16.mxu0 %v1191_v0  ;;  %273 = vmatprep.subr.bf16.mxu1 %v1191_v0  ;;  %v1119_v1 = vld [vmem:[%s1561_s1 + $0x60] sm:$0xff]   ;;  %v1121_v3 = vld [vmem:[%s1561_s1 + $0x68] sm:$0xff]   ;;  %v1123_v5 = vld [vmem:[%s1561_s1 + $0x70] sm:$0xff]  }
   0x2   :  { %v1120_v2 = vld [vmem:[%s1561_s1] sm:$0xff]   ;;  %159 = vmatpush1.bf16.msra.mxu0 %v1119_v1  ;;  %v1122_v4 = vld [vmem:[%s1561_s1 + $0x8] sm:$0xff]   ;;  %v1124_v6 = vld [vmem:[%s1561_s1 + $0x10] sm:$0xff]  }
   0x3   :  { %274 = vmatpush1.bf16.msra.mxu1 %v1120_v2  ;;  %160 = vmatprep.subr.bf16.mxu0 %v1191_v0  ;;  %v1125_v7 = vld [vmem:[%s1561_s1 + $0x78] sm:$0xff]   ;;  %v1127_v9 = vld [vmem:[%s1561_s1 + $0x80] sm:$0xff]   ;;  %v1129_v11 = vld [vmem:[%s1561_s1 + $0x88] sm:$0xff]  }
   0x4   :  { %275 = vmatprep.subr.bf16.mxu1 %v1191_v0  ;;  %v1126_v8 = vld [vmem:[%s1561_s1 + $0x18] sm:$0xff]   ;;  %v1128_v10 = vld [vmem:[%s1561_s1 + $0x20] sm:$0xff]   ;;  %v1130_v12 = vld [vmem:[%s1561_s1 + $0x28] sm:$0xff]  }
   0x5   :  { %v1131_v13 = vld [vmem:[%s1561_s1 + $0x90] sm:$0xff]   ;;  %v960_v15 = vld.sshfl [vmem:[%s1562_s0] sm:$0x11 pattern:$0x76325410]  ;;  %v1133_v17 = vld [vmem:[%s1561_s1 + $0x98] sm:$0xff]  }
   0x6   :  { %161 = vmatpush1.bf16.msra.mxu0 %v1121_v3  ;;  %v1132_v14 = vld [vmem:[%s1561_s1 + $0x30] sm:$0xff]   ;;  %v74_v16 = vcombine.high %v960_v15, %v960_v15  ;;  %v1134_v18 = vld [vmem:[%s1561_s1 + $0x38] sm:$0xff]   ;;  %v1135_v20 = vld [vmem:[%s1561_s1 + $0xa0] sm:$0xff]   ;;  %v76_v28 = vshrl.u32 %v960_v15, 16 }
   0x7   :  { %276 = vmatpush1.bf16.msra.mxu1 %v1122_v4  ;;  %162 = vmatprep.subr.bf16.mxu0 %v1191_v0  ;;  %v1136_v21 = vld [vmem:[%s1561_s1 + $0x40] sm:$0xff]   ;;  %v1137_v22 = vld [vmem:[%s1561_s1 + $0xa8] sm:$0xff]   ;;  %v1139_v24 = vld [vmem:[%s1561_s1 + $0xb0] sm:$0xff]  }
   0x8   :  { %277 = vmatprep.subr.bf16.mxu1 %v1191_v0  ;;  %v79_v19 = vshrl.u32 %v74_v16, 16  ;;  %986 = vmatprep.mubr.msk.bf16.mxu1 %vm154_vm0, %v74_v16  ;;  %v1138_v23 = vld [vmem:[%s1561_s1 + $0x48] sm:$0xff]   ;;  %v1140_v25 = vld [vmem:[%s1561_s1 + $0x50] sm:$0xff]   ;;  %v1141_v26 = vld [vmem:[%s1561_s1 + $0xb8] sm:$0xff]  }
   0x9   :  { %v1142_v27 = vld [vmem:[%s1561_s1 + $0x58] sm:$0xff]   ;;  %v1143_v29 = vld [vmem:[%s1561_s1 + $0xc0] sm:$0xff]   ;;  %v1145_v32 = vld [vmem:[%s1561_s1 + $0xc8] sm:$0xff]  }
   0xa   :  { %163 = vmatpush1.bf16.msra.mxu0 %v1123_v5  ;;  %973 = vmatprep.mubr.msk.bf16.mxu0 %vm154_vm0, %v79_v19  ;;  %v1144_v30 = vld [vmem:[%s1561_s1 + $0x60] sm:$0xff]   ;;  %v1146_v35 = vld [vmem:[%s1561_s1 + $0x68] sm:$0xff]   ;;  %v1147_v39 = vld [vmem:[%s1561_s1 + $0xd0] sm:$0xff]  }
   0xb   :  { %278 = vmatpush1.bf16.msra.mxu1 %v1124_v6  ;;  %164 = vmatprep.subr.bf16.mxu0 %v1191_v0  ;;  %v1324_v31 = vld.sshfl [vmem:[%s1562_s0] sm:$0x22 pattern:$0x76325410]  ;;  %v1148_v40 = vld [vmem:[%s1561_s1 + $0x70] sm:$0xff]   ;;  %v1149_v41 = vld [vmem:[%s1561_s1 + $0xd8] sm:$0xff]  }
   0xc   :  { %279 = vmatprep.subr.bf16.mxu1 %v1191_v0  ;;  %v347_v33 = vcombine.high %v1324_v31, %v1324_v31  ;;  %v1334_v34 = vld.sshfl [vmem:[%s1562_s0 + $0x4] sm:$0x11 pattern:$0x76325410]  ;;  %v1150_v42 = vld [vmem:[%s1561_s1 + $0x78] sm:$0xff]   ;;  %v1153_v45 = vld [vmem:[%s1561_s1 + $0xe8] sm:$0xff]  }
   0xd   :  { %v1342_v36 = vcombine.high %v1334_v34, %v1334_v34  ;;  %v1151_v43 = vld [vmem:[%s1561_s1 + $0xe0] sm:$0xff]   ;;  %v1154_v46 = vld [vmem:[%s1561_s1 + $0x88] sm:$0xff]   ;;  %v1155_v47 = vld [vmem:[%s1561_s1 + $0xf0] sm:$0xff]   ;;  %v348_v60 = vrot.slane %v1324_v31, 1  ;;  %v536_v62 = vshrl.u32 %v1334_v34, 16 }
   0xe   :  { %165 = vmatpush1.bf16.msra.mxu0 %v1125_v7  ;;  %v349_v37 = vrot.slane %v347_v33, 1  ;;  %v1152_v44 = vld [vmem:[%s1561_s1 + $0x80] sm:$0xff]   ;;  %v1156_v48 = vld [vmem:[%s1561_s1 + $0x90] sm:$0xff]   ;;  %v1157_v49 = vld [vmem:[%s1561_s1 + $0xf8] sm:$0xff]  }
   0xf   :  { %280 = vmatpush1.bf16.msra.mxu1 %v1126_v8  ;;  %166 = vmatprep.subr.bf16.mxu0 %v1191_v0  ;;  %v539_v38 = vshrl.u32 %v1342_v36, 16  ;;  %v1158_v50 = vld [vmem:[%s1561_s1 + $0x98] sm:$0xff]   ;;  %v1159_v51 = vld [vmem:[%s1561_s1 + $0x100] sm:$0xff]   ;;  %v1161_v53 = vld [vmem:[%s1561_s1 + $0x108] sm:$0xff]  }
  0x10   :  { %281 = vmatprep.subr.bf16.mxu1 %v1191_v0  ;;  %v1160_v52 = vld [vmem:[%s1561_s1 + $0xa0] sm:$0xff]   ;;  %v1162_v54 = vld [vmem:[%s1561_s1 + $0xa8] sm:$0xff]   ;;  %v1163_v55 = vld [vmem:[%s1561_s1 + $0x110] sm:$0xff]  }
  0x11   :  { %v1164_v56 = vld [vmem:[%s1561_s1 + $0xb0] sm:$0xff]   ;;  %v1165_v57 = vld [vmem:[%s1561_s1 + $0x118] sm:$0xff]   ;;  %v1426_v58 = vld.sshfl [vmem:[%s1562_s0 + $0x4] sm:$0x22 pattern:$0x76325410] }
  0x12   :  { %167 = vmatpush1.bf16.msra.mxu0 %v1127_v9  ;;  %v1166_v59 = vld [vmem:[%s1561_s1 + $0xb8] sm:$0xff]   ;;  %v805_v61 = vcombine.high %v1426_v58, %v1426_v58  ;;  %v1167_v63 = vld [vmem:[%s1561_s1] sm:$0xff]   ;;  %v1169_v3 = vld [vmem:[%s1561_s1 + $0x8] sm:$0xff]  }
  0x13   :  { %282 = vmatpush1.bf16.msra.mxu1 %v1128_v10  ;;  %168 = vmatprep.subr.bf16.mxu0 %v1191_v0  ;;  %v1168_v1 = vld [vmem:[%s1561_s1 + $0xc0] sm:$0xff]   ;;  %v1170_v4 = vld [vmem:[%s1561_s1 + $0xc8] sm:$0xff]   ;;  %v1171_v5 = vld [vmem:[%s1561_s1 + $0x10] sm:$0xff]  }
  0x14   :  { %283 = vmatprep.subr.bf16.mxu1 %v1191_v0  ;;  %v807_v2 = vrot.slane %v805_v61, 1  ;;  %v1172_v6 = vld [vmem:[%s1561_s1 + $0xd0] sm:$0xff]   ;;  %v1173_v7 = vld [vmem:[%s1561_s1 + $0x18] sm:$0xff]   ;;  %v1175_v9 = vld [vmem:[%s1561_s1 + $0x20] sm:$0xff]  }
  0x15   :  { %v1174_v8 = vld [vmem:[%s1561_s1 + $0xd8] sm:$0xff]   ;;  %v1176_v10 = vld [vmem:[%s1561_s1 + $0xe0] sm:$0xff]   ;;  %v1185_v19 = vld [vmem:[%s1561_s1 + $0x48] sm:$0xff]  }
  0x16   :  { %169 = vmatpush1.bf16.msra.mxu0 %v1129_v11  ;;  %v1177_v11 = vld [vmem:[%s1561_s1 + $0x28] sm:$0xff]   ;;  %v1182_v16 = vld [vmem:[%s1561_s1 + $0xf8] sm:$0xff]   ;;  %vm1541_vm3 = vmand %vm470_vm1, %vm471_vm2 }
  0x17   :  { %284 = vmatpush1.bf16.msra.mxu1 %v1130_v12  ;;  %170 = vmatprep.subr.bf16.mxu0 %v1191_v0  ;;  %v1178_v12 = vld [vmem:[%s1561_s1 + $0xe8] sm:$0xff]  }
  0x18   :  { %285 = vmatprep.subr.bf16.mxu1 %v1191_v0 }
  0x1a   :  { %171 = vmatpush1.bf16.msra.mxu0 %v1131_v13  ;;  %v1179_v13 = vld [vmem:[%s1561_s1 + $0x30] sm:$0xff]  }
  0x1b   :  { %286 = vmatpush1.bf16.msra.mxu1 %v1132_v14  ;;  %172 = vmatprep.subr.bf16.mxu0 %v1191_v0  ;;  %v1180_v14 = vld [vmem:[%s1561_s1 + $0xf0] sm:$0xff]  }
  0x1c   :  { %287 = vmatprep.subr.bf16.mxu1 %v1191_v0 }
  0x1e   :  { %173 = vmatpush1.bf16.msra.mxu0 %v1133_v17  ;;  %v1183_v17 = vld [vmem:[%s1561_s1 + $0x40] sm:$0xff]  }
  0x1f   :  { %288 = vmatpush1.bf16.msra.mxu1 %v1134_v18  ;;  %174 = vmatprep.subr.bf16.mxu0 %v1191_v0  ;;  %v1184_v18 = vld [vmem:[%s1561_s1 + $0x100] sm:$0xff]  }
  0x20   :  { %289 = vmatprep.subr.bf16.mxu1 %v1191_v0 }
  0x22   :  { %175 = vmatpush1.bf16.msra.mxu0 %v1135_v20  ;;  %v1186_v20 = vld [vmem:[%s1561_s1 + $0x108] sm:$0xff]  }
  0x23   :  { %290 = vmatpush1.bf16.msra.mxu1 %v1136_v21  ;;  %176 = vmatprep.subr.bf16.mxu0 %v1191_v0  ;;  %v1187_v21 = vld [vmem:[%s1561_s1 + $0x50] sm:$0xff]  }
  0x24   :  { %291 = vmatprep.subr.bf16.mxu1 %v1191_v0 }
  0x26   :  { %177 = vmatpush1.bf16.msra.mxu0 %v1137_v22  ;;  %v1188_v22 = vld [vmem:[%s1561_s1 + $0x110] sm:$0xff]  }
  0x27   :  { %292 = vmatpush1.bf16.msra.mxu1 %v1138_v23  ;;  %178 = vmatprep.subr.bf16.mxu0 %v1191_v0  ;;  %v1189_v23 = vld [vmem:[%s1561_s1 + $0x58] sm:$0xff]  }
  0x28   :  { %293 = vmatprep.subr.bf16.mxu1 %v1191_v0 }
  0x2a   :  { %179 = vmatpush1.bf16.msra.mxu0 %v1139_v24  ;;  %v1190_v24 = vld [vmem:[%s1561_s1 + $0x118] sm:$0xff]  }
  0x2b   :  { %294 = vmatpush1.bf16.msra.mxu1 %v1140_v25  ;;  %180 = vmatprep.subr.bf16.mxu0 %v1191_v0  ;;  %v806_v25 = vrot.slane %v1426_v58, 1 }
  0x2c   :  { %295 = vmatprep.subr.bf16.mxu1 %v1191_v0 }
  0x2e   :  { %181 = vmatpush1.bf16.msra.mxu0 %v1141_v26 }
  0x2f   :  { %296 = vmatpush1.bf16.msra.mxu1 %v1142_v27  ;;  %426 = vmatprep.subr.bf16.mxu0 %v1191_v0 }
  0x30   :  { %617 = vmatprep.subr.bf16.mxu1 %v1191_v0 }
  0x31   :  { %191 = vmatmul.mubr.bf16.vlgmr.msra.gmra.mrb[0].mxu0 %v76_v28 }
  0x32   :  { %306 = vmatmul.mubr.bf16.vlgmr.msra.gmra.mrb[0].mxu1 %v960_v15  ;;  %427 = vmatpush1.bf16.msra.mxu0 %v1143_v29  ;;  %v1181_v15 = vld [vmem:[%s1561_s1 + $0x38] sm:$0xff]  }
  0x33   :  { %618 = vmatpush1.bf16.msra.mxu1 %v1144_v30  ;;  %428 = vmatprep.subr.bf16.mxu0 %v1191_v0 }
  0x34   :  { %619 = vmatprep.subr.bf16.mxu1 %v1191_v0  ;;  %1024 = vmatprep.mubr.msk.bf16.mxu0 %vm154_vm0, %v349_v37 }
  0x35   :  { %1063 = vmatprep.mubr.msk.bf16.mxu1 %vm154_vm0, %v539_v38 }
  0x36   :  { %429 = vmatpush1.bf16.msra.mxu0 %v1145_v32 }
  0x37   :  { %620 = vmatpush1.bf16.msra.mxu1 %v1146_v35  ;;  %430 = vmatprep.subr.bf16.mxu0 %v1191_v0 }
  0x38   :  { %621 = vmatprep.subr.bf16.mxu1 %v1191_v0 }
  0x3a   :  { %431 = vmatpush1.bf16.msra.mxu0 %v1147_v39 }
  0x3b   :  { %622 = vmatpush1.bf16.msra.mxu1 %v1148_v40  ;;  %432 = vmatprep.subr.bf16.mxu0 %v1191_v0 }
  0x3c   :  { %623 = vmatprep.subr.bf16.mxu1 %v1191_v0 }
  0x3e   :  { %433 = vmatpush1.bf16.msra.mxu0 %v1149_v41 }
  0x3f   :  { %624 = vmatpush1.bf16.msra.mxu1 %v1150_v42  ;;  %434 = vmatprep.subr.bf16.mxu0 %v1191_v0 }
  0x40   :  { %625 = vmatprep.subr.bf16.mxu1 %v1191_v0 }
  0x42   :  { %435 = vmatpush1.bf16.msra.mxu0 %v1151_v43 }
  0x43   :  { %626 = vmatpush1.bf16.msra.mxu1 %v1152_v44  ;;  %436 = vmatprep.subr.bf16.mxu0 %v1191_v0 }
  0x44   :  { %627 = vmatprep.subr.bf16.mxu1 %v1191_v0 }
  0x46   :  { %437 = vmatpush1.bf16.msra.mxu0 %v1153_v45 }
  0x47   :  { %628 = vmatpush1.bf16.msra.mxu1 %v1154_v46  ;;  %438 = vmatprep.subr.bf16.mxu0 %v1191_v0 }
  0x48   :  { %629 = vmatprep.subr.bf16.mxu1 %v1191_v0 }
  0x4a   :  { %439 = vmatpush1.bf16.msra.mxu0 %v1155_v47  ;;  %v473_v47 = vld [vmem:[%s1564_s3] sm:$0x1] }
  0x4b   :  { %630 = vmatpush1.bf16.msra.mxu1 %v1156_v48  ;;  %440 = vmatprep.subr.bf16.mxu0 %v1191_v0 }
  0x4c   :  { %631 = vmatprep.subr.bf16.mxu1 %v1191_v0 }
  0x4e   :  { %441 = vmatpush1.bf16.msra.mxu0 %v1157_v49 }
  0x4f   :  { %632 = vmatpush1.bf16.msra.mxu1 %v1158_v50  ;;  %442 = vmatprep.subr.bf16.mxu0 %v1191_v0 }
  0x50   :  { %633 = vmatprep.subr.bf16.mxu1 %v1191_v0 }
  0x52   :  { %443 = vmatpush1.bf16.msra.mxu0 %v1159_v51 }
  0x53   :  { %634 = vmatpush1.bf16.msra.mxu1 %v1160_v52  ;;  %444 = vmatprep.subr.bf16.mxu0 %v1191_v0 }
  0x54   :  { %635 = vmatprep.subr.bf16.mxu1 %v1191_v0 }
  0x56   :  { %445 = vmatpush1.bf16.msra.mxu0 %v1161_v53 }
  0x57   :  { %636 = vmatpush1.bf16.msra.mxu1 %v1162_v54  ;;  %446 = vmatprep.subr.bf16.mxu0 %v1191_v0 }
  0x58   :  { %637 = vmatprep.subr.bf16.mxu1 %v1191_v0 }
  0x5a   :  { %447 = vmatpush1.bf16.msra.mxu0 %v1163_v55 }
  0x5b   :  { %638 = vmatpush1.bf16.msra.mxu1 %v1164_v56  ;;  %448 = vmatprep.subr.bf16.mxu0 %v1191_v0 }
  0x5c   :  { %639 = vmatprep.subr.bf16.mxu1 %v1191_v0 }
  0x5e   :  { %449 = vmatpush1.bf16.msra.mxu0 %v1165_v57 }
  0x5f   :  { %640 = vmatpush1.bf16.msra.mxu1 %v1166_v59  ;;  %732 = vmatprep.subr.bf16.mxu0 %v1191_v0 }
  0x60   :  { %884 = vmatprep.subr.bf16.mxu1 %v1191_v0 }
  0x61   :  { %459 = vmatmul.mubr.bf16.vlgmr.msra.gmra.mrb[4].mxu0 %v348_v60 }
  0x62   :  { %650 = vmatmul.mubr.bf16.vlgmr.msra.gmra.mrb[4].mxu1 %v536_v62  ;;  %733 = vmatpush1.bf16.msra.mxu0 %v1167_v63  ;;  %v1116_v62 = vld [vmem:[%s1564_s3 + $0x1] sm:$0x1] }
  0x63   :  { %885 = vmatpush1.bf16.msra.mxu1 %v1168_v1  ;;  %734 = vmatprep.subr.bf16.mxu0 %v1191_v0 }
  0x64   :  { %886 = vmatprep.subr.bf16.mxu1 %v1191_v0  ;;  %1076 = vmatprep.mubr.msk.bf16.mxu0 %vm154_vm0, %v1342_v36 }
  0x65   :  { %1115 = vmatprep.mubr.msk.bf16.mxu1 %vm154_vm0, %v807_v2 }
  0x66   :  { %735 = vmatpush1.bf16.msra.mxu0 %v1169_v3 }
  0x67   :  { %887 = vmatpush1.bf16.msra.mxu1 %v1170_v4  ;;  %736 = vmatprep.subr.bf16.mxu0 %v1191_v0 }
  0x68   :  { %888 = vmatprep.subr.bf16.mxu1 %v1191_v0 }
  0x6a   :  { %737 = vmatpush1.bf16.msra.mxu0 %v1171_v5 }
  0x6b   :  { %889 = vmatpush1.bf16.msra.mxu1 %v1172_v6  ;;  %738 = vmatprep.subr.bf16.mxu0 %v1191_v0 }
  0x6c   :  { %890 = vmatprep.subr.bf16.mxu1 %v1191_v0 }
  0x6e   :  { %739 = vmatpush1.bf16.msra.mxu0 %v1173_v7 }
  0x6f   :  { %891 = vmatpush1.bf16.msra.mxu1 %v1174_v8  ;;  %740 = vmatprep.subr.bf16.mxu0 %v1191_v0 }
  0x70   :  { %892 = vmatprep.subr.bf16.mxu1 %v1191_v0 }
  0x72   :  { %741 = vmatpush1.bf16.msra.mxu0 %v1175_v9 }
  0x73   :  { %893 = vmatpush1.bf16.msra.mxu1 %v1176_v10  ;;  %742 = vmatprep.subr.bf16.mxu0 %v1191_v0 }
  0x74   :  { %894 = vmatprep.subr.bf16.mxu1 %v1191_v0 }
  0x76   :  { %743 = vmatpush1.bf16.msra.mxu0 %v1177_v11 }
  0x77   :  { %895 = vmatpush1.bf16.msra.mxu1 %v1178_v12  ;;  %744 = vmatprep.subr.bf16.mxu0 %v1191_v0 }
  0x78   :  { %896 = vmatprep.subr.bf16.mxu1 %v1191_v0 }
  0x7a   :  { %745 = vmatpush1.bf16.msra.mxu0 %v1179_v13 }
  0x7b   :  { %897 = vmatpush1.bf16.msra.mxu1 %v1180_v14  ;;  %746 = vmatprep.subr.bf16.mxu0 %v1191_v0 }
  0x7c   :  { %898 = vmatprep.subr.bf16.mxu1 %v1191_v0 }
  0x7e   :  { %747 = vmatpush1.bf16.msra.mxu0 %v1181_v15 }
  0x7f   :  { %899 = vmatpush1.bf16.msra.mxu1 %v1182_v16  ;;  %748 = vmatprep.subr.bf16.mxu0 %v1191_v0 }
  0x80   :  { %900 = vmatprep.subr.bf16.mxu1 %v1191_v0 }
  0x82   :  { %749 = vmatpush1.bf16.msra.mxu0 %v1183_v17 }
  0x83   :  { %901 = vmatpush1.bf16.msra.mxu1 %v1184_v18  ;;  %750 = vmatprep.subr.bf16.mxu0 %v1191_v0 }
  0x84   :  { %902 = vmatprep.subr.bf16.mxu1 %v1191_v0 }
  0x86   :  { %751 = vmatpush1.bf16.msra.mxu0 %v1185_v19 }
  0x87   :  { %903 = vmatpush1.bf16.msra.mxu1 %v1186_v20  ;;  %752 = vmatprep.subr.bf16.mxu0 %v1191_v0 }
  0x88   :  { %904 = vmatprep.subr.bf16.mxu1 %v1191_v0 }
  0x8a   :  { %753 = vmatpush1.bf16.msra.mxu0 %v1187_v21 }
  0x8b   :  { %905 = vmatpush1.bf16.msra.mxu1 %v1188_v22  ;;  %754 = vmatprep.subr.bf16.mxu0 %v1191_v0 }
  0x8c   :  { %906 = vmatprep.subr.bf16.mxu1 %v1191_v0  ;;  %v15_v0 = vld [vmem:[%s1563_s2] sm:$0x1] }
  0x8e   :  { %755 = vmatpush1.bf16.msra.mxu0 %v1189_v23 }
  0x8f   :  { %907 = vmatpush1.bf16.msra.mxu1 %v1190_v24 }
  0x91   :  { %765 = vmatmul.mubr.bf16.vlgmr.msra.gmra.mrb[8].mxu0 %v1334_v34 }
  0x92   :  { %917 = vmatmul.mubr.bf16.vlgmr.msra.gmra.mrb[8].mxu1 %v806_v25 }
 0x104   :  { %v192_v26 = vpop.f32.mrb[0].mxu0 }
 0x105   :  { %v307_v27 = vpop.f32.mrb[0].mxu1  ;;  %v194_v28 = vpop.f32.mrb[1].mxu0 }
 0x106   :  { %v308_v29 = vadd.f32 %v307_v27, %v192_v26  ;;  %v309_v30 = vpop.f32.mrb[1].mxu1  ;;  %v195_v31 = vpop.f32.mrb[2].mxu0 }
 0x107   :  { %v310_v32 = vpop.f32.mrb[2].mxu1  ;;  %v196_v33 = vpop.f32.mrb[3].mxu0 }
 0x108   :  { %v311_v35 = vpop.f32.mrb[3].mxu1 }
 0x134   :  { %v460_v36 = vpop.f32.mrb[4].mxu0 }
 0x135   :  { %v466_v37 = vadd.f32 %v460_v36, %v308_v29  ;;  %v651_v38 = vpop.f32.mrb[4].mxu1  ;;  %v462_v39 = vpop.f32.mrb[5].mxu0 }
 0x136   :  { %v653_v40 = vpop.f32.mrb[5].mxu1  ;;  %v463_v34 = vpop.f32.mrb[6].mxu0 }
 0x137   :  { %v467_v41 = vadd.f32 %v466_v37, %v15_v0  ;;  %v654_v42 = vpop.f32.mrb[6].mxu1  ;;  %v464_v43 = vpop.f32.mrb[7].mxu0 }
 0x138   :  { %v655_v44 = vpop.f32.mrb[7].mxu1 }
 0x139   :  { %v468_v45 = vmax.f32 %v467_v41, 0.0 }
 0x13b   :  { %v469_v48 = vpack.c.bf16 %v468_v45, %v468_v45 }
 0x13d   :  { %v474_v49 = vsel %vm1541_vm3, %v469_v48, %v473_v47 }
 0x13e   :  { %475 = vst [vmem:[%s1564_s3] sm:$0x1] %v474_v49 }
 0x164   :  { %v766_v50 = vpop.f32.mrb[8].mxu0 }
 0x165   :  { %v767_v51 = vadd.f32 %v766_v50, %v651_v38  ;;  %v918_v52 = vpop.f32.mrb[8].mxu1  ;;  %v768_v53 = vpop.f32.mrb[9].mxu0 }
 0x166   :  { %v920_v54 = vpop.f32.mrb[9].mxu1  ;;  %v769_v55 = vpop.f32.mrb[10].mxu0 }
 0x167   :  { %v924_v56 = vadd.f32 %v918_v52, %v767_v51  ;;  %v921_v57 = vpop.f32.mrb[10].mxu1  ;;  %v770_v58 = vpop.f32.mrb[11].mxu0 }
 0x168   :  { %v922_v59 = vpop.f32.mrb[11].mxu1 }
 0x169   :  { %v925_v60 = vadd.f32 %v924_v56, %v15_v0 }
 0x16b   :  { %v926_v61 = vmax.f32 %v925_v60, 0.0 }
 0x16d   :  { %v927_v63 = vpack.c.bf16 %v926_v61, %v926_v61 }
 0x16f   :  { %v930_v1 = vsel %vm1541_vm3, %v927_v63, %v1116_v62 }
 0x170   :  { %1117 = vst [vmem:[%s1564_s3 + $0x1] sm:$0x1] %v930_v1 }

// kernel: _dqn_forward.5
= control target key start
LH: loop header
LB: loop body
LE: loop exit
PB: predicated region body
PF: predicated region fallthrough
CT: control target
= control target key end

     0   :  { %v2638_v36 = vmov 1983009808   ;;  %v150_v38 = vlaneseq  ;;  %vm1031_vm0 = vcmask 1041408   ;;  %vm1032_vm1 = vsmask.f32 1280  ;;  %s3659_s1 = inlined_call_operand.vmem [shape: bf16[2,512,192], index: 1, kind: input, shape index: {}]   ;;  %s3660_s0 = inlined_call_operand.vmem [shape: bf16[2,4,512], index: 0, kind: input, shape index: {}]   ;;  %s3661_s2 = inlined_call_operand.vmem [shape: f32[1,192], index: 2, kind: input, shape index: {}]   ;;  %s3662_s3 = inlined_call_operand.vmem [shape: bf16[2,3,192], index: 3, kind: output, shape index: {}]  }
   0x1   :  { %v2662_v0 = vld [vmem:[%s3659_s1 + $0x204] ss:$8 sps:$4 sm:$0xff]   ;;  %v2673_v2 = vld [vmem:[%s3659_s1 + $0x200] ss:$8 sps:$4 sm:$0xff]   ;;  %v2684_v4 = vld [vmem:[%s3659_s1 + $0x214] ss:$8 sps:$4 sm:$0xff]   ;;  %v148_v37 = vunpack.c.l.s4 %v2638_v36 }
   0x2   :  { %v2667_v1 = vld [vmem:[%s3659_s1 + $0x304] ss:$8 sps:$4 sm:$0xff]   ;;  %515 = vmatprep.subr.bf16.mxu0 %v2662_v0  ;;  %v2678_v3 = vld [vmem:[%s3659_s1 + $0x300] ss:$8 sps:$4 sm:$0xff]   ;;  %v2691_v5 = vld [vmem:[%s3659_s1 + $0x314] ss:$8 sps:$4 sm:$0xff]  }
   0x3   :  { %556 = vmatprep.subr.bf16.mxu1 %v2667_v1  ;;  %516 = vmatpush1.bf16.msra.mxu0 %v2673_v2  ;;  %v2696_v6 = vld [vmem:[%s3659_s1 + $0x210] ss:$8 sps:$4 sm:$0xff]   ;;  %v2708_v8 = vld [vmem:[%s3659_s1 + $0x224] ss:$8 sps:$4 sm:$0xff]   ;;  %v2718_v10 = vld [vmem:[%s3659_s1 + $0x220] ss:$8 sps:$4 sm:$0xff]   ;;  %v149_v42 = vunpack.c.0.s8 %v148_v37 }
   0x4   :  { %557 = vmatpush1.bf16.msra.mxu1 %v2678_v3  ;;  %517 = vmatprep.subr.bf16.mxu0 %v2684_v4  ;;  %v2702_v7 = vld [vmem:[%s3659_s1 + $0x310] ss:$8 sps:$4 sm:$0xff]   ;;  %v2713_v9 = vld [vmem:[%s3659_s1 + $0x324] ss:$8 sps:$4 sm:$0xff]   ;;  %v2723_v11 = vld [vmem:[%s3659_s1 + $0x320] ss:$8 sps:$4 sm:$0xff]  }
   0x5   :  { %558 = vmatprep.subr.bf16.mxu1 %v2691_v5  ;;  %v2730_v12 = vld [vmem:[%s3659_s1 + $0x234] ss:$8 sps:$4 sm:$0xff]   ;;  %v2742_v14 = vld [vmem:[%s3659_s1 + $0x230] ss:$8 sps:$4 sm:$0xff]   ;;  %v2754_v16 = vld [vmem:[%s3659_s1 + $0x244] ss:$8 sps:$4 sm:$0xff]  }
   0x6   :  { %v2737_v13 = vld [vmem:[%s3659_s1 + $0x334] ss:$8 sps:$4 sm:$0xff]   ;;  %v2749_v15 = vld [vmem:[%s3659_s1 + $0x330] ss:$8 sps:$4 sm:$0xff]   ;;  %v2761_v17 = vld [vmem:[%s3659_s1 + $0x344] ss:$8 sps:$4 sm:$0xff]  }
   0x7   :  { %518 = vmatpush1.bf16.msra.mxu0 %v2696_v6  ;;  %v2766_v18 = vld [vmem:[%s3659_s1 + $0x240] ss:$8 sps:$4 sm:$0xff]   ;;  %v2778_v20 = vld [vmem:[%s3659_s1 + $0x254] ss:$8 sps:$4 sm:$0xff]   ;;  %v2790_v22 = vld [vmem:[%s3659_s1 + $0x250] ss:$8 sps:$4 sm:$0xff]  }
   0x8   :  { %559 = vmatpush1.bf16.msra.mxu1 %v2702_v7  ;;  %519 = vmatprep.subr.bf16.mxu0 %v2708_v8  ;;  %v2771_v19 = vld [vmem:[%s3659_s1 + $0x340] ss:$8 sps:$4 sm:$0xff]   ;;  %v2785_v21 = vld [vmem:[%s3659_s1 + $0x354] ss:$8 sps:$4 sm:$0xff]   ;;  %v2797_v23 = vld [vmem:[%s3659_s1 + $0x350] ss:$8 sps:$4 sm:$0xff]  }
   0x9   :  { %560 = vmatprep.subr.bf16.mxu1 %v2713_v9  ;;  %v2802_v24 = vld [vmem:[%s3659_s1 + $0x264] ss:$8 sps:$4 sm:$0xff]   ;;  %v2814_v26 = vld [vmem:[%s3659_s1 + $0x260] ss:$8 sps:$4 sm:$0xff]   ;;  %v2826_v28 = vld [vmem:[%s3659_s1 + $0x274] ss:$8 sps:$4 sm:$0xff]  }
   0xa   :  { %v2809_v25 = vld [vmem:[%s3659_s1 + $0x364] ss:$8 sps:$4 sm:$0xff]   ;;  %v2819_v27 = vld [vmem:[%s3659_s1 + $0x360] ss:$8 sps:$4 sm:$0xff]   ;;  %v2833_v29 = vld [vmem:[%s3659_s1 + $0x374] ss:$8 sps:$4 sm:$0xff]  }
   0xb   :  { %520 = vmatpush1.bf16.msra.mxu0 %v2718_v10  ;;  %v2838_v30 = vld [vmem:[%s3659_s1 + $0x270] ss:$8 sps:$4 sm:$0xff]   ;;  %v2850_v32 = vld [vmem:[%s3659_s1 + $0x284] ss:$8 sps:$4 sm:$0xff]   ;;  %v2862_v34 = vld [vmem:[%s3659_s1 + $0x280] ss:$8 sps:$4 sm:$0xff]  }
   0xc   :  { %561 = vmatpush1.bf16.msra.mxu1 %v2723_v11  ;;  %521 = vmatprep.subr.bf16.mxu0 %v2730_v12  ;;  %v2845_v31 = vld [vmem:[%s3659_s1 + $0x370] ss:$8 sps:$4 sm:$0xff]   ;;  %v2857_v33 = vld [vmem:[%s3659_s1 + $0x384] ss:$8 sps:$4 sm:$0xff]   ;;  %v2867_v35 = vld [vmem:[%s3659_s1 + $0x380] ss:$8 sps:$4 sm:$0xff]  }
   0xd   :  { %562 = vmatprep.subr.bf16.mxu1 %v2737_v13  ;;  %v2874_v39 = vld [vmem:[%s3659_s1 + $0x294] ss:$8 sps:$4 sm:$0xff]   ;;  %v2886_v41 = vld [vmem:[%s3659_s1 + $0x290] ss:$8 sps:$4 sm:$0xff]   ;;  %v2888_v43 = vshrl.u32 %v150_v38, 7  ;;  %v15_v52 = vld [vmem:[%s3660_s0] sm:$0xff] }
   0xe   :  { %v2881_v40 = vld [vmem:[%s3659_s1 + $0x394] ss:$8 sps:$4 sm:$0xff]   ;;  %v2895_v44 = vld [vmem:[%s3659_s1 + $0x390] ss:$8 sps:$4 sm:$0xff]   ;;  %v2900_v45 = vld [vmem:[%s3659_s1 + $0x2a4] ss:$8 sps:$4 sm:$0xff]   ;;  %v146_v55 = vcombine.high %v15_v52, %v15_v52 }
   0xf   :  { %522 = vmatpush1.bf16.msra.mxu0 %v2742_v14  ;;  %3745 = vst [vmem:[#allocation2_spill] sm:$0xff] %v2888_v43  ;;  %v2907_v46 = vld [vmem:[%s3659_s1 + $0x3a4] ss:$8 sps:$4 sm:$0xff]   ;;  %v2912_v47 = vld [vmem:[%s3659_s1 + $0x2a0] ss:$8 sps:$4 sm:$0xff]   ;;  %v2920_v49 = vsub.s32 %v149_v42, %v2888_v43  ;;  %vm1034_vm2 = vcmask 519170   ;;  %vm3623_vm4 = vmand %vm1031_vm0, %vm1032_vm1 }
  0x10   :  { %563 = vmatpush1.bf16.msra.mxu1 %v2749_v15  ;;  %523 = vmatprep.subr.bf16.mxu0 %v2754_v16  ;;  %v2917_v48 = vld [vmem:[%s3659_s1 + $0x3a0] ss:$8 sps:$4 sm:$0xff]   ;;  %v2927_v50 = vld [vmem:[%s3659_s1 + $0x2b4] ss:$8 sps:$4 sm:$0xff]   ;;  %v2942_v53 = vld [vmem:[%s3659_s1 + $0x2b0] ss:$8 sps:$4 sm:$0xff]  }
  0x11   :  { %564 = vmatprep.subr.bf16.mxu1 %v2761_v17  ;;  %3746 = vst [vmem:[#allocation3_spill] sm:$0xff] %v2920_v49  ;;  %v2934_v51 = vld [vmem:[%s3659_s1 + $0x3b4] ss:$8 sps:$4 sm:$0xff]   ;;  %3748 = vst [vmem:[#allocation5_spill] sm:$0xff] %v2942_v53  ;;  %v2945_v54 = vrot.slane %v15_v52, %v2920_v49  ;;  %v2952_v56 = vld [vmem:[%s3659_s1 + $0x3b0] ss:$8 sps:$4 sm:$0xff]   ;;  %v2971_v60 = vrot.slane %v146_v55, %v2920_v49 }
  0x12   :  { %3747 = vst [vmem:[#allocation4_spill] sm:$0xff] %v2934_v51  ;;  %3749 = vst [vmem:[#allocation6_spill] sm:$0xff] %v2952_v56  ;;  %v2957_v57 = vld [vmem:[%s3659_s1 + $0x2c4] ss:$8 sps:$4 sm:$0xff]   ;;  %v2976_v61 = vld [vmem:[%s3659_s1 + $0x2c0] ss:$8 sps:$4 sm:$0xff]  }
  0x13   :  { %524 = vmatpush1.bf16.msra.mxu0 %v2766_v18  ;;  %3750 = vst [vmem:[#allocation7_spill] sm:$0xff] %v2957_v57  ;;  %v2964_v58 = vld [vmem:[%s3659_s1 + $0x3c4] ss:$8 sps:$4 sm:$0xff]   ;;  %v2968_v59 = vcombine.high %v2945_v54, %v2945_v54  ;;  %3752 = vst [vmem:[#allocation9_spill] sm:$0xff] %v2976_v61  ;;  %v2981_v62 = vld [vmem:[%s3659_s1 + $0x3c0] ss:$8 sps:$4 sm:$0xff]   ;;  %v2987_v37 = vcombine.high %v2971_v60, %v2971_v60 }
  0x14   :  { %565 = vmatpush1.bf16.msra.mxu1 %v2771_v19  ;;  %525 = vmatprep.subr.bf16.mxu0 %v2778_v20  ;;  %3751 = vst [vmem:[#allocation8_spill] sm:$0xff] %v2964_v58  ;;  %3753 = vst [vmem:[#allocation10_spill] sm:$0xff] %v2981_v62  ;;  %v2994_v38 = vld [vmem:[%s3659_s1 + $0x2d4] ss:$8 sps:$4 sm:$0xff]   ;;  %vm1035_vm3 = vsmask.f32 3328 }
  0x15   :  { %566 = vmatprep.subr.bf16.mxu1 %v2785_v21  ;;  %v171_v63 = vshrl.u32 %v2968_v59, 16  ;;  %v173_v36 = vshll.u32 %v2968_v59, 16  ;;  %3754 = vst [vmem:[#allocation11_spill] sm:$0xff] %v2994_v38  ;;  %v3001_v42 = vld [vmem:[%s3659_s1 + $0x3d4] ss:$8 sps:$4 sm:$0xff]   ;;  %v185_v55 = vshrl.u32 %v2987_v37, 16  ;;  %vm3627_vm5 = vmand %vm1034_vm2, %vm1035_vm3 }
  0x16   :  { %3755 = vst [vmem:[#allocation12_spill] sm:$0xff] %v3001_v42  ;;  %v187_v43 = vshll.u32 %v2987_v37, 16  ;;  %vm1037_vm6 = vmor %vm3627_vm5, %vm3623_vm4 }
  0x17   :  { %526 = vmatpush1.bf16.msra.mxu0 %v2790_v22  ;;  %v175_v52 = vrot.slane %v173_v36, 1  ;;  %v3020_v36 = vld [vmem:[%s3659_s1 + $0x2e4] ss:$8 sps:$4 sm:$0xff]  }
  0x18   :  { %567 = vmatpush1.bf16.msra.mxu1 %v2797_v23  ;;  %527 = vmatprep.subr.bf16.mxu0 %v2802_v24  ;;  %3758 = vst [vmem:[#allocation15_spill] sm:$0xff] %v3020_v36 }
  0x19   :  { %568 = vmatprep.subr.bf16.mxu1 %v2809_v25 }
  0x1b   :  { %528 = vmatpush1.bf16.msra.mxu0 %v2814_v26 }
  0x1c   :  { %569 = vmatpush1.bf16.msra.mxu1 %v2819_v27  ;;  %529 = vmatprep.subr.bf16.mxu0 %v2826_v28 }
  0x1d   :  { %570 = vmatprep.subr.bf16.mxu1 %v2833_v29 }
  0x1f   :  { %530 = vmatpush1.bf16.msra.mxu0 %v2838_v30 }
  0x20   :  { %571 = vmatpush1.bf16.msra.mxu1 %v2845_v31  ;;  %531 = vmatprep.subr.bf16.mxu0 %v2850_v32 }
  0x21   :  { %572 = vmatprep.subr.bf16.mxu1 %v2857_v33 }
  0x23   :  { %532 = vmatpush1.bf16.msra.mxu0 %v2862_v34 }
  0x24   :  { %573 = vmatpush1.bf16.msra.mxu1 %v2867_v35  ;;  %533 = vmatprep.subr.bf16.mxu0 %v2874_v39 }
  0x25   :  { %574 = vmatprep.subr.bf16.mxu1 %v2881_v40 }
  0x27   :  { %534 = vmatpush1.bf16.msra.mxu0 %v2886_v41 }
  0x28   :  { %575 = vmatpush1.bf16.msra.mxu1 %v2895_v44  ;;  %535 = vmatprep.subr.bf16.mxu0 %v2900_v45 }
  0x29   :  { %576 = vmatprep.subr.bf16.mxu1 %v2907_v46 }
  0x2b   :  { %536 = vmatpush1.bf16.msra.mxu0 %v2912_v47 }
  0x2c   :  { %577 = vmatpush1.bf16.msra.mxu1 %v2917_v48  ;;  %537 = vmatprep.subr.bf16.mxu0 %v2927_v50 }
  0x2d   :  { %578 = vmatprep.subr.bf16.mxu1 %v2934_v51  ;;  %v3027_v51 = vld [vmem:[%s3659_s1 + $0x3e4] ss:$8 sps:$4 sm:$0xff]  }
  0x2e   :  { %3759 = vst [vmem:[#allocation16_spill] sm:$0xff] %v3027_v51 }
  0x2f   :  { %538 = vmatpush1.bf16.msra.mxu0 %v2942_v53  ;;  %v189_v53 = vrot.slane %v187_v43, 1  ;;  %v3032_v43 = vld [vmem:[%s3659_s1 + $0x2e0] ss:$8 sps:$4 sm:$0xff]  }
  0x30   :  { %579 = vmatpush1.bf16.msra.mxu1 %v2952_v56  ;;  %539 = vmatprep.subr.bf16.mxu0 %v2957_v57  ;;  %v3008_v56 = vld [vmem:[%s3659_s1 + $0x2d0] ss:$8 sps:$4 sm:$0xff]   ;;  %3760 = vst [vmem:[#allocation17_spill] sm:$0xff] %v3032_v43 }
  0x31   :  { %580 = vmatprep.subr.bf16.mxu1 %v2964_v58  ;;  %3756 = vst [vmem:[#allocation13_spill] sm:$0xff] %v3008_v56  ;;  %v3013_v57 = vld [vmem:[%s3659_s1 + $0x3d0] ss:$8 sps:$4 sm:$0xff]   ;;  %v176_v58 = vor.u32 %v175_v52, %v171_v63  ;;  %v190_v63 = vor.u32 %v189_v53, %v185_v55  ;;  %v3037_v52 = vld [vmem:[%s3659_s1 + $0x3e0] ss:$8 sps:$4 sm:$0xff]  }
  0x32   :  { %3757 = vst [vmem:[#allocation14_spill] sm:$0xff] %v3013_v57  ;;  %3761 = vst [vmem:[#allocation18_spill] sm:$0xff] %v3037_v52  ;;  %v3046_v53 = vld [vmem:[%s3659_s1 + $0x2f4] ss:$8 sps:$4 sm:$0xff]   ;;  %v3058_v55 = vld [vmem:[%s3659_s1 + $0x2f0] ss:$8 sps:$4 sm:$0xff]  }
  0x33   :  { %540 = vmatpush1.bf16.msra.mxu0 %v2976_v61  ;;  %547 = vmatprep.mubr.bf16.mxu0 %v176_v58  ;;  %v3053_v58 = vld [vmem:[%s3659_s1 + $0x3f4] ss:$8 sps:$4 sm:$0xff]   ;;  %3763 = vst [vmem:[#allocation20_spill] sm:$0xff] %v3058_v55 }
  0x34   :  { %581 = vmatpush1.bf16.msra.mxu1 %v2981_v62  ;;  %541 = vmatprep.subr.bf16.mxu0 %v2994_v38  ;;  %v180_v38 = vshll.u32 %v2971_v60, 16  ;;  %3762 = vst [vmem:[#allocation19_spill] sm:$0xff] %v3053_v58  ;;  %v3072_v62 = vld [vmem:[%s3659_s1 + $0x4] ss:$8 sps:$4 sm:$0xff]  }
  0x35   :  { %582 = vmatprep.subr.bf16.mxu1 %v3001_v42  ;;  %588 = vmatprep.mubr.bf16.mxu1 %v190_v63  ;;  %v166_v42 = vshll.u32 %v2945_v54, 16  ;;  %v3063_v63 = vld [vmem:[%s3659_s1 + $0x3f0] ss:$8 sps:$4 sm:$0xff]   ;;  %3765 = vst [vmem:[#allocation22_spill] sm:$0xff] %v3072_v62 }
  0x36   :  { %3764 = vst [vmem:[#allocation21_spill] sm:$0xff] %v3063_v63 }
  0x37   :  { %542 = vmatpush1.bf16.msra.mxu0 %v3008_v56  ;;  %v182_v56 = vrot.slane %v180_v38, 1 }
  0x38   :  { %583 = vmatpush1.bf16.msra.mxu1 %v3013_v57  ;;  %543 = vmatprep.subr.bf16.mxu0 %v3020_v36  ;;  %v164_v57 = vshrl.u32 %v2945_v54, 16  ;;  %v168_v36 = vrot.slane %v166_v42, 1  ;;  %v3079_v42 = vld [vmem:[%s3659_s1 + $0x104] ss:$8 sps:$4 sm:$0xff]  }
  0x39   :  { %584 = vmatprep.subr.bf16.mxu1 %v3027_v51  ;;  %v178_v51 = vshrl.u32 %v2971_v60, 16  ;;  %3766 = vst [vmem:[#allocation23_spill] sm:$0xff] %v3079_v42 }
  0x3a   :  { %v169_v61 = vor.u32 %v168_v36, %v164_v57  ;;  %v3113_v57 = vld [vmem:[%s3659_s1 + $0x110] ss:$8 sps:$4 sm:$0xff]   ;;  %v3120_v36 = vld [vmem:[%s3659_s1 + $0x24] ss:$8 sps:$4 sm:$0xff]  }
  0x3b   :  { %544 = vmatpush1.bf16.msra.mxu0 %v3032_v43  ;;  %v183_v38 = vor.u32 %v182_v56, %v178_v51  ;;  %v3089_v43 = vld [vmem:[%s3659_s1 + $0x100] ss:$8 sps:$4 sm:$0xff]   ;;  %v3103_v51 = vld [vmem:[%s3659_s1 + $0x114] ss:$8 sps:$4 sm:$0xff]   ;;  %v3108_v56 = vld [vmem:[%s3659_s1 + $0x10] ss:$8 sps:$4 sm:$0xff]  }
  0x3c   :  { %585 = vmatpush1.bf16.msra.mxu1 %v3037_v52  ;;  %545 = vmatprep.subr.bf16.mxu0 %v3046_v53  ;;  %v3084_v52 = vld [vmem:[%s3659_s1] ss:$8 sps:$4 sm:$0xff]   ;;  %3768 = vst [vmem:[#allocation25_spill] sm:$0xff] %v3089_v43  ;;  %3770 = vst [vmem:[#allocation27_spill] sm:$0xff] %v3103_v51 }
  0x3d   :  { %586 = vmatprep.subr.bf16.mxu1 %v3053_v58  ;;  %3767 = vst [vmem:[#allocation24_spill] sm:$0xff] %v3084_v52  ;;  %v3096_v58 = vld [vmem:[%s3659_s1 + $0x14] ss:$8 sps:$4 sm:$0xff]   ;;  %3771 = vst [vmem:[#allocation28_spill] sm:$0xff] %v3108_v56 }
  0x3e   :  { %3769 = vst [vmem:[#allocation26_spill] sm:$0xff] %v3096_v58  ;;  %3772 = vst [vmem:[#allocation29_spill] sm:$0xff] %v3113_v57 }
  0x3f   :  { %546 = vmatpush1.bf16.msra.mxu0 %v3058_v55  ;;  %3773 = vst [vmem:[#allocation30_spill] sm:$0xff] %v3120_v36 }
  0x40   :  { %587 = vmatpush1.bf16.msra.mxu1 %v3063_v63  ;;  %921 = vmatprep.subr.bf16.mxu0 %v3072_v62 }
  0x41   :  { %962 = vmatprep.subr.bf16.mxu1 %v3079_v42 }
  0x42   :  { %548 = vmatmul.mubr.bf16.vlgmr.msra.gmra.mrb[0].mxu0 %v169_v61  ;;  %v3127_v61 = vld [vmem:[%s3659_s1 + $0x124] ss:$8 sps:$4 sm:$0xff]  }
  0x43   :  { %589 = vmatmul.mubr.bf16.vlgmr.msra.gmra.mrb[0].mxu1 %v183_v38  ;;  %922 = vmatpush1.bf16.msra.mxu0 %v3084_v52  ;;  %3774 = vst [vmem:[#allocation31_spill] sm:$0xff] %v3127_v61  ;;  %v3134_v38 = vld [vmem:[%s3659_s1 + $0x20] ss:$8 sps:$4 sm:$0xff]  }
  0x44   :  { %963 = vmatpush1.bf16.msra.mxu1 %v3089_v43  ;;  %923 = vmatprep.subr.bf16.mxu0 %v3096_v58  ;;  %3775 = vst [vmem:[#allocation32_spill] sm:$0xff] %v3134_v38  ;;  %v3139_v58 = vld [vmem:[%s3659_s1 + $0x120] ss:$8 sps:$4 sm:$0xff]  }
  0x45   :  { %964 = vmatprep.subr.bf16.mxu1 %v3103_v51  ;;  %953 = vmatprep.mubr.bf16.mxu0 %v2968_v59  ;;  %3776 = vst [vmem:[#allocation33_spill] sm:$0xff] %v3139_v58  ;;  %v3146_v59 = vld [vmem:[%s3659_s1 + $0x34] ss:$8 sps:$4 sm:$0xff]  }
  0x46   :  { %994 = vmatprep.mubr.bf16.mxu1 %v2987_v37  ;;  %3777 = vst [vmem:[#allocation34_spill] sm:$0xff] %v3146_v59  ;;  %v3153_v37 = vld [vmem:[%s3659_s1 + $0x134] ss:$8 sps:$4 sm:$0xff]  }
  0x47   :  { %924 = vmatpush1.bf16.msra.mxu0 %v3108_v56  ;;  %3778 = vst [vmem:[#allocation35_spill] sm:$0xff] %v3153_v37  ;;  %v3158_v56 = vld [vmem:[%s3659_s1 + $0x30] ss:$8 sps:$4 sm:$0xff]  }
  0x48   :  { %965 = vmatpush1.bf16.msra.mxu1 %v3113_v57  ;;  %925 = vmatprep.subr.bf16.mxu0 %v3120_v36  ;;  %3779 = vst [vmem:[#allocation36_spill] sm:$0xff] %v3158_v56  ;;  %v3163_v57 = vld [vmem:[%s3659_s1 + $0x130] ss:$8 sps:$4 sm:$0xff]   ;;  %v3177_v36 = vld [vmem:[%s3659_s1 + $0x144] ss:$8 sps:$4 sm:$0xff]  }
  0x49   :  { %966 = vmatprep.subr.bf16.mxu1 %v3127_v61  ;;  %3780 = vst [vmem:[#allocation37_spill] sm:$0xff] %v3163_v57  ;;  %v3170_v61 = vld [vmem:[%s3659_s1 + $0x44] ss:$8 sps:$4 sm:$0xff]   ;;  %3782 = vst [vmem:[#allocation39_spill] sm:$0xff] %v3177_v36 }
  0x4a   :  { %3781 = vst [vmem:[#allocation38_spill] sm:$0xff] %v3170_v61 }
  0x4b   :  { %926 = vmatpush1.bf16.msra.mxu0 %v3134_v38  ;;  %v3182_v38 = vld [vmem:[%s3659_s1 + $0x40] ss:$8 sps:$4 sm:$0xff]  }
  0x4c   :  { %967 = vmatpush1.bf16.msra.mxu1 %v3139_v58  ;;  %927 = vmatprep.subr.bf16.mxu0 %v3146_v59  ;;  %3783 = vst [vmem:[#allocation40_spill] sm:$0xff] %v3182_v38  ;;  %v3187_v58 = vld [vmem:[%s3659_s1 + $0x140] ss:$8 sps:$4 sm:$0xff]   ;;  %v3201_v59 = vld [vmem:[%s3659_s1 + $0x154] ss:$8 sps:$4 sm:$0xff]  }
  0x4d   :  { %968 = vmatprep.subr.bf16.mxu1 %v3153_v37  ;;  %3784 = vst [vmem:[#allocation41_spill] sm:$0xff] %v3187_v58  ;;  %v3194_v37 = vld [vmem:[%s3659_s1 + $0x54] ss:$8 sps:$4 sm:$0xff]   ;;  %3786 = vst [vmem:[#allocation43_spill] sm:$0xff] %v3201_v59 }
  0x4e   :  { %3785 = vst [vmem:[#allocation42_spill] sm:$0xff] %v3194_v37 }
  0x4f   :  { %928 = vmatpush1.bf16.msra.mxu0 %v3158_v56  ;;  %v3206_v56 = vld [vmem:[%s3659_s1 + $0x50] ss:$8 sps:$4 sm:$0xff]  }
  0x50   :  { %969 = vmatpush1.bf16.msra.mxu1 %v3163_v57  ;;  %929 = vmatprep.subr.bf16.mxu0 %v3170_v61  ;;  %3787 = vst [vmem:[#allocation44_spill] sm:$0xff] %v3206_v56  ;;  %v3211_v57 = vld [vmem:[%s3659_s1 + $0x150] ss:$8 sps:$4 sm:$0xff]   ;;  %v3225_v61 = vld [vmem:[%s3659_s1 + $0x164] ss:$8 sps:$4 sm:$0xff]  }
  0x51   :  { %970 = vmatprep.subr.bf16.mxu1 %v3177_v36  ;;  %3788 = vst [vmem:[#allocation45_spill] sm:$0xff] %v3211_v57  ;;  %v3218_v36 = vld [vmem:[%s3659_s1 + $0x64] ss:$8 sps:$4 sm:$0xff]   ;;  %3790 = vst [vmem:[#allocation47_spill] sm:$0xff] %v3225_v61 }
  0x52   :  { %3789 = vst [vmem:[#allocation46_spill] sm:$0xff] %v3218_v36 }
  0x53   :  { %930 = vmatpush1.bf16.msra.mxu0 %v3182_v38 }
  0x54   :  { %971 = vmatpush1.bf16.msra.mxu1 %v3187_v58  ;;  %931 = vmatprep.subr.bf16.mxu0 %v3194_v37  ;;  %v3232_v58 = vld [vmem:[%s3659_s1 + $0x60] ss:$8 sps:$4 sm:$0xff]  }
  0x55   :  { %972 = vmatprep.subr.bf16.mxu1 %v3201_v59  ;;  %3791 = vst [vmem:[#allocation48_spill] sm:$0xff] %v3232_v58  ;;  %v3237_v37 = vld [vmem:[%s3659_s1 + $0x160] ss:$8 sps:$4 sm:$0xff]  }
  0x56   :  { %3792 = vst [vmem:[#allocation49_spill] sm:$0xff] %v3237_v37  ;;  %v2247_v59 = vld [vmem:[%s3660_s0 + $0x8] sm:$0xff] }
  0x57   :  { %932 = vmatpush1.bf16.msra.mxu0 %v3206_v56  ;;  %v3244_v56 = vld [vmem:[%s3659_s1 + $0x74] ss:$8 sps:$4 sm:$0xff]   ;;  %v1172_v38 = vcombine.high %v2247_v59, %v2247_v59  ;;  %v3399_v51 = vrot.slane %v2247_v59, %v2920_v49  ;;  %v3426_v59 = vld [vmem:[%s3659_s1 + $0x1e4] ss:$8 sps:$4 sm:$0xff]  }
  0x58   :  { %973 = vmatpush1.bf16.msra.mxu1 %v3211_v57  ;;  %933 = vmatprep.subr.bf16.mxu0 %v3218_v36  ;;  %3793 = vst [vmem:[#allocation50_spill] sm:$0xff] %v3244_v56  ;;  %v3249_v57 = vld [vmem:[%s3659_s1 + $0x174] ss:$8 sps:$4 sm:$0xff]   ;;  %v3256_v36 = vld [vmem:[%s3659_s1 + $0x70] ss:$8 sps:$4 sm:$0xff]   ;;  %3822 = vst [vmem:[#allocation79_spill] sm:$0xff] %v3426_v59 }
  0x59   :  { %974 = vmatprep.subr.bf16.mxu1 %v3225_v61  ;;  %3794 = vst [vmem:[#allocation51_spill] sm:$0xff] %v3249_v57  ;;  %3795 = vst [vmem:[#allocation52_spill] sm:$0xff] %v3256_v36  ;;  %v3261_v61 = vld [vmem:[%s3659_s1 + $0x170] ss:$8 sps:$4 sm:$0xff]   ;;  %v3402_v43 = vrot.slane %v1172_v38, %v2920_v49  ;;  %v3421_v38 = vld [vmem:[%s3659_s1 + $0xe4] ss:$8 sps:$4 sm:$0xff]   ;;  %v3430_v49 = vcombine.high %v3399_v51, %v3399_v51 }
  0x5a   :  { %3796 = vst [vmem:[#allocation53_spill] sm:$0xff] %v3261_v61  ;;  %3821 = vst [vmem:[#allocation78_spill] sm:$0xff] %v3421_v38 }
  0x5b   :  { %934 = vmatpush1.bf16.msra.mxu0 %v3232_v58  ;;  %v3268_v58 = vld [vmem:[%s3659_s1 + $0x84] ss:$8 sps:$4 sm:$0xff]   ;;  %v1197_v42 = vshrl.u32 %v3430_v49, 16 }
  0x5c   :  { %975 = vmatpush1.bf16.msra.mxu1 %v3237_v37  ;;  %935 = vmatprep.subr.bf16.mxu0 %v3244_v56  ;;  %3797 = vst [vmem:[#allocation54_spill] sm:$0xff] %v3268_v58  ;;  %v3273_v37 = vld [vmem:[%s3659_s1 + $0x184] ss:$8 sps:$4 sm:$0xff]   ;;  %v3280_v56 = vld [vmem:[%s3659_s1 + $0x80] ss:$8 sps:$4 sm:$0xff]  }
  0x5d   :  { %976 = vmatprep.subr.bf16.mxu1 %v3249_v57  ;;  %3798 = vst [vmem:[#allocation55_spill] sm:$0xff] %v3273_v37  ;;  %3799 = vst [vmem:[#allocation56_spill] sm:$0xff] %v3280_v56  ;;  %v3285_v57 = vld [vmem:[%s3659_s1 + $0x180] ss:$8 sps:$4 sm:$0xff]  }
  0x5e   :  { %3800 = vst [vmem:[#allocation57_spill] sm:$0xff] %v3285_v57 }
  0x5f   :  { %936 = vmatpush1.bf16.msra.mxu0 %v3256_v36  ;;  %v3292_v36 = vld [vmem:[%s3659_s1 + $0x94] ss:$8 sps:$4 sm:$0xff]  }
  0x60   :  { %977 = vmatpush1.bf16.msra.mxu1 %v3261_v61  ;;  %937 = vmatprep.subr.bf16.mxu0 %v3268_v58  ;;  %3801 = vst [vmem:[#allocation58_spill] sm:$0xff] %v3292_v36  ;;  %v3297_v61 = vld [vmem:[%s3659_s1 + $0x194] ss:$8 sps:$4 sm:$0xff]   ;;  %v3304_v58 = vld [vmem:[%s3659_s1 + $0x90] ss:$8 sps:$4 sm:$0xff]  }
  0x61   :  { %978 = vmatprep.subr.bf16.mxu1 %v3273_v37  ;;  %3802 = vst [vmem:[#allocation59_spill] sm:$0xff] %v3297_v61  ;;  %3803 = vst [vmem:[#allocation60_spill] sm:$0xff] %v3304_v58  ;;  %v3309_v37 = vld [vmem:[%s3659_s1 + $0x190] ss:$8 sps:$4 sm:$0xff]  }
  0x62   :  { %3804 = vst [vmem:[#allocation61_spill] sm:$0xff] %v3309_v37 }
  0x63   :  { %938 = vmatpush1.bf16.msra.mxu0 %v3280_v56  ;;  %v3316_v56 = vld [vmem:[%s3659_s1 + $0xa4] ss:$8 sps:$4 sm:$0xff]  }
  0x64   :  { %979 = vmatpush1.bf16.msra.mxu1 %v3285_v57  ;;  %939 = vmatprep.subr.bf16.mxu0 %v3292_v36  ;;  %3805 = vst [vmem:[#allocation62_spill] sm:$0xff] %v3316_v56  ;;  %v3321_v57 = vld [vmem:[%s3659_s1 + $0x1a4] ss:$8 sps:$4 sm:$0xff]   ;;  %v3328_v36 = vld [vmem:[%s3659_s1 + $0xa0] ss:$8 sps:$4 sm:$0xff]  }
  0x65   :  { %980 = vmatprep.subr.bf16.mxu1 %v3297_v61  ;;  %3806 = vst [vmem:[#allocation63_spill] sm:$0xff] %v3321_v57  ;;  %3807 = vst [vmem:[#allocation64_spill] sm:$0xff] %v3328_v36  ;;  %v3333_v61 = vld [vmem:[%s3659_s1 + $0x1a0] ss:$8 sps:$4 sm:$0xff]  }
  0x66   :  { %3808 = vst [vmem:[#allocation65_spill] sm:$0xff] %v3333_v61 }
  0x67   :  { %940 = vmatpush1.bf16.msra.mxu0 %v3304_v58  ;;  %v3340_v58 = vld [vmem:[%s3659_s1 + $0xb4] ss:$8 sps:$4 sm:$0xff]  }
  0x68   :  { %981 = vmatpush1.bf16.msra.mxu1 %v3309_v37  ;;  %941 = vmatprep.subr.bf16.mxu0 %v3316_v56  ;;  %3809 = vst [vmem:[#allocation66_spill] sm:$0xff] %v3340_v58  ;;  %v3345_v37 = vld [vmem:[%s3659_s1 + $0x1b4] ss:$8 sps:$4 sm:$0xff]   ;;  %v3360_v56 = vld [vmem:[%s3659_s1 + $0x1b0] ss:$8 sps:$4 sm:$0xff]  }
  0x69   :  { %982 = vmatprep.subr.bf16.mxu1 %v3321_v57  ;;  %3810 = vst [vmem:[#allocation67_spill] sm:$0xff] %v3345_v37  ;;  %v3355_v57 = vld [vmem:[%s3659_s1 + $0xb0] ss:$8 sps:$4 sm:$0xff]   ;;  %3812 = vst [vmem:[#allocation69_spill] sm:$0xff] %v3360_v56 }
  0x6a   :  { %3811 = vst [vmem:[#allocation68_spill] sm:$0xff] %v3355_v57 }
  0x6b   :  { %942 = vmatpush1.bf16.msra.mxu0 %v3328_v36  ;;  %v3367_v36 = vld [vmem:[%s3659_s1 + $0xc4] ss:$8 sps:$4 sm:$0xff]  }
  0x6c   :  { %983 = vmatpush1.bf16.msra.mxu1 %v3333_v61  ;;  %943 = vmatprep.subr.bf16.mxu0 %v3340_v58  ;;  %3813 = vst [vmem:[#allocation70_spill] sm:$0xff] %v3367_v36  ;;  %v3372_v61 = vld [vmem:[%s3659_s1 + $0x1c4] ss:$8 sps:$4 sm:$0xff]   ;;  %v3379_v58 = vld [vmem:[%s3659_s1 + $0xc0] ss:$8 sps:$4 sm:$0xff]  }
  0x6d   :  { %984 = vmatprep.subr.bf16.mxu1 %v3345_v37  ;;  %3814 = vst [vmem:[#allocation71_spill] sm:$0xff] %v3372_v61  ;;  %3815 = vst [vmem:[#allocation72_spill] sm:$0xff] %v3379_v58  ;;  %v3384_v37 = vld [vmem:[%s3659_s1 + $0x1c0] ss:$8 sps:$4 sm:$0xff]  }
  0x6e   :  { %3816 = vst [vmem:[#allocation73_spill] sm:$0xff] %v3384_v37 }
  0x6f   :  { %944 = vmatpush1.bf16.msra.mxu0 %v3355_v57  ;;  %v3391_v57 = vld [vmem:[%s3659_s1 + $0xd4] ss:$8 sps:$4 sm:$0xff]  }
  0x70   :  { %985 = vmatpush1.bf16.msra.mxu1 %v3360_v56  ;;  %945 = vmatprep.subr.bf16.mxu0 %v3367_v36  ;;  %3817 = vst [vmem:[#allocation74_spill] sm:$0xff] %v3391_v57  ;;  %v3396_v56 = vld [vmem:[%s3659_s1 + $0x1d4] ss:$8 sps:$4 sm:$0xff]   ;;  %v3414_v36 = vld [vmem:[%s3659_s1 + $0x1d0] ss:$8 sps:$4 sm:$0xff]  }
  0x71   :  { %986 = vmatprep.subr.bf16.mxu1 %v3372_v61  ;;  %3818 = vst [vmem:[#allocation75_spill] sm:$0xff] %v3396_v56  ;;  %v3409_v61 = vld [vmem:[%s3659_s1 + $0xd0] ss:$8 sps:$4 sm:$0xff]   ;;  %3820 = vst [vmem:[#allocation77_spill] sm:$0xff] %v3414_v36 }
  0x72   :  { %3819 = vst [vmem:[#allocation76_spill] sm:$0xff] %v3409_v61 }
  0x73   :  { %946 = vmatpush1.bf16.msra.mxu0 %v3379_v58  ;;  %v1199_v58 = vshll.u32 %v3430_v49, 16 }
  0x74   :  { %987 = vmatpush1.bf16.msra.mxu1 %v3384_v37  ;;  %947 = vmatprep.subr.bf16.mxu0 %v3391_v57  ;;  %v3434_v37 = vcombine.high %v3402_v43, %v3402_v43  ;;  %v3446_v57 = vld [vmem:[%s3659_s1 + $0x1e0] ss:$8 sps:$4 sm:$0xff]  }
  0x75   :  { %988 = vmatprep.subr.bf16.mxu1 %v3396_v56  ;;  %v3441_v56 = vld [vmem:[%s3659_s1 + $0xe0] ss:$8 sps:$4 sm:$0xff]   ;;  %3824 = vst [vmem:[#allocation81_spill] sm:$0xff] %v3446_v57  ;;  %v1201_v62 = vrot.slane %v1199_v58, 1 }
  0x76   :  { %3823 = vst [vmem:[#allocation80_spill] sm:$0xff] %v3441_v56  ;;  %v1213_v52 = vshll.u32 %v3434_v37, 16  ;;  %v3868_v58 = vld [vmem:[#allocation47_spill] sm:$0xff] }
  0x77   :  { %948 = vmatpush1.bf16.msra.mxu0 %v3409_v61  ;;  %v3453_v61 = vld [vmem:[%s3659_s1 + $0xf4] ss:$8 sps:$4 sm:$0xff]   ;;  %v1202_v63 = vor.u32 %v1201_v62, %v1197_v42  ;;  %v3871_v42 = vld [vmem:[#allocation50_spill] sm:$0xff] }
  0x78   :  { %989 = vmatpush1.bf16.msra.mxu1 %v3414_v36  ;;  %949 = vmatprep.subr.bf16.mxu0 %v3421_v38  ;;  %v3458_v36 = vld [vmem:[%s3659_s1 + $0x1f4] ss:$8 sps:$4 sm:$0xff]   ;;  %v3472_v38 = vld [vmem:[%s3659_s1 + $0x1f0] ss:$8 sps:$4 sm:$0xff]  }
  0x79   :  { %990 = vmatprep.subr.bf16.mxu1 %v3426_v59  ;;  %v3467_v59 = vld [vmem:[%s3659_s1 + $0xf0] ss:$8 sps:$4 sm:$0xff]  }
  0x7a   :  { %v3865_v62 = vld [vmem:[#allocation44_spill] sm:$0xff] }
  0x7b   :  { %950 = vmatpush1.bf16.msra.mxu0 %v3441_v56  ;;  %v1211_v56 = vshrl.u32 %v3434_v37, 16 }
  0x7c   :  { %991 = vmatpush1.bf16.msra.mxu1 %v3446_v57  ;;  %951 = vmatprep.subr.bf16.mxu0 %v3453_v61  ;;  %v1215_v57 = vrot.slane %v1213_v52, 1  ;;  %v3866_v52 = vld [vmem:[#allocation45_spill] sm:$0xff] }
  0x7d   :  { %992 = vmatprep.subr.bf16.mxu1 %v3458_v36 }
  0x7e   :  { %v1216_v55 = vor.u32 %v1215_v57, %v1211_v56  ;;  %v3872_v56 = vld [vmem:[#allocation51_spill] sm:$0xff]  ;;  %v3873_v57 = vld [vmem:[#allocation52_spill] sm:$0xff] }
  0x7f   :  { %952 = vmatpush1.bf16.msra.mxu0 %v3467_v59 }
  0x80   :  { %993 = vmatpush1.bf16.msra.mxu1 %v3472_v38  ;;  %1541 = vmatprep.subr.bf16.mxu0 %v2662_v0  ;;  %v3825_v0 = vld [vmem:[#allocation4_spill] sm:$0xff] }
  0x81   :  { %1582 = vmatprep.subr.bf16.mxu1 %v2667_v1  ;;  %v3826_v1 = vld [vmem:[#allocation5_spill] sm:$0xff] }
  0x82   :  { %954 = vmatmul.mubr.bf16.vlgmr.msra.gmra.mrb[4].mxu0 %v2945_v54  ;;  %v3863_v54 = vld [vmem:[#allocation42_spill] sm:$0xff] }
  0x83   :  { %995 = vmatmul.mubr.bf16.vlgmr.msra.gmra.mrb[4].mxu1 %v2971_v60  ;;  %1542 = vmatpush1.bf16.msra.mxu0 %v2673_v2  ;;  %v3827_v2 = vld [vmem:[#allocation6_spill] sm:$0xff]  ;;  %v3864_v60 = vld [vmem:[#allocation43_spill] sm:$0xff] }
  0x84   :  { %1583 = vmatpush1.bf16.msra.mxu1 %v2678_v3  ;;  %1543 = vmatprep.subr.bf16.mxu0 %v2684_v4  ;;  %v3828_v3 = vld [vmem:[#allocation7_spill] sm:$0xff]  ;;  %v3829_v4 = vld [vmem:[#allocation8_spill] sm:$0xff] }
  0x85   :  { %1584 = vmatprep.subr.bf16.mxu1 %v2691_v5  ;;  %1573 = vmatprep.mubr.bf16.mxu0 %v1202_v63  ;;  %v3830_v5 = vld [vmem:[#allocation9_spill] sm:$0xff] }
  0x86   :  { %1614 = vmatprep.mubr.bf16.mxu1 %v1216_v55  ;;  %v3869_v55 = vld [vmem:[#allocation48_spill] sm:$0xff]  ;;  %v3870_v63 = vld [vmem:[#allocation49_spill] sm:$0xff] }
  0x87   :  { %1544 = vmatpush1.bf16.msra.mxu0 %v2696_v6  ;;  %v3831_v6 = vld [vmem:[#allocation10_spill] sm:$0xff] }
  0x88   :  { %1585 = vmatpush1.bf16.msra.mxu1 %v2702_v7  ;;  %1545 = vmatprep.subr.bf16.mxu0 %v2708_v8  ;;  %v3832_v7 = vld [vmem:[#allocation11_spill] sm:$0xff]  ;;  %v3833_v8 = vld [vmem:[#allocation12_spill] sm:$0xff] }
  0x89   :  { %1586 = vmatprep.subr.bf16.mxu1 %v2713_v9  ;;  %v1192_v9 = vshll.u32 %v3399_v51, 16 }
  0x8b   :  { %1546 = vmatpush1.bf16.msra.mxu0 %v2718_v10  ;;  %v1206_v10 = vshll.u32 %v3402_v43, 16 }
  0x8c   :  { %1587 = vmatpush1.bf16.msra.mxu1 %v2723_v11  ;;  %1547 = vmatprep.subr.bf16.mxu0 %v2730_v12  ;;  %v3834_v11 = vld [vmem:[#allocation13_spill] sm:$0xff]  ;;  %v3835_v12 = vld [vmem:[#allocation14_spill] sm:$0xff] }
  0x8d   :  { %1588 = vmatprep.subr.bf16.mxu1 %v2737_v13  ;;  %v3836_v13 = vld [vmem:[#allocation15_spill] sm:$0xff] }
  0x8f   :  { %1548 = vmatpush1.bf16.msra.mxu0 %v2742_v14  ;;  %v3837_v14 = vld [vmem:[#allocation16_spill] sm:$0xff] }
  0x90   :  { %1589 = vmatpush1.bf16.msra.mxu1 %v2749_v15  ;;  %1549 = vmatprep.subr.bf16.mxu0 %v2754_v16  ;;  %v1190_v15 = vshrl.u32 %v3399_v51, 16  ;;  %v1194_v16 = vrot.slane %v1192_v9, 1  ;;  %v3884_v9 = vld [vmem:[#allocation63_spill] sm:$0xff] }
  0x91   :  { %1590 = vmatprep.subr.bf16.mxu1 %v2761_v17  ;;  %v1204_v17 = vshrl.u32 %v3402_v43, 16 }
  0x93   :  { %1550 = vmatpush1.bf16.msra.mxu0 %v2766_v18  ;;  %v1208_v18 = vrot.slane %v1206_v10, 1  ;;  %v3885_v10 = vld [vmem:[#allocation64_spill] sm:$0xff] }
  0x94   :  { %1591 = vmatpush1.bf16.msra.mxu1 %v2771_v19  ;;  %1551 = vmatprep.subr.bf16.mxu0 %v2778_v20  ;;  %v3838_v19 = vld [vmem:[#allocation17_spill] sm:$0xff]  ;;  %v3839_v20 = vld [vmem:[#allocation18_spill] sm:$0xff] }
  0x95   :  { %1592 = vmatprep.subr.bf16.mxu1 %v2785_v21  ;;  %v3840_v21 = vld [vmem:[#allocation19_spill] sm:$0xff] }
  0x97   :  { %1552 = vmatpush1.bf16.msra.mxu0 %v2790_v22  ;;  %v1195_v22 = vor.u32 %v1194_v16, %v1190_v15  ;;  %v3890_v15 = vld [vmem:[#allocation69_spill] sm:$0xff]  ;;  %v3891_v16 = vld [vmem:[#allocation70_spill] sm:$0xff] }
  0x98   :  { %1593 = vmatpush1.bf16.msra.mxu1 %v2797_v23  ;;  %1553 = vmatprep.subr.bf16.mxu0 %v2802_v24  ;;  %v1209_v23 = vor.u32 %v1208_v18, %v1204_v17  ;;  %v3841_v24 = vld [vmem:[#allocation20_spill] sm:$0xff]  ;;  %v3892_v17 = vld [vmem:[#allocation71_spill] sm:$0xff] }
  0x99   :  { %1594 = vmatprep.subr.bf16.mxu1 %v2809_v25  ;;  %v3842_v25 = vld [vmem:[#allocation21_spill] sm:$0xff]  ;;  %v3893_v18 = vld [vmem:[#allocation72_spill] sm:$0xff] }
  0x9b   :  { %1554 = vmatpush1.bf16.msra.mxu0 %v2814_v26  ;;  %v3843_v26 = vld [vmem:[#allocation22_spill] sm:$0xff] }
  0x9c   :  { %1595 = vmatpush1.bf16.msra.mxu1 %v2819_v27  ;;  %1555 = vmatprep.subr.bf16.mxu0 %v2826_v28  ;;  %v3844_v27 = vld [vmem:[#allocation23_spill] sm:$0xff]  ;;  %v3845_v28 = vld [vmem:[#allocation24_spill] sm:$0xff] }
  0x9d   :  { %1596 = vmatprep.subr.bf16.mxu1 %v2833_v29  ;;  %v3846_v29 = vld [vmem:[#allocation25_spill] sm:$0xff] }
  0x9f   :  { %1556 = vmatpush1.bf16.msra.mxu0 %v2838_v30  ;;  %v3847_v30 = vld [vmem:[#allocation26_spill] sm:$0xff] }
  0xa0   :  { %1597 = vmatpush1.bf16.msra.mxu1 %v2845_v31  ;;  %1557 = vmatprep.subr.bf16.mxu0 %v2850_v32  ;;  %v3848_v31 = vld [vmem:[#allocation27_spill] sm:$0xff]  ;;  %v3849_v32 = vld [vmem:[#allocation28_spill] sm:$0xff] }
  0xa1   :  { %1598 = vmatprep.subr.bf16.mxu1 %v2857_v33  ;;  %v3850_v33 = vld [vmem:[#allocation29_spill] sm:$0xff] }
  0xa3   :  { %1558 = vmatpush1.bf16.msra.mxu0 %v2862_v34  ;;  %v3851_v34 = vld [vmem:[#allocation30_spill] sm:$0xff] }
  0xa4   :  { %1599 = vmatpush1.bf16.msra.mxu1 %v2867_v35  ;;  %1559 = vmatprep.subr.bf16.mxu0 %v2874_v39  ;;  %v3852_v35 = vld [vmem:[#allocation31_spill] sm:$0xff]  ;;  %v3853_v39 = vld [vmem:[#allocation32_spill] sm:$0xff] }
  0xa5   :  { %1600 = vmatprep.subr.bf16.mxu1 %v2881_v40  ;;  %v3854_v40 = vld [vmem:[#allocation33_spill] sm:$0xff] }
  0xa7   :  { %1560 = vmatpush1.bf16.msra.mxu0 %v2886_v41  ;;  %v3855_v41 = vld [vmem:[#allocation34_spill] sm:$0xff] }
  0xa8   :  { %1601 = vmatpush1.bf16.msra.mxu1 %v2895_v44  ;;  %1561 = vmatprep.subr.bf16.mxu0 %v2900_v45  ;;  %v3856_v44 = vld [vmem:[#allocation35_spill] sm:$0xff]  ;;  %v3857_v45 = vld [vmem:[#allocation36_spill] sm:$0xff] }
  0xa9   :  { %1602 = vmatprep.subr.bf16.mxu1 %v2907_v46  ;;  %v3858_v46 = vld [vmem:[#allocation37_spill] sm:$0xff] }
  0xab   :  { %1562 = vmatpush1.bf16.msra.mxu0 %v2912_v47  ;;  %v3859_v47 = vld [vmem:[#allocation38_spill] sm:$0xff] }
  0xac   :  { %1603 = vmatpush1.bf16.msra.mxu1 %v2917_v48  ;;  %1563 = vmatprep.subr.bf16.mxu0 %v2927_v50  ;;  %v3860_v48 = vld [vmem:[#allocation39_spill] sm:$0xff]  ;;  %v3862_v50 = vld [vmem:[#allocation41_spill] sm:$0xff] }
  0xad   :  { %1604 = vmatprep.subr.bf16.mxu1 %v3825_v0  ;;  %v3875_v0 = vld [vmem:[#allocation54_spill] sm:$0xff] }
  0xaf   :  { %1564 = vmatpush1.bf16.msra.mxu0 %v3826_v1  ;;  %v3876_v1 = vld [vmem:[#allocation55_spill] sm:$0xff] }
  0xb0   :  { %1605 = vmatpush1.bf16.msra.mxu1 %v3827_v2  ;;  %1565 = vmatprep.subr.bf16.mxu0 %v3828_v3  ;;  %v3877_v2 = vld [vmem:[#allocation56_spill] sm:$0xff]  ;;  %v3878_v3 = vld [vmem:[#allocation57_spill] sm:$0xff] }
  0xb1   :  { %1606 = vmatprep.subr.bf16.mxu1 %v3829_v4  ;;  %v3879_v4 = vld [vmem:[#allocation58_spill] sm:$0xff] }
  0xb3   :  { %1566 = vmatpush1.bf16.msra.mxu0 %v3830_v5  ;;  %v3880_v5 = vld [vmem:[#allocation59_spill] sm:$0xff] }
  0xb4   :  { %1607 = vmatpush1.bf16.msra.mxu1 %v3831_v6  ;;  %1567 = vmatprep.subr.bf16.mxu0 %v3832_v7  ;;  %v3881_v6 = vld [vmem:[#allocation60_spill] sm:$0xff]  ;;  %v3882_v7 = vld [vmem:[#allocation61_spill] sm:$0xff] }
  0xb5   :  { %1608 = vmatprep.subr.bf16.mxu1 %v3833_v8  ;;  %v3883_v8 = vld [vmem:[#allocation62_spill] sm:$0xff] }
  0xb7   :  { %1568 = vmatpush1.bf16.msra.mxu0 %v3834_v11  ;;  %v3886_v11 = vld [vmem:[#allocation65_spill] sm:$0xff] }
  0xb8   :  { %1609 = vmatpush1.bf16.msra.mxu1 %v3835_v12  ;;  %1569 = vmatprep.subr.bf16.mxu0 %v3836_v13  ;;  %v3887_v12 = vld [vmem:[#allocation66_spill] sm:$0xff]  ;;  %v3888_v13 = vld [vmem:[#allocation67_spill] sm:$0xff] }
  0xb9   :  { %1610 = vmatprep.subr.bf16.mxu1 %v3837_v14  ;;  %v3889_v14 = vld [vmem:[#allocation68_spill] sm:$0xff] }
  0xbb   :  { %1570 = vmatpush1.bf16.msra.mxu0 %v3838_v19  ;;  %v3894_v19 = vld [vmem:[#allocation73_spill] sm:$0xff] }
  0xbc   :  { %1611 = vmatpush1.bf16.msra.mxu1 %v3839_v20  ;;  %1571 = vmatprep.subr.bf16.mxu0 %v3046_v53  ;;  %v3867_v53 = vld [vmem:[#allocation46_spill] sm:$0xff] }
  0xbd   :  { %1612 = vmatprep.subr.bf16.mxu1 %v3840_v21  ;;  %v3895_v20 = vld [vmem:[#allocation74_spill] sm:$0xff]  ;;  %v3896_v21 = vld [vmem:[#allocation75_spill] sm:$0xff] }
  0xbf   :  { %1572 = vmatpush1.bf16.msra.mxu0 %v3841_v24  ;;  %v3899_v24 = vld [vmem:[#allocation78_spill] sm:$0xff] }
  0xc0   :  { %1613 = vmatpush1.bf16.msra.mxu1 %v3842_v25  ;;  %1947 = vmatprep.subr.bf16.mxu0 %v3843_v26  ;;  %v3900_v25 = vld [vmem:[#allocation79_spill] sm:$0xff]  ;;  %v3901_v26 = vld [vmem:[#allocation80_spill] sm:$0xff] }
  0xc1   :  { %1988 = vmatprep.subr.bf16.mxu1 %v3844_v27  ;;  %v3902_v27 = vld [vmem:[#allocation81_spill] sm:$0xff] }
  0xc2   :  { %1574 = vmatmul.mubr.bf16.vlgmr.msra.gmra.mrb[8].mxu0 %v1195_v22  ;;  %v3897_v22 = vld [vmem:[#allocation76_spill] sm:$0xff] }
  0xc3   :  { %1615 = vmatmul.mubr.bf16.vlgmr.msra.gmra.mrb[8].mxu1 %v1209_v23  ;;  %1948 = vmatpush1.bf16.msra.mxu0 %v3845_v28  ;;  %v3898_v23 = vld [vmem:[#allocation77_spill] sm:$0xff] }
  0xc4   :  { %1989 = vmatpush1.bf16.msra.mxu1 %v3846_v29  ;;  %1949 = vmatprep.subr.bf16.mxu0 %v3847_v30 }
  0xc5   :  { %1990 = vmatprep.subr.bf16.mxu1 %v3848_v31  ;;  %1979 = vmatprep.mubr.bf16.mxu0 %v3430_v49  ;;  %v3861_v49 = vld [vmem:[#allocation40_spill] sm:$0xff] }
  0xc6   :  { %2020 = vmatprep.mubr.bf16.mxu1 %v3434_v37  ;;  %v3874_v37 = vld [vmem:[#allocation53_spill] sm:$0xff] }
  0xc7   :  { %1950 = vmatpush1.bf16.msra.mxu0 %v3849_v32 }
  0xc8   :  { %1991 = vmatpush1.bf16.msra.mxu1 %v3850_v33  ;;  %1951 = vmatprep.subr.bf16.mxu0 %v3851_v34 }
  0xc9   :  { %1992 = vmatprep.subr.bf16.mxu1 %v3852_v35 }
  0xcb   :  { %1952 = vmatpush1.bf16.msra.mxu0 %v3853_v39 }
  0xcc   :  { %1993 = vmatpush1.bf16.msra.mxu1 %v3854_v40  ;;  %1953 = vmatprep.subr.bf16.mxu0 %v3855_v41  ;;  %v3903_v40 = vld [vmem:[#allocation2_spill] sm:$0xff] }
  0xcd   :  { %1994 = vmatprep.subr.bf16.mxu1 %v3856_v44 }
  0xcf   :  { %1954 = vmatpush1.bf16.msra.mxu0 %v3857_v45 }
  0xd0   :  { %1995 = vmatpush1.bf16.msra.mxu1 %v3858_v46  ;;  %1955 = vmatprep.subr.bf16.mxu0 %v3859_v47 }
  0xd1   :  { %1996 = vmatprep.subr.bf16.mxu1 %v3860_v48 }
  0xd3   :  { %1956 = vmatpush1.bf16.msra.mxu0 %v3861_v49 }
  0xd4   :  { %1997 = vmatpush1.bf16.msra.mxu1 %v3862_v50  ;;  %1957 = vmatprep.subr.bf16.mxu0 %v3863_v54 }
  0xd5   :  { %1998 = vmatprep.subr.bf16.mxu1 %v3864_v60 }
  0xd7   :  { %1958 = vmatpush1.bf16.msra.mxu0 %v3865_v62 }
  0xd8   :  { %1999 = vmatpush1.bf16.msra.mxu1 %v3866_v52  ;;  %1959 = vmatprep.subr.bf16.mxu0 %v3867_v53 }
  0xd9   :  { %2000 = vmatprep.subr.bf16.mxu1 %v3868_v58 }
  0xdb   :  { %1960 = vmatpush1.bf16.msra.mxu0 %v3869_v55 }
  0xdc   :  { %2001 = vmatpush1.bf16.msra.mxu1 %v3870_v63  ;;  %1961 = vmatprep.subr.bf16.mxu0 %v3871_v42 }
  0xdd   :  { %2002 = vmatprep.subr.bf16.mxu1 %v3872_v56 }
  0xdf   :  { %1962 = vmatpush1.bf16.msra.mxu0 %v3873_v57 }
  0xe0   :  { %2003 = vmatpush1.bf16.msra.mxu1 %v3874_v37  ;;  %1963 = vmatprep.subr.bf16.mxu0 %v3875_v0  ;;  %v1038_v37 = vld [vmem:[%s3662_s3] sm:$0xf]  ;;  %v3908_v0 = vld [vmem:[#allocation3_spill] sm:$0xff] }
  0xe1   :  { %2004 = vmatprep.subr.bf16.mxu1 %v3876_v1 }
  0xe3   :  { %1964 = vmatpush1.bf16.msra.mxu0 %v3877_v2 }
  0xe4   :  { %2005 = vmatpush1.bf16.msra.mxu1 %v3878_v3  ;;  %1965 = vmatprep.subr.bf16.mxu0 %v3879_v4 }
  0xe5   :  { %2006 = vmatprep.subr.bf16.mxu1 %v3880_v5 }
  0xe7   :  { %1966 = vmatpush1.bf16.msra.mxu0 %v3881_v6 }
  0xe8   :  { %2007 = vmatpush1.bf16.msra.mxu1 %v3882_v7  ;;  %1967 = vmatprep.subr.bf16.mxu0 %v3883_v8 }
  0xe9   :  { %2008 = vmatprep.subr.bf16.mxu1 %v3884_v9 }
  0xeb   :  { %1968 = vmatpush1.bf16.msra.mxu0 %v3885_v10 }
  0xec   :  { %2009 = vmatpush1.bf16.msra.mxu1 %v3886_v11  ;;  %1969 = vmatprep.subr.bf16.mxu0 %v3887_v12 }
  0xed   :  { %2010 = vmatprep.subr.bf16.mxu1 %v3888_v13 }
  0xef   :  { %1970 = vmatpush1.bf16.msra.mxu0 %v3889_v14 }
  0xf0   :  { %2011 = vmatpush1.bf16.msra.mxu1 %v3890_v15  ;;  %1971 = vmatprep.subr.bf16.mxu0 %v3891_v16 }
  0xf1   :  { %2012 = vmatprep.subr.bf16.mxu1 %v3892_v17 }
  0xf3   :  { %1972 = vmatpush1.bf16.msra.mxu0 %v3893_v18 }
  0xf4   :  { %2013 = vmatpush1.bf16.msra.mxu1 %v3894_v19  ;;  %1973 = vmatprep.subr.bf16.mxu0 %v3895_v20 }
  0xf5   :  { %2014 = vmatprep.subr.bf16.mxu1 %v3896_v21 }
  0xf7   :  { %1974 = vmatpush1.bf16.msra.mxu0 %v3897_v22 }
  0xf8   :  { %2015 = vmatpush1.bf16.msra.mxu1 %v3898_v23  ;;  %1975 = vmatprep.subr.bf16.mxu0 %v3899_v24 }
  0xf9   :  { %2016 = vmatprep.subr.bf16.mxu1 %v3900_v25 }
  0xfb   :  { %1976 = vmatpush1.bf16.msra.mxu0 %v3901_v26 }
  0xfc   :  { %2017 = vmatpush1.bf16.msra.mxu1 %v3902_v27  ;;  %1977 = vmatprep.subr.bf16.mxu0 %v3453_v61 }
  0xfd   :  { %2018 = vmatprep.subr.bf16.mxu1 %v3458_v36  ;;  %v1006_v36 = vsub.s32 0, %v3903_v40 }
  0xff   :  { %1978 = vmatpush1.bf16.msra.mxu0 %v3467_v59 }
 0x100   :  { %2019 = vmatpush1.bf16.msra.mxu1 %v3472_v38  ;;  %v14_v38 = vld [vmem:[%s3661_s2] sm:$0x3] }
 0x101   :  { %v1007_v44 = vrot.slane %v14_v38, %v1006_v36 }
 0x102   :  { %1980 = vmatmul.mubr.bf16.vlgmr.msra.gmra.mrb[12].mxu0 %v3399_v51  ;;  %v1010_v51 = vsub.s32 1, %v3903_v40 }
 0x103   :  { %2021 = vmatmul.mubr.bf16.vlgmr.msra.gmra.mrb[12].mxu1 %v3402_v43 }
 0x104   :  { %v1011_v48 = vrot.slane %v14_v38, %v1010_v51 }
 0x115   :  { %v549_v28 = vpop.f32.mrb[0].mxu0 }
 0x116   :  { %v590_v29 = vpop.f32.mrb[0].mxu1  ;;  %v551_v31 = vpop.f32.mrb[1].mxu0 }
 0x117   :  { %v591_v30 = vadd.f32 %v590_v29, %v549_v28  ;;  %v592_v32 = vpop.f32.mrb[1].mxu1  ;;  %v553_v34 = vpop.f32.mrb[2].mxu0 }
 0x118   :  { %v593_v33 = vadd.f32 %v592_v32, %v551_v31  ;;  %v594_v35 = vpop.f32.mrb[2].mxu1  ;;  %v554_v39 = vpop.f32.mrb[3].mxu0 }
 0x119   :  { %v595_v61 = vpop.f32.mrb[3].mxu1 }
 0x155   :  { %v955_v59 = vpop.f32.mrb[4].mxu0 }
 0x156   :  { %v996_v43 = vpop.f32.mrb[4].mxu1  ;;  %v956_v41 = vadd.f32 %v955_v59, %v591_v30  ;;  %v957_v45 = vpop.f32.mrb[5].mxu0  ;;  %v2441_v30 = vld [vmem:[%s3662_s3 + $0x4] sm:$0xf] }
 0x157   :  { %v998_v46 = vpop.f32.mrb[5].mxu1  ;;  %v958_v47 = vadd.f32 %v957_v45, %v593_v33  ;;  %v959_v49 = vpop.f32.mrb[6].mxu0 }
 0x158   :  { %v1000_v50 = vpop.f32.mrb[6].mxu1  ;;  %v997_v54 = vadd.f32 %v996_v43, %v956_v41  ;;  %v960_v60 = vpop.f32.mrb[7].mxu0 }
 0x159   :  { %v1001_v62 = vpop.f32.mrb[7].mxu1  ;;  %v999_v52 = vadd.f32 %v998_v46, %v958_v47 }
 0x15a   :  { %v1014_v53 = vadd.f32 %v1007_v44, %v997_v54 }
 0x15b   :  { %v1015_v58 = vadd.f32 %v1011_v48, %v999_v52 }
 0x15c   :  { %v1016_v55 = vmax.f32 %v1014_v53, 0.0 }
 0x15d   :  { %v1017_v42 = vmax.f32 %v1015_v58, 0.0 }
 0x15f   :  { %v2246_v57 = vpack.c.bf16 %v1017_v42, %v1016_v55 }
 0x161   :  { %v1029_v1 = vrot.slane %v2246_v57, %v3908_v0 }
 0x163   :  { %v1039_v2 = vsel %vm1037_vm6, %v1029_v1, %v1038_v37 }
 0x164   :  { %1040 = vst [vmem:[%s3662_s3] sm:$0xf] %v1039_v2 }
 0x195   :  { %v1575_v3 = vpop.f32.mrb[8].mxu0 }
 0x196   :  { %v1616_v4 = vpop.f32.mrb[8].mxu1  ;;  %v1577_v6 = vpop.f32.mrb[9].mxu0 }
 0x197   :  { %v1617_v5 = vadd.f32 %v1616_v4, %v1575_v3  ;;  %v1618_v7 = vpop.f32.mrb[9].mxu1  ;;  %v1579_v9 = vpop.f32.mrb[10].mxu0 }
 0x198   :  { %v1619_v8 = vadd.f32 %v1618_v7, %v1577_v6  ;;  %v1620_v10 = vpop.f32.mrb[10].mxu1  ;;  %v1580_v11 = vpop.f32.mrb[11].mxu0 }
 0x199   :  { %v1621_v12 = vpop.f32.mrb[11].mxu1 }
 0x1d5   :  { %v1981_v13 = vpop.f32.mrb[12].mxu0 }
 0x1d6   :  { %v2022_v14 = vpop.f32.mrb[12].mxu1  ;;  %v1982_v15 = vadd.f32 %v1981_v13, %v1617_v5  ;;  %v1983_v16 = vpop.f32.mrb[13].mxu0 }
 0x1d7   :  { %v2024_v17 = vpop.f32.mrb[13].mxu1  ;;  %v1984_v18 = vadd.f32 %v1983_v16, %v1619_v8  ;;  %v1985_v19 = vpop.f32.mrb[14].mxu0 }
 0x1d8   :  { %v2026_v20 = vpop.f32.mrb[14].mxu1  ;;  %v2023_v21 = vadd.f32 %v2022_v14, %v1982_v15  ;;  %v1986_v22 = vpop.f32.mrb[15].mxu0 }
 0x1d9   :  { %v2027_v23 = vpop.f32.mrb[15].mxu1  ;;  %v2025_v24 = vadd.f32 %v2024_v17, %v1984_v18 }
 0x1da   :  { %v2029_v25 = vadd.f32 %v2023_v21, %v1007_v44 }
 0x1db   :  { %v2030_v26 = vadd.f32 %v2025_v24, %v1011_v48 }
 0x1dc   :  { %v2031_v27 = vmax.f32 %v2029_v25, 0.0 }
 0x1dd   :  { %v2032_v28 = vmax.f32 %v2030_v26, 0.0 }
 0x1df   :  { %v2440_v29 = vpack.c.bf16 %v2032_v28, %v2031_v27 }
 0x1e1   :  { %v2044_v31 = vrot.slane %v2440_v29, %v3908_v0 }
 0x1e3   :  { %v2048_v32 = vsel %vm1037_vm6, %v2044_v31, %v2441_v30 }
 0x1e4   :  { %2442 = vst [vmem:[%s3662_s3 + $0x4] sm:$0xf] %v2048_v32 }

</bundles_post_ra>
